<compile_context>
chip_gen: v5e
topology: v5e:2x2
jax: 0.10.0
libtpu: 0.0.40
codegen_flags: <defaults>
</compile_context>

<pallas_src>
import math
from functools import partial

import jax
import jax.numpy as jnp
from jax import lax
from jax.experimental import pallas as pl
from jax.experimental.pallas import tpu as pltpu


def _row_tile(m):
    """Largest row tile with zero padded rows; two balanced tiles when
    possible (v7x: 2 TensorCores share the 'parallel' grid axis)."""
    return m // 2 if m % 16 == 0 else m


def _cp():
    return pltpu.CompilerParams(dimension_semantics=("parallel",))


def _gelu_tanh(x):
    # TODO(synk): PyTorch nn.GELU defaults to the exact erf form; the tanh
    # approximation is used here (EUP friendly) and in the reference below.
    c = math.sqrt(2.0 / math.pi)
    return 0.5 * x * (1.0 + jnp.tanh(c * (x + 0.044715 * x * x * x)))


# --------------------------------------------------------------------------
# Kernel 1: norm1 (row LayerNorm, two-pass variance)
# --------------------------------------------------------------------------
def _ln_kernel(x_ref, g_ref, b_ref, o_ref, *, eps):
    x = x_ref[...].astype(jnp.float32)
    mean = jnp.mean(x, axis=-1, keepdims=True)
    xc = x - mean
    var = jnp.mean(xc * xc, axis=-1, keepdims=True)
    y = xc * lax.rsqrt(var + eps)
    o_ref[...] = (y * g_ref[...] + b_ref[...]).astype(o_ref.dtype)


def layernorm(x, g, b, *, eps):
    M, C = x.shape
    tm = _row_tile(M)
    return pl.pallas_call(
        partial(_ln_kernel, eps=eps),
        out_shape=jax.ShapeDtypeStruct((M, C), x.dtype),
        grid=(M // tm,),
        in_specs=[pl.BlockSpec((tm, C), lambda i: (i, 0)),
                  pl.BlockSpec((1, C), lambda i: (0, 0)),
                  pl.BlockSpec((1, C), lambda i: (0, 0))],
        out_specs=pl.BlockSpec((tm, C), lambda i: (i, 0)),
        compiler_params=_cp(),
    )(x, g, b)


# --------------------------------------------------------------------------
# Kernel 2: 9-tap depthwise conv + folded BN + proj_q (scale folded in)
# --------------------------------------------------------------------------
def _conv_q_kernel(t_ref, dw_ref, w_ref, b_ref, o_ref):
    acc = jnp.sum(t_ref[...].astype(jnp.float32) * dw_ref[...], axis=0)
    y = jnp.dot(acc, w_ref[...], preferred_element_type=jnp.float32) + b_ref[...]
    o_ref[...] = y.astype(o_ref.dtype)


def conv_proj_q(taps, dw, w, b):
    T9, M, C = taps.shape
    N = w.shape[1]
    tm = _row_tile(M)
    return pl.pallas_call(
        _conv_q_kernel,
        out_shape=jax.ShapeDtypeStruct((M, N), taps.dtype),
        grid=(M // tm,),
        in_specs=[pl.BlockSpec((T9, tm, C), lambda i: (0, i, 0)),
                  pl.BlockSpec((T9, 1, C), lambda i: (0, 0, 0)),
                  pl.BlockSpec((C, N), lambda i: (0, 0)),
                  pl.BlockSpec((1, N), lambda i: (0, 0))],
        out_specs=pl.BlockSpec((tm, N), lambda i: (i, 0)),
        compiler_params=_cp(),
    )(taps, dw, w, b)


# --------------------------------------------------------------------------
# Kernel 3: shared stride-2 taps -> (dwconv+BN+proj) for BOTH k and v
# --------------------------------------------------------------------------
def _conv_kv_kernel(t_ref, dwk_ref, dwv_ref, wk_ref, wv_ref, bk_ref, bv_ref,
                    k_ref, v_ref):
    taps = t_ref[...].astype(jnp.float32)
    acc_k = jnp.sum(taps * dwk_ref[...], axis=0)
    acc_v = jnp.sum(taps * dwv_ref[...], axis=0)
    k_ref[...] = (jnp.dot(acc_k, wk_ref[...],
                          preferred_element_type=jnp.float32)
                  + bk_ref[...]).astype(k_ref.dtype)
    v_ref[...] = (jnp.dot(acc_v, wv_ref[...],
                          preferred_element_type=jnp.float32)
                  + bv_ref[...]).astype(v_ref.dtype)


def conv_proj_kv(taps, dwk, dwv, wk, wv, bk, bv):
    T9, M, C = taps.shape
    N = wk.shape[1]
    tm = _row_tile(M)
    return pl.pallas_call(
        _conv_kv_kernel,
        out_shape=(jax.ShapeDtypeStruct((M, N), taps.dtype),
                   jax.ShapeDtypeStruct((M, N), taps.dtype)),
        grid=(M // tm,),
        in_specs=[pl.BlockSpec((T9, tm, C), lambda i: (0, i, 0)),
                  pl.BlockSpec((T9, 1, C), lambda i: (0, 0, 0)),
                  pl.BlockSpec((T9, 1, C), lambda i: (0, 0, 0)),
                  pl.BlockSpec((C, N), lambda i: (0, 0)),
                  pl.BlockSpec((C, N), lambda i: (0, 0)),
                  pl.BlockSpec((1, N), lambda i: (0, 0)),
                  pl.BlockSpec((1, N), lambda i: (0, 0))],
        out_specs=(pl.BlockSpec((tm, N), lambda i: (i, 0)),
                   pl.BlockSpec((tm, N), lambda i: (i, 0))),
        compiler_params=_cp(),
    )(taps, dwk, dwv, wk, wv, bk, bv)


# --------------------------------------------------------------------------
# Kernel 4: per-batch asymmetric mixed attention + out-proj + residual
# (heads split in-kernel from the token-major (L, C) layout)
# --------------------------------------------------------------------------
def _attn_proj_kernel(q_ref, k_ref, v_ref, res_ref, w_ref, b_ref, o_ref, *,
                      n_t, n_kv_t, num_heads):
    q = q_ref[...].astype(jnp.float32)          # (Lq, C), scale pre-folded
    k = k_ref[...].astype(jnp.float32)          # (Lk, C)
    v = v_ref[...].astype(jnp.float32)
    w = w_ref[...].astype(jnp.float32)          # (C, C) == proj.weight.T
    C = q.shape[-1]
    D = C // num_heads

    def softmax_attn(qq, kk, vv):
        s = lax.dot_general(qq, kk, (((1,), (1,)), ((), ())),
                            preferred_element_type=jnp.float32)
        s = s - jnp.max(s, axis=-1, keepdims=True)
        e = jnp.exp(s)
        a = e / jnp.sum(e, axis=-1, keepdims=True)
        return jnp.dot(a, vv, preferred_element_type=jnp.float32)

    y = res_ref[...].astype(jnp.float32) + b_ref[...]
    for h in range(num_heads):                  # H is tiny & static: unrolled
        qh = q[:, h * D:(h + 1) * D]
        kh = k[:, h * D:(h + 1) * D]
        vh = v[:, h * D:(h + 1) * D]
        o_t = softmax_attn(qh[:n_t], kh[:n_kv_t], vh[:n_kv_t])   # template
        o_s = softmax_attn(qh[n_t:], kh, vh)                     # search
        o_h = jnp.concatenate([o_t, o_s], axis=0)                # (Lq, D)
        y = y + jnp.dot(o_h, w[h * D:(h + 1) * D, :],
                        preferred_element_type=jnp.float32)
    o_ref[...] = y.astype(o_ref.dtype)


def attention_proj(q, k, v, res, w, b, *, n_t, n_kv_t, num_heads):
    B, Lq, C = q.shape
    Lk = k.shape[1]
    return pl.pallas_call(
        partial(_attn_proj_kernel, n_t=n_t, n_kv_t=n_kv_t, num_heads=num_heads),
        out_shape=jax.ShapeDtypeStruct((B, Lq, C), q.dtype),
        grid=(B,),
        in_specs=[pl.BlockSpec((None, Lq, C), lambda i: (i, 0, 0)),
                  pl.BlockSpec((None, Lk, C), lambda i: (i, 0, 0)),
                  pl.BlockSpec((None, Lk, C), lambda i: (i, 0, 0)),
                  pl.BlockSpec((None, Lq, C), lambda i: (i, 0, 0)),
                  pl.BlockSpec((C, C), lambda i: (0, 0)),
                  pl.BlockSpec((1, C), lambda i: (0, 0))],
        out_specs=pl.BlockSpec((None, Lq, C), lambda i: (i, 0, 0)),
        compiler_params=_cp(),
    )(q, k, v, res, w, b)


# --------------------------------------------------------------------------
# Kernel 5: norm2 + fc1 + GELU + fc2 + residual (hidden never leaves VMEM)
# --------------------------------------------------------------------------
def _mlp_kernel(x_ref, lg_ref, lb_ref, w1_ref, b1_ref, w2_ref, b2_ref, o_ref,
                *, eps):
    x = x_ref[...].astype(jnp.float32)
    mean = jnp.mean(x, axis=-1, keepdims=True)
    xc = x - mean
    var = jnp.mean(xc * xc, axis=-1, keepdims=True)
    xn = xc * lax.rsqrt(var + eps) * lg_ref[...] + lb_ref[...]
    h = jnp.dot(xn, w1_ref[...], preferred_element_type=jnp.float32) + b1_ref[...]
    h = _gelu_tanh(h)
    y = jnp.dot(h, w2_ref[...], preferred_element_type=jnp.float32) + b2_ref[...] + x
    o_ref[...] = y.astype(o_ref.dtype)


def mlp(x, lg, lb, w1, b1, w2, b2, *, eps):
    M, C = x.shape
    Hd = w1.shape[1]
    tm = _row_tile(M)
    return pl.pallas_call(
        partial(_mlp_kernel, eps=eps),
        out_shape=jax.ShapeDtypeStruct((M, C), x.dtype),
        grid=(M // tm,),
        in_specs=[pl.BlockSpec((tm, C), lambda i: (i, 0)),
                  pl.BlockSpec((1, C), lambda i: (0, 0)),
                  pl.BlockSpec((1, C), lambda i: (0, 0)),
                  pl.BlockSpec((C, Hd), lambda i: (0, 0)),
                  pl.BlockSpec((1, Hd), lambda i: (0, 0)),
                  pl.BlockSpec((Hd, C), lambda i: (0, 0)),
                  pl.BlockSpec((1, C), lambda i: (0, 0))],
        out_specs=pl.BlockSpec((tm, C), lambda i: (i, 0)),
        compiler_params=_cp(),
    )(x, lg, lb, w1, b1, w2, b2)


# --------------------------------------------------------------------------
# Tap extraction (tiny strided slices, done in XLA; taps stay at true C)
# --------------------------------------------------------------------------
def _extract_taps(img, kh, kw, stride, padding):
    """img: (B, H, W, C) -> (kh*kw, B, Ho*Wo, C); tap index t = i*kw + j."""
    B, H, W, C = img.shape
    Ho = (H + 2 * padding - kh) // stride + 1
    Wo = (W + 2 * padding - kw) // stride + 1
    xp = jnp.pad(img, ((0, 0), (padding, padding), (padding, padding), (0, 0)))
    taps = []
    for i in range(kh):
        for j in range(kw):
            taps.append(xp[:, i:i + stride * (Ho - 1) + 1:stride,
                              j:j + stride * (Wo - 1) + 1:stride, :])
    return jnp.stack(taps, axis=0).reshape(kh * kw, B, Ho * Wo, C), Ho, Wo


# --------------------------------------------------------------------------
# One-time parameter preparation (folding / transposing / reshaping)
# --------------------------------------------------------------------------
def prepare_params(p, *, dim, eps=1e-5):
    C = dim
    scale = float(dim) ** -0.5        # matches self.scale = dim_out ** -0.5

    def fold_bn(bn):
        g, b, m, v = bn
        s = g / jnp.sqrt(v + eps)
        return s, b - m * s

    def dw_taps(w_dw):                # (C,1,3,3) torch -> (9,1,C) tap-major
        return w_dw.reshape(C, 9).T.reshape(9, 1, C)

    sq, tq = fold_bn(p["bnq"])
    sk, tk = fold_bn(p["bnk"])
    sv, tv = fold_bn(p["bnv"])
    wq_t, wk_t, wv_t = p["wq"].T, p["wk"].T, p["wv"].T     # (C_in, C_out)
    return {
        "ln1_g": p["ln1_g"].reshape(1, C), "ln1_b": p["ln1_b"].reshape(1, C),
        "dwq": dw_taps(p["dwq_w"]), "dwk": dw_taps(p["dwk_w"]),
        "dwv": dw_taps(p["dwv_w"]),
        # BN folded into the 1x1 projection; attention scale folded into q.
        "wq_f": (sq[:, None] * wq_t) * scale,
        "bq_f": ((tq @ wq_t) * scale).reshape(1, C),
        "wk_f": sk[:, None] * wk_t, "bk_f": (tk @ wk_t).reshape(1, C),
        "wv_f": sv[:, None] * wv_t, "bv_f": (tv @ wv_t).reshape(1, C),
        "wproj_t": p["wproj"].T, "bproj": p["bproj"].reshape(1, C),
        "ln2_g": p["ln2_g"].reshape(1, C), "ln2_b": p["ln2_b"].reshape(1, C),
        "w1_t": p["w1"].T, "b1": p["b1"].reshape(1, -1),
        "w2_t": p["w2"].T, "b2": p["b2"].reshape(1, C),
    }


# --------------------------------------------------------------------------
# Block forward (eval mode: dropout / drop_path are identity)
# --------------------------------------------------------------------------
def block_forward(x, pp, *, t_h, t_w, s_h, s_w, num_heads, eps=1e-5):
    """x: (B, T, C) with T = t_h*t_w + s_h*s_w; returns (B, T, C)."""
    B, T, C = x.shape
    n_t, n_s = t_h * t_w, s_h * s_w
    assert T == n_t + n_s

    # ---- norm1 ----
    xn = layernorm(x.reshape(B * T, C), pp["ln1_g"], pp["ln1_b"], eps=eps)
    xn = xn.reshape(B, T, C)
    tmpl = xn[:, :n_t, :].reshape(B, t_h, t_w, C)
    srch = xn[:, n_t:, :].reshape(B, s_h, s_w, C)

    # ---- taps: q uses stride 1; k and v SHARE the stride-2 taps ----
    tq_t, _, _ = _extract_taps(tmpl, 3, 3, 1, 1)
    tq_s, _, _ = _extract_taps(srch, 3, 3, 1, 1)
    taps_q = jnp.concatenate([tq_t, tq_s], axis=2).reshape(9, B * T, C)

    tk_t, ho_t, wo_t = _extract_taps(tmpl, 3, 3, 2, 1)
    tk_s, ho_s, wo_s = _extract_taps(srch, 3, 3, 2, 1)
    n_kv_t = ho_t * wo_t
    Lk = n_kv_t + ho_s * wo_s
    taps_kv = jnp.concatenate([tk_t, tk_s], axis=2).reshape(9, B * Lk, C)

    # ---- fused dwconv + BN + linear projections (qkv_bias=False) ----
    q = conv_proj_q(taps_q, pp["dwq"], pp["wq_f"], pp["bq_f"])       # (B*T, C)
    k, v = conv_proj_kv(taps_kv, pp["dwk"], pp["dwv"],
                        pp["wk_f"], pp["wv_f"], pp["bk_f"], pp["bv_f"])

    # ---- asymmetric mixed attention + out-proj + first residual ----
    x1 = attention_proj(q.reshape(B, T, C), k.reshape(B, Lk, C),
                        v.reshape(B, Lk, C), x, pp["wproj_t"], pp["bproj"],
                        n_t=n_t, n_kv_t=n_kv_t, num_heads=num_heads)  # (B,T,C)

    # ---- MLP (norm2 + fc1 + GELU + fc2) + second residual ----
    out = mlp(x1.reshape(B * T, C), pp["ln2_g"], pp["ln2_b"],
              pp["w1_t"], pp["b1"], pp["w2_t"], pp["b2"], eps=eps)
    return out.reshape(B, T, C)


# --------------------------------------------------------------------------
# Pure-JAX reference (same eval-mode semantics, same GELU approximation)
# --------------------------------------------------------------------------
def _reference(x, p, *, t_h, t_w, s_h, s_w, num_heads, eps=1e-5):
    B, T, C = x.shape
    n_t = t_h * t_w
    H = num_heads
    D = C // H
    scale = float(C) ** -0.5

    def ln(z, g, b):
        mu = z.mean(-1, keepdims=True)
        var = ((z - mu) ** 2).mean(-1, keepdims=True)
        return (z - mu) / jnp.sqrt(var + eps) * g + b

    def dwconv_bn_ref(tok, h, w, w_dw, bn, stride):
        g, bb, m, v = bn
        z = tok.reshape(B, h, w, C).transpose(0, 3, 1, 2)    # NCHW
        y = lax.conv_general_dilated(
            z, w_dw, window_strides=(stride, stride),
            padding=[(1, 1), (1, 1)],
            dimension_numbers=("NCHW", "OIHW", "NCHW"),
            feature_group_count=C)
        y = (y - m.reshape(1, C, 1, 1)) / jnp.sqrt(v.reshape(1, C, 1, 1) + eps)
        y = y * g.reshape(1, C, 1, 1) + bb.reshape(1, C, 1, 1)
        _, _, Ho, Wo = y.shape
        return y.transpose(0, 2, 3, 1).reshape(B, Ho * Wo, C)

    xn = ln(x, p["ln1_g"], p["ln1_b"])
    tmpl, srch = xn[:, :n_t, :], xn[:, n_t:, :]

    def conv_proj(w_dw, bn, stride):
        a = dwconv_bn_ref(tmpl, t_h, t_w, w_dw, bn, stride)
        b = dwconv_bn_ref(srch, s_h, s_w, w_dw, bn, stride)
        return jnp.concatenate([a, b], axis=1)

    q_tok = conv_proj(p["dwq_w"], p["bnq"], 1)
    k_tok = conv_proj(p["dwk_w"], p["bnk"], 2)
    v_tok = conv_proj(p["dwv_w"], p["bnv"], 2)

    q = jnp.einsum("btc,oc->bto", q_tok, p["wq"])
    k = jnp.einsum("btc,oc->bto", k_tok, p["wk"])
    v = jnp.einsum("btc,oc->bto", v_tok, p["wv"])

    def heads(z):
        return z.reshape(B, -1, H, D).transpose(0, 2, 1, 3)

    qh, kh, vh = heads(q), heads(k), heads(v)
    n_t_kv = ((t_h + 1) // 2) ** 2
    q_mt, q_s = qh[:, :, :n_t, :], qh[:, :, n_t:, :]
    k_mt, v_mt = kh[:, :, :n_t_kv, :], vh[:, :, :n_t_kv, :]

    def attn(qq, kk, vv):
        s = jnp.einsum("bhld,bhtd->bhlt", qq, kk) * scale
        return jnp.einsum("bhlt,bhtd->bhld", jax.nn.softmax(s, axis=-1), vv)

    def merge(z):
        return z.transpose(0, 2, 1, 3).reshape(B, -1, H * D)

    a_tok = jnp.concatenate([merge(attn(q_mt, k_mt, v_mt)),
                             merge(attn(q_s, kh, vh))], axis=1)
    a_tok = jnp.einsum("btc,oc->bto", a_tok, p["wproj"]) + p["bproj"]
    x1 = x + a_tok

    h = ln(x1, p["ln2_g"], p["ln2_b"])
    h = jnp.einsum("btc,hc->bth", h, p["w1"]) + p["b1"]
    h = _gelu_tanh(h)
    h = jnp.einsum("bth,ch->btc", h, p["w2"]) + p["b2"]
    return x1 + h


if __name__ == "__main__":
    B = 2
    dim = 32            # dim_in == dim_out (required by the residual)
    num_heads = 2
    t_h = t_w = 4       # template tokens: 4x4 = 16
    s_h = s_w = 8       # search tokens:   8x8 = 64
    hidden = dim * 4    # mlp_ratio = 4.0
    T = t_h * t_w + s_h * s_w

    keys = iter(jax.random.split(jax.random.PRNGKey(0), 40))

    def nrm(shape, s=1.0):
        return s * jax.random.normal(next(keys), shape, dtype=jnp.float32)

    def make_bn():
        return (1.0 + 0.1 * nrm((dim,)), 0.1 * nrm((dim,)), 0.1 * nrm((dim,)),
                0.5 + jax.random.uniform(next(keys), (dim,), dtype=jnp.float32))

    x = nrm((B, T, dim))
    p = {
        "ln1_g": 1.0 + 0.1 * nrm((dim,)), "ln1_b": 0.1 * nrm((dim,)),
        "dwq_w": nrm((dim, 1, 3, 3), 0.2), "bnq": make_bn(),
        "dwk_w": nrm((dim, 1, 3, 3), 0.2), "bnk": make_bn(),
        "dwv_w": nrm((dim, 1, 3, 3), 0.2), "bnv": make_bn(),
        "wq": nrm((dim, dim), 0.1), "wk": nrm((dim, dim), 0.1),
        "wv": nrm((dim, dim), 0.1),
        "wproj": nrm((dim, dim), 0.1), "bproj": 0.05 * nrm((dim,)),
        "ln2_g": 1.0 + 0.1 * nrm((dim,)), "ln2_b": 0.1 * nrm((dim,)),
        "w1": nrm((hidden, dim), 0.1), "b1": 0.05 * nrm((hidden,)),
        "w2": nrm((dim, hidden), 0.1), "b2": 0.05 * nrm((dim,)),
    }

    # Fold / transpose / reshape parameters ONCE, outside the jitted forward.
    pp = prepare_params(p, dim=dim)

    fwd = jax.jit(partial(block_forward, t_h=t_h, t_w=t_w, s_h=s_h, s_w=s_w,
                          num_heads=num_heads))
    y = fwd(x, pp)
    jax.block_until_ready(y)

    y_ref = _reference(x, p, t_h=t_h, t_w=t_w, s_h=s_h, s_w=s_w,
                       num_heads=num_heads)
    assert y.shape == (B, T, dim), y.shape
    err = float(jnp.max(jnp.abs(y - y_ref)))
    assert jnp.allclose(y, y_ref, atol=2e-3, rtol=2e-3), err
    print("KERNEL_OK")
</pallas_src>

<mosaic_0001>
module attributes {stable_mosaic.version = 11 : i64} {
  func.func @_ln_kernel(%arg0: i32, %arg1: memref<80x32xf32, #tpu.memory_space<vmem>>, %arg2: memref<1x32xf32, #tpu.memory_space<vmem>>, %arg3: memref<1x32xf32, #tpu.memory_space<vmem>>, %arg4: memref<80x32xf32, #tpu.memory_space<vmem>>) attributes {dimension_semantics = [#tpu.dimension_semantics<parallel>], iteration_bounds = array<i64: 2>, scalar_prefetch = 0 : i64, scratch_operands = 0 : i64, tpu.core_type = #tpu.core_type<tc>, window_params = [{transform_indices = @transform_0, window_bounds = array<i64: 80, 32>}, {pipeline_mode = #tpu.pipeline_mode<synchronous>, transform_indices = @transform_1, window_bounds = array<i64: 1, 32>}, {pipeline_mode = #tpu.pipeline_mode<synchronous>, transform_indices = @transform_2, window_bounds = array<i64: 1, 32>}, {transform_indices = @transform_3, window_bounds = array<i64: 80, 32>}]} {
    %c0 = arith.constant 0 : index
    %c0_0 = arith.constant 0 : index
    %0 = vector.load %arg1[%c0, %c0_0] : memref<80x32xf32, #tpu.memory_space<vmem>>, vector<80x32xf32>
    %cst = arith.constant dense<0.000000e+00> : vector<80xf32>
    %1 = vector.multi_reduction <add>, %0, %cst [1] : vector<80x32xf32> to vector<80xf32>
    %2 = vector.shape_cast %1 : vector<80xf32> to vector<80x1xf32>
    %cst_1 = arith.constant 3.200000e+01 : f32
    %3 = vector.broadcast %cst_1 : f32 to vector<80x1xf32>
    %4 = arith.divf %2, %3 : vector<80x1xf32>
    %5 = vector.broadcast %4 : vector<80x1xf32> to vector<80x32xf32>
    %6 = arith.subf %0, %5 : vector<80x32xf32>
    %7 = arith.mulf %6, %6 : vector<80x32xf32>
    %cst_2 = arith.constant dense<0.000000e+00> : vector<80xf32>
    %8 = vector.multi_reduction <add>, %7, %cst_2 [1] : vector<80x32xf32> to vector<80xf32>
    %9 = vector.shape_cast %8 : vector<80xf32> to vector<80x1xf32>
    %cst_3 = arith.constant 3.200000e+01 : f32
    %10 = vector.broadcast %cst_3 : f32 to vector<80x1xf32>
    %11 = arith.divf %9, %10 : vector<80x1xf32>
    %cst_4 = arith.constant 9.99999974E-6 : f32
    %12 = vector.broadcast %cst_4 : f32 to vector<80x1xf32>
    %13 = arith.addf %11, %12 : vector<80x1xf32>
    %14 = math.rsqrt %13 : vector<80x1xf32>
    %15 = vector.broadcast %14 : vector<80x1xf32> to vector<80x32xf32>
    %16 = arith.mulf %6, %15 : vector<80x32xf32>
    %c0_5 = arith.constant 0 : index
    %c0_6 = arith.constant 0 : index
    %17 = vector.load %arg2[%c0_5, %c0_6] : memref<1x32xf32, #tpu.memory_space<vmem>>, vector<1x32xf32>
    %18 = vector.broadcast %17 : vector<1x32xf32> to vector<80x32xf32>
    %19 = arith.mulf %16, %18 : vector<80x32xf32>
    %c0_7 = arith.constant 0 : index
    %c0_8 = arith.constant 0 : index
    %20 = vector.load %arg3[%c0_7, %c0_8] : memref<1x32xf32, #tpu.memory_space<vmem>>, vector<1x32xf32>
    %21 = vector.broadcast %20 : vector<1x32xf32> to vector<80x32xf32>
    %22 = arith.addf %19, %21 : vector<80x32xf32>
    %c0_9 = arith.constant 0 : index
    %c0_10 = arith.constant 0 : index
    %23 = vector.load %arg4[%c0_9, %c0_10] : memref<80x32xf32, #tpu.memory_space<vmem>>, vector<80x32xf32>
    tpu.vector_store %arg4[%c0_9, %c0_10], %22 {strides = array<i32>} : memref<80x32xf32, #tpu.memory_space<vmem>>, vector<80x32xf32>,
    return
  }
  func.func @transform_0(%arg0: i32) -> (i32, i32) {
    %c0_i32 = arith.constant 0 : i32
    %c0_i32_0 = arith.constant 0 : i32
    return %arg0, %c0_i32 : i32, i32
  }
  func.func @transform_1(%arg0: i32) -> (i32, i32) {
    %c0_i32 = arith.constant 0 : i32
    %c0_i32_0 = arith.constant 0 : i32
    %c0_i32_1 = arith.constant 0 : i32
    return %c0_i32, %c0_i32_0 : i32, i32
  }
  func.func @transform_2(%arg0: i32) -> (i32, i32) {
    %c0_i32 = arith.constant 0 : i32
    %c0_i32_0 = arith.constant 0 : i32
    %c0_i32_1 = arith.constant 0 : i32
    return %c0_i32, %c0_i32_0 : i32, i32
  }
  func.func @transform_3(%arg0: i32) -> (i32, i32) {
    %c0_i32 = arith.constant 0 : i32
    %c0_i32_0 = arith.constant 0 : i32
    return %arg0, %c0_i32 : i32, i32
  }
}

module attributes {stable_mosaic.version = 11 : i64} {
  func.func @_conv_kv_kernel(%arg0: i32, %arg1: memref<9x40x32xf32, #tpu.memory_space<vmem>>, %arg2: memref<9x1x32xf32, #tpu.memory_space<vmem>>, %arg3: memref<9x1x32xf32, #tpu.memory_space<vmem>>, %arg4: memref<32x32xf32, #tpu.memory_space<vmem>>, %arg5: memref<32x32xf32, #tpu.memory_space<vmem>>, %arg6: memref<1x32xf32, #tpu.memory_space<vmem>>, %arg7: memref<1x32xf32, #tpu.memory_space<vmem>>, %arg8: memref<40x32xf32, #tpu.memory_space<vmem>>, %arg9: memref<40x32xf32, #tpu.memory_space<vmem>>) attributes {dimension_semantics = [#tpu.dimension_semantics<parallel>], iteration_bounds = array<i64: 1>, scalar_prefetch = 0 : i64, scratch_operands = 0 : i64, tpu.core_type = #tpu.core_type<tc>, window_params = [{transform_indices = @transform_0, window_bounds = array<i64: 9, 40, 32>}, {pipeline_mode = #tpu.pipeline_mode<synchronous>, transform_indices = @transform_1, window_bounds = array<i64: 9, 1, 32>}, {pipeline_mode = #tpu.pipeline_mode<synchronous>, transform_indices = @transform_2, window_bounds = array<i64: 9, 1, 32>}, {pipeline_mode = #tpu.pipeline_mode<synchronous>, transform_indices = @transform_3, window_bounds = array<i64: 32, 32>}, {pipeline_mode = #tpu.pipeline_mode<synchronous>, transform_indices = @transform_4, window_bounds = array<i64: 32, 32>}, {pipeline_mode = #tpu.pipeline_mode<synchronous>, transform_indices = @transform_5, window_bounds = array<i64: 1, 32>}, {pipeline_mode = #tpu.pipeline_mode<synchronous>, transform_indices = @transform_6, window_bounds = array<i64: 1, 32>}, {transform_indices = @transform_7, window_bounds = array<i64: 40, 32>}, {transform_indices = @transform_8, window_bounds = array<i64: 40, 32>}]} {
    %c0 = arith.constant 0 : index
    %c0_0 = arith.constant 0 : index
    %c0_1 = arith.constant 0 : index
    %0 = vector.load %arg1[%c0, %c0_0, %c0_1] : memref<9x40x32xf32, #tpu.memory_space<vmem>>, vector<9x40x32xf32>
    %c0_2 = arith.constant 0 : index
    %c0_3 = arith.constant 0 : index
    %c0_4 = arith.constant 0 : index
    %1 = vector.load %arg2[%c0_2, %c0_3, %c0_4] : memref<9x1x32xf32, #tpu.memory_space<vmem>>, vector<9x1x32xf32>
    %2 = vector.broadcast %1 : vector<9x1x32xf32> to vector<9x40x32xf32>
    %3 = arith.mulf %0, %2 : vector<9x40x32xf32>
    %cst = arith.constant dense<0.000000e+00> : vector<40x32xf32>
    %4 = vector.multi_reduction <add>, %3, %cst [0] : vector<9x40x32xf32> to vector<40x32xf32>
    %c0_5 = arith.constant 0 : index
    %c0_6 = arith.constant 0 : index
    %c0_7 = arith.constant 0 : index
    %5 = vector.load %arg3[%c0_5, %c0_6, %c0_7] : memref<9x1x32xf32, #tpu.memory_space<vmem>>, vector<9x1x32xf32>
    %6 = vector.broadcast %5 : vector<9x1x32xf32> to vector<9x40x32xf32>
    %7 = arith.mulf %0, %6 : vector<9x40x32xf32>
    %cst_8 = arith.constant dense<0.000000e+00> : vector<40x32xf32>
    %8 = vector.multi_reduction <add>, %7, %cst_8 [0] : vector<9x40x32xf32> to vector<40x32xf32>
    %c0_9 = arith.constant 0 : index
    %c0_10 = arith.constant 0 : index
    %9 = vector.load %arg4[%c0_9, %c0_10] : memref<32x32xf32, #tpu.memory_space<vmem>>, vector<32x32xf32>
    %cst_11 = arith.constant dense<0.000000e+00> : vector<40x32xf32>
    %10 = tpu.matmul %4, %9, %cst_11 {dimension_numbers = #tpu.dot_dimension_numbers<[1], [0], [0], [1], [0, 0, 1, 1], [], []>} : vector<40x32xf32>, vector<32x32xf32>, vector<40x32xf32> -> vector<40x32xf32>
    %c0_12 = arith.constant 0 : index
    %c0_13 = arith.constant 0 : index
    %11 = vector.load %arg6[%c0_12, %c0_13] : memref<1x32xf32, #tpu.memory_space<vmem>>, vector<1x32xf32>
    %12 = vector.broadcast %11 : vector<1x32xf32> to vector<40x32xf32>
    %13 = arith.addf %10, %12 : vector<40x32xf32>
    %c0_14 = arith.constant 0 : index
    %c0_15 = arith.constant 0 : index
    %14 = vector.load %arg8[%c0_14, %c0_15] : memref<40x32xf32, #tpu.memory_space<vmem>>, vector<40x32xf32>
    tpu.vector_store %arg8[%c0_14, %c0_15], %13 {strides = array<i32>} : memref<40x32xf32, #tpu.memory_space<vmem>>, vector<40x32xf32>,
    %c0_16 = arith.constant 0 : index
    %c0_17 = arith.constant 0 : index
    %15 = vector.load %arg5[%c0_16, %c0_17] : memref<32x32xf32, #tpu.memory_space<vmem>>, vector<32x32xf32>
    %cst_18 = arith.constant dense<0.000000e+00> : vector<40x32xf32>
    %16 = tpu.matmul %8, %15, %cst_18 {dimension_numbers = #tpu.dot_dimension_numbers<[1], [0], [0], [1], [0, 0, 1, 1], [], []>} : vector<40x32xf32>, vector<32x32xf32>, vector<40x32xf32> -> vector<40x32xf32>
    %c0_19 = arith.constant 0 : index
    %c0_20 = arith.constant 0 : index
    %17 = vector.load %arg7[%c0_19, %c0_20] : memref<1x32xf32, #tpu.memory_space<vmem>>, vector<1x32xf32>
    %18 = vector.broadcast %17 : vector<1x32xf32> to vector<40x32xf32>
    %19 = arith.addf %16, %18 : vector<40x32xf32>
    %c0_21 = arith.constant 0 : index
    %c0_22 = arith.constant 0 : index
    %20 = vector.load %arg9[%c0_21, %c0_22] : memref<40x32xf32, #tpu.memory_space<vmem>>, vector<40x32xf32>
    tpu.vector_store %arg9[%c0_21, %c0_22], %19 {strides = array<i32>} : memref<40x32xf32, #tpu.memory_space<vmem>>, vector<40x32xf32>,
    return
  }
  func.func @transform_0(%arg0: i32) -> (i32, i32, i32) {
    %c0_i32 = arith.constant 0 : i32
    %c0_i32_0 = arith.constant 0 : i32
    %c0_i32_1 = arith.constant 0 : i32
    return %c0_i32, %arg0, %c0_i32_0 : i32, i32, i32
  }
  func.func @transform_1(%arg0: i32) -> (i32, i32, i32) {
    %c0_i32 = arith.constant 0 : i32
    %c0_i32_0 = arith.constant 0 : i32
    %c0_i32_1 = arith.constant 0 : i32
    %c0_i32_2 = arith.constant 0 : i32
    return %c0_i32, %c0_i32_0, %c0_i32_1 : i32, i32, i32
  }
  func.func @transform_2(%arg0: i32) -> (i32, i32, i32) {
    %c0_i32 = arith.constant 0 : i32
    %c0_i32_0 = arith.constant 0 : i32
    %c0_i32_1 = arith.constant 0 : i32
    %c0_i32_2 = arith.constant 0 : i32
    return %c0_i32, %c0_i32_0, %c0_i32_1 : i32, i32, i32
  }
  func.func @transform_3(%arg0: i32) -> (i32, i32) {
    %c0_i32 = arith.constant 0 : i32
    %c0_i32_0 = arith.constant 0 : i32
    %c0_i32_1 = arith.constant 0 : i32
    return %c0_i32, %c0_i32_0 : i32, i32
  }
  func.func @transform_4(%arg0: i32) -> (i32, i32) {
    %c0_i32 = arith.constant 0 : i32
    %c0_i32_0 = arith.constant 0 : i32
    %c0_i32_1 = arith.constant 0 : i32
    return %c0_i32, %c0_i32_0 : i32, i32
  }
  func.func @transform_5(%arg0: i32) -> (i32, i32) {
    %c0_i32 = arith.constant 0 : i32
    %c0_i32_0 = arith.constant 0 : i32
    %c0_i32_1 = arith.constant 0 : i32
    return %c0_i32, %c0_i32_0 : i32, i32
  }
  func.func @transform_6(%arg0: i32) -> (i32, i32) {
    %c0_i32 = arith.constant 0 : i32
    %c0_i32_0 = arith.constant 0 : i32
    %c0_i32_1 = arith.constant 0 : i32
    return %c0_i32, %c0_i32_0 : i32, i32
  }
  func.func @transform_7(%arg0: i32) -> (i32, i32) {
    %c0_i32 = arith.constant 0 : i32
    %c0_i32_0 = arith.constant 0 : i32
    return %arg0, %c0_i32 : i32, i32
  }
  func.func @transform_8(%arg0: i32) -> (i32, i32) {
    %c0_i32 = arith.constant 0 : i32
    %c0_i32_0 = arith.constant 0 : i32
    return %arg0, %c0_i32 : i32, i32
  }
}

module attributes {stable_mosaic.version = 11 : i64} {
  func.func @_conv_q_kernel(%arg0: i32, %arg1: memref<9x80x32xf32, #tpu.memory_space<vmem>>, %arg2: memref<9x1x32xf32, #tpu.memory_space<vmem>>, %arg3: memref<32x32xf32, #tpu.memory_space<vmem>>, %arg4: memref<1x32xf32, #tpu.memory_space<vmem>>, %arg5: memref<80x32xf32, #tpu.memory_space<vmem>>) attributes {dimension_semantics = [#tpu.dimension_semantics<parallel>], iteration_bounds = array<i64: 2>, scalar_prefetch = 0 : i64, scratch_operands = 0 : i64, tpu.core_type = #tpu.core_type<tc>, window_params = [{transform_indices = @transform_0, window_bounds = array<i64: 9, 80, 32>}, {pipeline_mode = #tpu.pipeline_mode<synchronous>, transform_indices = @transform_1, window_bounds = array<i64: 9, 1, 32>}, {pipeline_mode = #tpu.pipeline_mode<synchronous>, transform_indices = @transform_2, window_bounds = array<i64: 32, 32>}, {pipeline_mode = #tpu.pipeline_mode<synchronous>, transform_indices = @transform_3, window_bounds = array<i64: 1, 32>}, {transform_indices = @transform_4, window_bounds = array<i64: 80, 32>}]} {
    %c0 = arith.constant 0 : index
    %c0_0 = arith.constant 0 : index
    %c0_1 = arith.constant 0 : index
    %0 = vector.load %arg1[%c0, %c0_0, %c0_1] : memref<9x80x32xf32, #tpu.memory_space<vmem>>, vector<9x80x32xf32>
    %c0_2 = arith.constant 0 : index
    %c0_3 = arith.constant 0 : index
    %c0_4 = arith.constant 0 : index
    %1 = vector.load %arg2[%c0_2, %c0_3, %c0_4] : memref<9x1x32xf32, #tpu.memory_space<vmem>>, vector<9x1x32xf32>
    %2 = vector.broadcast %1 : vector<9x1x32xf32> to vector<9x80x32xf32>
    %3 = arith.mulf %0, %2 : vector<9x80x32xf32>
    %cst = arith.constant dense<0.000000e+00> : vector<80x32xf32>
    %4 = vector.multi_reduction <add>, %3, %cst [0] : vector<9x80x32xf32> to vector<80x32xf32>
    %c0_5 = arith.constant 0 : index
    %c0_6 = arith.constant 0 : index
    %5 = vector.load %arg3[%c0_5, %c0_6] : memref<32x32xf32, #tpu.memory_space<vmem>>, vector<32x32xf32>
    %cst_7 = arith.constant dense<0.000000e+00> : vector<80x32xf32>
    %6 = tpu.matmul %4, %5, %cst_7 {dimension_numbers = #tpu.dot_dimension_numbers<[1], [0], [0], [1], [0, 0, 1, 1], [], []>} : vector<80x32xf32>, vector<32x32xf32>, vector<80x32xf32> -> vector<80x32xf32>
    %c0_8 = arith.constant 0 : index
    %c0_9 = arith.constant 0 : index
    %7 = vector.load %arg4[%c0_8, %c0_9] : memref<1x32xf32, #tpu.memory_space<vmem>>, vector<1x32xf32>
    %8 = vector.broadcast %7 : vector<1x32xf32> to vector<80x32xf32>
    %9 = arith.addf %6, %8 : vector<80x32xf32>
    %c0_10 = arith.constant 0 : index
    %c0_11 = arith.constant 0 : index
    %10 = vector.load %arg5[%c0_10, %c0_11] : memref<80x32xf32, #tpu.memory_space<vmem>>, vector<80x32xf32>
    tpu.vector_store %arg5[%c0_10, %c0_11], %9 {strides = array<i32>} : memref<80x32xf32, #tpu.memory_space<vmem>>, vector<80x32xf32>,
    return
  }
  func.func @transform_0(%arg0: i32) -> (i32, i32, i32) {
    %c0_i32 = arith.constant 0 : i32
    %c0_i32_0 = arith.constant 0 : i32
    %c0_i32_1 = arith.constant 0 : i32
    return %c0_i32, %arg0, %c0_i32_0 : i32, i32, i32
  }
  func.func @transform_1(%arg0: i32) -> (i32, i32, i32) {
    %c0_i32 = arith.constant 0 : i32
    %c0_i32_0 = arith.constant 0 : i32
    %c0_i32_1 = arith.constant 0 : i32
    %c0_i32_2 = arith.constant 0 : i32
    return %c0_i32, %c0_i32_0, %c0_i32_1 : i32, i32, i32
  }
  func.func @transform_2(%arg0: i32) -> (i32, i32) {
    %c0_i32 = arith.constant 0 : i32
    %c0_i32_0 = arith.constant 0 : i32
    %c0_i32_1 = arith.constant 0 : i32
    return %c0_i32, %c0_i32_0 : i32, i32
  }
  func.func @transform_3(%arg0: i32) -> (i32, i32) {
    %c0_i32 = arith.constant 0 : i32
    %c0_i32_0 = arith.constant 0 : i32
    %c0_i32_1 = arith.constant 0 : i32
    return %c0_i32, %c0_i32_0 : i32, i32
  }
  func.func @transform_4(%arg0: i32) -> (i32, i32) {
    %c0_i32 = arith.constant 0 : i32
    %c0_i32_0 = arith.constant 0 : i32
    return %arg0, %c0_i32 : i32, i32
  }
}

module attributes {stable_mosaic.version = 11 : i64} {
  func.func @_attn_proj_kernel(%arg0: i32, %arg1: memref<1x80x32xf32, #tpu.memory_space<vmem>>, %arg2: memref<1x20x32xf32, #tpu.memory_space<vmem>>, %arg3: memref<1x20x32xf32, #tpu.memory_space<vmem>>, %arg4: memref<1x80x32xf32, #tpu.memory_space<vmem>>, %arg5: memref<32x32xf32, #tpu.memory_space<vmem>>, %arg6: memref<1x32xf32, #tpu.memory_space<vmem>>, %arg7: memref<1x80x32xf32, #tpu.memory_space<vmem>>) attributes {dimension_semantics = [#tpu.dimension_semantics<parallel>], iteration_bounds = array<i64: 2>, scalar_prefetch = 0 : i64, scratch_operands = 0 : i64, tpu.core_type = #tpu.core_type<tc>, window_params = [{transform_indices = @transform_0, window_bounds = array<i64: 1, 80, 32>}, {transform_indices = @transform_1, window_bounds = array<i64: 1, 20, 32>}, {transform_indices = @transform_2, window_bounds = array<i64: 1, 20, 32>}, {transform_indices = @transform_3, window_bounds = array<i64: 1, 80, 32>}, {pipeline_mode = #tpu.pipeline_mode<synchronous>, transform_indices = @transform_4, window_bounds = array<i64: 32, 32>}, {pipeline_mode = #tpu.pipeline_mode<synchronous>, transform_indices = @transform_5, window_bounds = array<i64: 1, 32>}, {transform_indices = @transform_6, window_bounds = array<i64: 1, 80, 32>}]} {
    %c0 = arith.constant 0 : index
    %c0_0 = arith.constant 0 : index
    %c0_1 = arith.constant 0 : index
    %0 = vector.load %arg1[%c0, %c0_0, %c0_1] : memref<1x80x32xf32, #tpu.memory_space<vmem>>, vector<1x80x32xf32>
    %1 = vector.shape_cast %0 : vector<1x80x32xf32> to vector<80x32xf32>
    %c0_2 = arith.constant 0 : index
    %c0_3 = arith.constant 0 : index
    %c0_4 = arith.constant 0 : index
    %2 = vector.load %arg2[%c0_2, %c0_3, %c0_4] : memref<1x20x32xf32, #tpu.memory_space<vmem>>, vector<1x20x32xf32>
    %3 = vector.shape_cast %2 : vector<1x20x32xf32> to vector<20x32xf32>
    %c0_5 = arith.constant 0 : index
    %c0_6 = arith.constant 0 : index
    %c0_7 = arith.constant 0 : index
    %4 = vector.load %arg3[%c0_5, %c0_6, %c0_7] : memref<1x20x32xf32, #tpu.memory_space<vmem>>, vector<1x20x32xf32>
    %5 = vector.shape_cast %4 : vector<1x20x32xf32> to vector<20x32xf32>
    %c0_8 = arith.constant 0 : index
    %c0_9 = arith.constant 0 : index
    %6 = vector.load %arg5[%c0_8, %c0_9] : memref<32x32xf32, #tpu.memory_space<vmem>>, vector<32x32xf32>
    %c0_10 = arith.constant 0 : index
    %c0_11 = arith.constant 0 : index
    %c0_12 = arith.constant 0 : index
    %7 = vector.load %arg4[%c0_10, %c0_11, %c0_12] : memref<1x80x32xf32, #tpu.memory_space<vmem>>, vector<1x80x32xf32>
    %8 = vector.shape_cast %7 : vector<1x80x32xf32> to vector<80x32xf32>
    %c0_13 = arith.constant 0 : index
    %c0_14 = arith.constant 0 : index
    %9 = vector.load %arg6[%c0_13, %c0_14] : memref<1x32xf32, #tpu.memory_space<vmem>>, vector<1x32xf32>
    %10 = vector.broadcast %9 : vector<1x32xf32> to vector<80x32xf32>
    %11 = arith.addf %8, %10 : vector<80x32xf32>
    %12 = vector.extract_strided_slice %1 {offsets = [0, 0], sizes = [80, 16], strides = [1, 1]} : vector<80x32xf32> to vector<80x16xf32>
    %13 = vector.extract_strided_slice %3 {offsets = [0, 0], sizes = [20, 16], strides = [1, 1]} : vector<20x32xf32> to vector<20x16xf32>
    %14 = vector.extract_strided_slice %5 {offsets = [0, 0], sizes = [20, 16], strides = [1, 1]} : vector<20x32xf32> to vector<20x16xf32>
    %15 = vector.extract_strided_slice %12 {offsets = [0, 0], sizes = [16, 16], strides = [1, 1]} : vector<80x16xf32> to vector<16x16xf32>
    %16 = vector.extract_strided_slice %13 {offsets = [0, 0], sizes = [4, 16], strides = [1, 1]} : vector<20x16xf32> to vector<4x16xf32>
    %17 = vector.extract_strided_slice %14 {offsets = [0, 0], sizes = [4, 16], strides = [1, 1]} : vector<20x16xf32> to vector<4x16xf32>
    %cst = arith.constant dense<0.000000e+00> : vector<16x4xf32>
    %18 = tpu.matmul %15, %16, %cst {dimension_numbers = #tpu.dot_dimension_numbers<[1], [1], [0], [0], [0, 0, 1, 0], [], []>} : vector<16x16xf32>, vector<4x16xf32>, vector<16x4xf32> -> vector<16x4xf32>
    %cst_15 = arith.constant dense<0xFF800000> : vector<16xf32>
    %19 = vector.multi_reduction <maximumf>, %18, %cst_15 [1] : vector<16x4xf32> to vector<16xf32>
    %20 = vector.shape_cast %19 : vector<16xf32> to vector<16x1xf32>
    %21 = vector.broadcast %20 : vector<16x1xf32> to vector<16x4xf32>
    %22 = arith.subf %18, %21 : vector<16x4xf32>
    %23 = math.exp %22 : vector<16x4xf32>
    %cst_16 = arith.constant dense<0.000000e+00> : vector<16xf32>
    %24 = vector.multi_reduction <add>, %23, %cst_16 [1] : vector<16x4xf32> to vector<16xf32>
    %25 = vector.shape_cast %24 : vector<16xf32> to vector<16x1xf32>
    %26 = vector.broadcast %25 : vector<16x1xf32> to vector<16x4xf32>
    %27 = arith.divf %23, %26 : vector<16x4xf32>
    %cst_17 = arith.constant dense<0.000000e+00> : vector<16x16xf32>
    %28 = tpu.matmul %27, %17, %cst_17 {dimension_numbers = #tpu.dot_dimension_numbers<[1], [0], [0], [1], [0, 0, 1, 1], [], []>} : vector<16x4xf32>, vector<4x16xf32>, vector<16x16xf32> -> vector<16x16xf32>
    %29 = vector.extract_strided_slice %12 {offsets = [16, 0], sizes = [64, 16], strides = [1, 1]} : vector<80x16xf32> to vector<64x16xf32>
    %cst_18 = arith.constant dense<0.000000e+00> : vector<64x20xf32>
    %30 = tpu.matmul %29, %13, %cst_18 {dimension_numbers = #tpu.dot_dimension_numbers<[1], [1], [0], [0], [0, 0, 1, 0], [], []>} : vector<64x16xf32>, vector<20x16xf32>, vector<64x20xf32> -> vector<64x20xf32>
    %cst_19 = arith.constant dense<0xFF800000> : vector<64xf32>
    %31 = vector.multi_reduction <maximumf>, %30, %cst_19 [1] : vector<64x20xf32> to vector<64xf32>
    %32 = vector.shape_cast %31 : vector<64xf32> to vector<64x1xf32>
    %33 = vector.broadcast %32 : vector<64x1xf32> to vector<64x20xf32>
    %34 = arith.subf %30, %33 : vector<64x20xf32>
    %35 = math.exp %34 : vector<64x20xf32>
    %cst_20 = arith.constant dense<0.000000e+00> : vector<64xf32>
    %36 = vector.multi_reduction <add>, %35, %cst_20 [1] : vector<64x20xf32> to vector<64xf32>
    %37 = vector.shape_cast %36 : vector<64xf32> to vector<64x1xf32>
    %38 = vector.broadcast %37 : vector<64x1xf32> to vector<64x20xf32>
    %39 = arith.divf %35, %38 : vector<64x20xf32>
    %cst_21 = arith.constant dense<0.000000e+00> : vector<64x16xf32>
    %40 = tpu.matmul %39, %14, %cst_21 {dimension_numbers = #tpu.dot_dimension_numbers<[1], [0], [0], [1], [0, 0, 1, 1], [], []>} : vector<64x20xf32>, vector<20x16xf32>, vector<64x16xf32> -> vector<64x16xf32>
    %41 = tpu.concatenate %28, %40 in 0 : vector<16x16xf32>, vector<64x16xf32> -> vector<80x16xf32>
    %42 = vector.extract_strided_slice %6 {offsets = [0, 0], sizes = [16, 32], strides = [1, 1]} : vector<32x32xf32> to vector<16x32xf32>
    %cst_22 = arith.constant dense<0.000000e+00> : vector<80x32xf32>
    %43 = tpu.matmul %41, %42, %cst_22 {dimension_numbers = #tpu.dot_dimension_numbers<[1], [0], [0], [1], [0, 0, 1, 1], [], []>} : vector<80x16xf32>, vector<16x32xf32>, vector<80x32xf32> -> vector<80x32xf32>
    %44 = arith.addf %11, %43 : vector<80x32xf32>
    %45 = vector.extract_strided_slice %1 {offsets = [0, 16], sizes = [80, 16], strides = [1, 1]} : vector<80x32xf32> to vector<80x16xf32>
    %46 = vector.extract_strided_slice %3 {offsets = [0, 16], sizes = [20, 16], strides = [1, 1]} : vector<20x32xf32> to vector<20x16xf32>
    %47 = vector.extract_strided_slice %5 {offsets = [0, 16], sizes = [20, 16], strides = [1, 1]} : vector<20x32xf32> to vector<20x16xf32>
    %48 = vector.extract_strided_slice %45 {offsets = [0, 0], sizes = [16, 16], strides = [1, 1]} : vector<80x16xf32> to vector<16x16xf32>
    %49 = vector.extract_strided_slice %46 {offsets = [0, 0], sizes = [4, 16], strides = [1, 1]} : vector<20x16xf32> to vector<4x16xf32>
    %50 = vector.extract_strided_slice %47 {offsets = [0, 0], sizes = [4, 16], strides = [1, 1]} : vector<20x16xf32> to vector<4x16xf32>
    %cst_23 = arith.constant dense<0.000000e+00> : vector<16x4xf32>
    %51 = tpu.matmul %48, %49, %cst_23 {dimension_numbers = #tpu.dot_dimension_numbers<[1], [1], [0], [0], [0, 0, 1, 0], [], []>} : vector<16x16xf32>, vector<4x16xf32>, vector<16x4xf32> -> vector<16x4xf32>
    %cst_24 = arith.constant dense<0xFF800000> : vector<16xf32>
    %52 = vector.multi_reduction <maximumf>, %51, %cst_24 [1] : vector<16x4xf32> to vector<16xf32>
    %53 = vector.shape_cast %52 : vector<16xf32> to vector<16x1xf32>
    %54 = vector.broadcast %53 : vector<16x1xf32> to vector<16x4xf32>
    %55 = arith.subf %51, %54 : vector<16x4xf32>
    %56 = math.exp %55 : vector<16x4xf32>
    %cst_25 = arith.constant dense<0.000000e+00> : vector<16xf32>
    %57 = vector.multi_reduction <add>, %56, %cst_25 [1] : vector<16x4xf32> to vector<16xf32>
    %58 = vector.shape_cast %57 : vector<16xf32> to vector<16x1xf32>
    %59 = vector.broadcast %58 : vector<16x1xf32> to vector<16x4xf32>
    %60 = arith.divf %56, %59 : vector<16x4xf32>
    %cst_26 = arith.constant dense<0.000000e+00> : vector<16x16xf32>
    %61 = tpu.matmul %60, %50, %cst_26 {dimension_numbers = #tpu.dot_dimension_numbers<[1], [0], [0], [1], [0, 0, 1, 1], [], []>} : vector<16x4xf32>, vector<4x16xf32>, vector<16x16xf32> -> vector<16x16xf32>
    %62 = vector.extract_strided_slice %45 {offsets = [16, 0], sizes = [64, 16], strides = [1, 1]} : vector<80x16xf32> to vector<64x16xf32>
    %cst_27 = arith.constant dense<0.000000e+00> : vector<64x20xf32>
    %63 = tpu.matmul %62, %46, %cst_27 {dimension_numbers = #tpu.dot_dimension_numbers<[1], [1], [0], [0], [0, 0, 1, 0], [], []>} : vector<64x16xf32>, vector<20x16xf32>, vector<64x20xf32> -> vector<64x20xf32>
    %cst_28 = arith.constant dense<0xFF800000> : vector<64xf32>
    %64 = vector.multi_reduction <maximumf>, %63, %cst_28 [1] : vector<64x20xf32> to vector<64xf32>
    %65 = vector.shape_cast %64 : vector<64xf32> to vector<64x1xf32>
    %66 = vector.broadcast %65 : vector<64x1xf32> to vector<64x20xf32>
    %67 = arith.subf %63, %66 : vector<64x20xf32>
    %68 = math.exp %67 : vector<64x20xf32>
    %cst_29 = arith.constant dense<0.000000e+00> : vector<64xf32>
    %69 = vector.multi_reduction <add>, %68, %cst_29 [1] : vector<64x20xf32> to vector<64xf32>
    %70 = vector.shape_cast %69 : vector<64xf32> to vector<64x1xf32>
    %71 = vector.broadcast %70 : vector<64x1xf32> to vector<64x20xf32>
    %72 = arith.divf %68, %71 : vector<64x20xf32>
    %cst_30 = arith.constant dense<0.000000e+00> : vector<64x16xf32>
    %73 = tpu.matmul %72, %47, %cst_30 {dimension_numbers = #tpu.dot_dimension_numbers<[1], [0], [0], [1], [0, 0, 1, 1], [], []>} : vector<64x20xf32>, vector<20x16xf32>, vector<64x16xf32> -> vector<64x16xf32>
    %74 = tpu.concatenate %61, %73 in 0 : vector<16x16xf32>, vector<64x16xf32> -> vector<80x16xf32>
    %75 = vector.extract_strided_slice %6 {offsets = [16, 0], sizes = [16, 32], strides = [1, 1]} : vector<32x32xf32> to vector<16x32xf32>
    %cst_31 = arith.constant dense<0.000000e+00> : vector<80x32xf32>
    %76 = tpu.matmul %74, %75, %cst_31 {dimension_numbers = #tpu.dot_dimension_numbers<[1], [0], [0], [1], [0, 0, 1, 1], [], []>} : vector<80x16xf32>, vector<16x32xf32>, vector<80x32xf32> -> vector<80x32xf32>
    %77 = arith.addf %44, %76 : vector<80x32xf32>
    %c0_32 = arith.constant 0 : index
    %c0_33 = arith.constant 0 : index
    %c0_34 = arith.constant 0 : index
    %78 = vector.load %arg7[%c0_32, %c0_33, %c0_34] : memref<1x80x32xf32, #tpu.memory_space<vmem>>, vector<1x80x32xf32>
    %79 = vector.shape_cast %78 : vector<1x80x32xf32> to vector<80x32xf32>
    %80 = vector.shape_cast %77 : vector<80x32xf32> to vector<1x80x32xf32>
    tpu.vector_store %arg7[%c0_32, %c0_33, %c0_34], %80 {strides = array<i32>} : memref<1x80x32xf32, #tpu.memory_space<vmem>>, vector<1x80x32xf32>,
    return
  }
  func.func @transform_0(%arg0: i32) -> (i32, i32, i32) {
    %c0_i32 = arith.constant 0 : i32
    %c0_i32_0 = arith.constant 0 : i32
    %c0_i32_1 = arith.constant 0 : i32
    return %arg0, %c0_i32, %c0_i32_0 : i32, i32, i32
  }
  func.func @transform_1(%arg0: i32) -> (i32, i32, i32) {
    %c0_i32 = arith.constant 0 : i32
    %c0_i32_0 = arith.constant 0 : i32
    %c0_i32_1 = arith.constant 0 : i32
    return %arg0, %c0_i32, %c0_i32_0 : i32, i32, i32
  }
  func.func @transform_2(%arg0: i32) -> (i32, i32, i32) {
    %c0_i32 = arith.constant 0 : i32
    %c0_i32_0 = arith.constant 0 : i32
    %c0_i32_1 = arith.constant 0 : i32
    return %arg0, %c0_i32, %c0_i32_0 : i32, i32, i32
  }
  func.func @transform_3(%arg0: i32) -> (i32, i32, i32) {
    %c0_i32 = arith.constant 0 : i32
    %c0_i32_0 = arith.constant 0 : i32
    %c0_i32_1 = arith.constant 0 : i32
    return %arg0, %c0_i32, %c0_i32_0 : i32, i32, i32
  }
  func.func @transform_4(%arg0: i32) -> (i32, i32) {
    %c0_i32 = arith.constant 0 : i32
    %c0_i32_0 = arith.constant 0 : i32
    %c0_i32_1 = arith.constant 0 : i32
    return %c0_i32, %c0_i32_0 : i32, i32
  }
  func.func @transform_5(%arg0: i32) -> (i32, i32) {
    %c0_i32 = arith.constant 0 : i32
    %c0_i32_0 = arith.constant 0 : i32
    %c0_i32_1 = arith.constant 0 : i32
    return %c0_i32, %c0_i32_0 : i32, i32
  }
  func.func @transform_6(%arg0: i32) -> (i32, i32, i32) {
    %c0_i32 = arith.constant 0 : i32
    %c0_i32_0 = arith.constant 0 : i32
    %c0_i32_1 = arith.constant 0 : i32
    return %arg0, %c0_i32, %c0_i32_0 : i32, i32, i32
  }
}

module attributes {stable_mosaic.version = 11 : i64} {
  func.func @_mlp_kernel(%arg0: i32, %arg1: memref<80x32xf32, #tpu.memory_space<vmem>>, %arg2: memref<1x32xf32, #tpu.memory_space<vmem>>, %arg3: memref<1x32xf32, #tpu.memory_space<vmem>>, %arg4: memref<32x128xf32, #tpu.memory_space<vmem>>, %arg5: memref<1x128xf32, #tpu.memory_space<vmem>>, %arg6: memref<128x32xf32, #tpu.memory_space<vmem>>, %arg7: memref<1x32xf32, #tpu.memory_space<vmem>>, %arg8: memref<80x32xf32, #tpu.memory_space<vmem>>) attributes {dimension_semantics = [#tpu.dimension_semantics<parallel>], iteration_bounds = array<i64: 2>, scalar_prefetch = 0 : i64, scratch_operands = 0 : i64, tpu.core_type = #tpu.core_type<tc>, window_params = [{transform_indices = @transform_0, window_bounds = array<i64: 80, 32>}, {pipeline_mode = #tpu.pipeline_mode<synchronous>, transform_indices = @transform_1, window_bounds = array<i64: 1, 32>}, {pipeline_mode = #tpu.pipeline_mode<synchronous>, transform_indices = @transform_2, window_bounds = array<i64: 1, 32>}, {pipeline_mode = #tpu.pipeline_mode<synchronous>, transform_indices = @transform_3, window_bounds = array<i64: 32, 128>}, {pipeline_mode = #tpu.pipeline_mode<synchronous>, transform_indices = @transform_4, window_bounds = array<i64: 1, 128>}, {pipeline_mode = #tpu.pipeline_mode<synchronous>, transform_indices = @transform_5, window_bounds = array<i64: 128, 32>}, {pipeline_mode = #tpu.pipeline_mode<synchronous>, transform_indices = @transform_6, window_bounds = array<i64: 1, 32>}, {transform_indices = @transform_7, window_bounds = array<i64: 80, 32>}]} {
    %c0 = arith.constant 0 : index
    %c0_0 = arith.constant 0 : index
    %0 = vector.load %arg1[%c0, %c0_0] : memref<80x32xf32, #tpu.memory_space<vmem>>, vector<80x32xf32>
    %cst = arith.constant dense<0.000000e+00> : vector<80xf32>
    %1 = vector.multi_reduction <add>, %0, %cst [1] : vector<80x32xf32> to vector<80xf32>
    %2 = vector.shape_cast %1 : vector<80xf32> to vector<80x1xf32>
    %cst_1 = arith.constant 3.200000e+01 : f32
    %3 = vector.broadcast %cst_1 : f32 to vector<80x1xf32>
    %4 = arith.divf %2, %3 : vector<80x1xf32>
    %5 = vector.broadcast %4 : vector<80x1xf32> to vector<80x32xf32>
    %6 = arith.subf %0, %5 : vector<80x32xf32>
    %7 = arith.mulf %6, %6 : vector<80x32xf32>
    %cst_2 = arith.constant dense<0.000000e+00> : vector<80xf32>
    %8 = vector.multi_reduction <add>, %7, %cst_2 [1] : vector<80x32xf32> to vector<80xf32>
    %9 = vector.shape_cast %8 : vector<80xf32> to vector<80x1xf32>
    %cst_3 = arith.constant 3.200000e+01 : f32
    %10 = vector.broadcast %cst_3 : f32 to vector<80x1xf32>
    %11 = arith.divf %9, %10 : vector<80x1xf32>
    %cst_4 = arith.constant 9.99999974E-6 : f32
    %12 = vector.broadcast %cst_4 : f32 to vector<80x1xf32>
    %13 = arith.addf %11, %12 : vector<80x1xf32>
    %14 = math.rsqrt %13 : vector<80x1xf32>
    %15 = vector.broadcast %14 : vector<80x1xf32> to vector<80x32xf32>
    %16 = arith.mulf %6, %15 : vector<80x32xf32>
    %c0_5 = arith.constant 0 : index
    %c0_6 = arith.constant 0 : index
    %17 = vector.load %arg2[%c0_5, %c0_6] : memref<1x32xf32, #tpu.memory_space<vmem>>, vector<1x32xf32>
    %18 = vector.broadcast %17 : vector<1x32xf32> to vector<80x32xf32>
    %19 = arith.mulf %16, %18 : vector<80x32xf32>
    %c0_7 = arith.constant 0 : index
    %c0_8 = arith.constant 0 : index
    %20 = vector.load %arg3[%c0_7, %c0_8] : memref<1x32xf32, #tpu.memory_space<vmem>>, vector<1x32xf32>
    %21 = vector.broadcast %20 : vector<1x32xf32> to vector<80x32xf32>
    %22 = arith.addf %19, %21 : vector<80x32xf32>
    %c0_9 = arith.constant 0 : index
    %c0_10 = arith.constant 0 : index
    %23 = vector.load %arg4[%c0_9, %c0_10] : memref<32x128xf32, #tpu.memory_space<vmem>>, vector<32x128xf32>
    %cst_11 = arith.constant dense<0.000000e+00> : vector<80x128xf32>
    %24 = tpu.matmul %22, %23, %cst_11 {dimension_numbers = #tpu.dot_dimension_numbers<[1], [0], [0], [1], [0, 0, 1, 1], [], []>} : vector<80x32xf32>, vector<32x128xf32>, vector<80x128xf32> -> vector<80x128xf32>
    %c0_12 = arith.constant 0 : index
    %c0_13 = arith.constant 0 : index
    %25 = vector.load %arg5[%c0_12, %c0_13] : memref<1x128xf32, #tpu.memory_space<vmem>>, vector<1x128xf32>
    %26 = vector.broadcast %25 : vector<1x128xf32> to vector<80x128xf32>
    %27 = arith.addf %24, %26 : vector<80x128xf32>
    %cst_14 = arith.constant 5.000000e-01 : f32
    %28 = vector.broadcast %cst_14 : f32 to vector<80x128xf32>
    %29 = arith.mulf %28, %27 : vector<80x128xf32>
    %cst_15 = arith.constant 4.471500e-02 : f32
    %30 = vector.broadcast %cst_15 : f32 to vector<80x128xf32>
    %31 = arith.mulf %30, %27 : vector<80x128xf32>
    %32 = arith.mulf %31, %27 : vector<80x128xf32>
    %33 = arith.mulf %32, %27 : vector<80x128xf32>
    %34 = arith.addf %27, %33 : vector<80x128xf32>
    %cst_16 = arith.constant 0.797884583 : f32
    %35 = vector.broadcast %cst_16 : f32 to vector<80x128xf32>
    %36 = arith.mulf %35, %34 : vector<80x128xf32>
    %37 = math.tanh %36 : vector<80x128xf32>
    %cst_17 = arith.constant 1.000000e+00 : f32
    %38 = vector.broadcast %cst_17 : f32 to vector<80x128xf32>
    %39 = arith.addf %38, %37 : vector<80x128xf32>
    %40 = arith.mulf %29, %39 : vector<80x128xf32>
    %c0_18 = arith.constant 0 : index
    %c0_19 = arith.constant 0 : index
    %41 = vector.load %arg6[%c0_18, %c0_19] : memref<128x32xf32, #tpu.memory_space<vmem>>, vector<128x32xf32>
    %cst_20 = arith.constant dense<0.000000e+00> : vector<80x32xf32>
    %42 = tpu.matmul %40, %41, %cst_20 {dimension_numbers = #tpu.dot_dimension_numbers<[1], [0], [0], [1], [0, 0, 1, 1], [], []>} : vector<80x128xf32>, vector<128x32xf32>, vector<80x32xf32> -> vector<80x32xf32>
    %c0_21 = arith.constant 0 : index
    %c0_22 = arith.constant 0 : index
    %43 = vector.load %arg7[%c0_21, %c0_22] : memref<1x32xf32, #tpu.memory_space<vmem>>, vector<1x32xf32>
    %44 = vector.broadcast %43 : vector<1x32xf32> to vector<80x32xf32>
    %45 = arith.addf %42, %44 : vector<80x32xf32>
    %46 = arith.addf %45, %0 : vector<80x32xf32>
    %c0_23 = arith.constant 0 : index
    %c0_24 = arith.constant 0 : index
    %47 = vector.load %arg8[%c0_23, %c0_24] : memref<80x32xf32, #tpu.memory_space<vmem>>, vector<80x32xf32>
    tpu.vector_store %arg8[%c0_23, %c0_24], %46 {strides = array<i32>} : memref<80x32xf32, #tpu.memory_space<vmem>>, vector<80x32xf32>,
    return
  }
  func.func @transform_0(%arg0: i32) -> (i32, i32) {
    %c0_i32 = arith.constant 0 : i32
    %c0_i32_0 = arith.constant 0 : i32
    return %arg0, %c0_i32 : i32, i32
  }
  func.func @transform_1(%arg0: i32) -> (i32, i32) {
    %c0_i32 = arith.constant 0 : i32
    %c0_i32_0 = arith.constant 0 : i32
    %c0_i32_1 = arith.constant 0 : i32
    return %c0_i32, %c0_i32_0 : i32, i32
  }
  func.func @transform_2(%arg0: i32) -> (i32, i32) {
    %c0_i32 = arith.constant 0 : i32
    %c0_i32_0 = arith.constant 0 : i32
    %c0_i32_1 = arith.constant 0 : i32
    return %c0_i32, %c0_i32_0 : i32, i32
  }
  func.func @transform_3(%arg0: i32) -> (i32, i32) {
    %c0_i32 = arith.constant 0 : i32
    %c0_i32_0 = arith.constant 0 : i32
    %c0_i32_1 = arith.constant 0 : i32
    return %c0_i32, %c0_i32_0 : i32, i32
  }
  func.func @transform_4(%arg0: i32) -> (i32, i32) {
    %c0_i32 = arith.constant 0 : i32
    %c0_i32_0 = arith.constant 0 : i32
    %c0_i32_1 = arith.constant 0 : i32
    return %c0_i32, %c0_i32_0 : i32, i32
  }
  func.func @transform_5(%arg0: i32) -> (i32, i32) {
    %c0_i32 = arith.constant 0 : i32
    %c0_i32_0 = arith.constant 0 : i32
    %c0_i32_1 = arith.constant 0 : i32
    return %c0_i32, %c0_i32_0 : i32, i32
  }
  func.func @transform_6(%arg0: i32) -> (i32, i32) {
    %c0_i32 = arith.constant 0 : i32
    %c0_i32_0 = arith.constant 0 : i32
    %c0_i32_1 = arith.constant 0 : i32
    return %c0_i32, %c0_i32_0 : i32, i32
  }
  func.func @transform_7(%arg0: i32) -> (i32, i32) {
    %c0_i32 = arith.constant 0 : i32
    %c0_i32_0 = arith.constant 0 : i32
    return %arg0, %c0_i32 : i32, i32
  }
}

</mosaic_0001>

<bundles_post_ra>
// kernel: block_forward.5
= control target key start
LH: loop header
LB: loop body
LE: loop exit
PB: predicated region body
PF: predicated region fallthrough
CT: control target
= control target key end

     0   :  { %s577_s12 = smov 0   ;;  %s820_s0 = inlined_call_operand.vmem [shape: f32[160,32], index: 0, kind: input, shape index: {}]   ;;  %s821_s1 = inlined_call_operand.vmem [shape: f32[1,32], index: 1, kind: input, shape index: {}]   ;;  %s822_s2 = inlined_call_operand.vmem [shape: f32[1,32], index: 2, kind: input, shape index: {}]   ;;  %s823_s3 = inlined_call_operand.vmem [shape: f32[160,32], index: 3, kind: output, shape index: {}]  }
   0x1 LB: > { %s506_s13 = sadd.s32 4294967295, %s554_s12   ;;  %p510_p0 = scmp.ge.s32.totalorder %s554_s12, 1  ;;  %s554_s12 = sphi %s577_s12, %s13_s12  }
   0x2   : > { %p138_p1 = scmp.lt.s32.totalorder %s554_s12, 3 }
   0x4   : > { %p139_p2 = pnand %p510_p0, %p138_p1 }
   0x5   : > { %s162_s14 = smul.u32 (!%p139_p2), 10, %s506_s13 }
   0x6   : > { %142 = sbr.rel (%p139_p2) target bundleno = 311 (0x137), region = 32 }
   0x7   : > { %p163_p3 = scmp.lt.s32.totalorder (!%p139_p2), %s162_s14, 19 }
   0xb   : > { %s825_s14 = smov (!%p163_p3, %s162_s14), 19  ;;  %vm184_vm0 = vcmask 261120   ;;  %v556_v20 = vmov 32.0  }
   0xc   : > { %s511_s15 = sshll.u32 %s825_s14, 3  ;;  %526 = vrcp.f32 %v556_v20 }
   0xd   : > { %s166_s18 = scalar_lea.vmem %s820_s0, %s511_s15  ;;  %s738_s25 = scalar_lea.vmem %s823_s3, %s511_s15 }
   0xe   : > { %v593_v0 = vld [vmem:[%s166_s18 + $0x20] sm:$0xff]  ;;  %v176_v1 = vld [vmem:[%s166_s18 + $0x10] sm:$0xff]  ;;  %v179_v6 = vld [vmem:[%s166_s18 + $0x28] sm:$0xff] }
   0xf   : > { %v174_v2 = vld [vmem:[%s166_s18] sm:$0xff]  ;;  %v197_v3 = vsel %vm184_vm0, %v593_v0, 0.0  ;;  %v191_v4 = vsel %vm184_vm0, %v176_v1, 0.0  ;;  %v177_v7 = vld [vmem:[%s166_s18 + $0x18] sm:$0xff]  ;;  %v175_v8 = vld [vmem:[%s166_s18 + $0x8] sm:$0xff]  ;;  %v200_v9 = vsel %vm184_vm0, %v179_v6, 0.0 }
  0x10   : > { %v185_v5 = vsel %vm184_vm0, %v174_v2, 0.0  ;;  %198 = vadd.xlane.f32.xlu2 %v197_v3  ;;  %192 = vadd.xlane.f32.xlu1 %v191_v4  ;;  %v194_v10 = vsel %vm184_vm0, %v177_v7, 0.0  ;;  %v188_v11 = vsel %vm184_vm0, %v175_v8, 0.0  ;;  %v182_v12 = vld [vmem:[%s166_s18 + $0x40] sm:$0xff]  ;;  %v602_v13 = vld [vmem:[%s166_s18 + $0x38] sm:$0xff]  ;;  %v180_v14 = vld [vmem:[%s166_s18 + $0x30] sm:$0xff] }
  0x11   : > { %186 = vadd.xlane.f32.xlu0 %v185_v5  ;;  %v209_v15 = vsel %vm184_vm0, %v182_v12, 0.0  ;;  %v206_v16 = vsel %vm184_vm0, %v602_v13, 0.0  ;;  %v203_v17 = vsel %vm184_vm0, %v180_v14, 0.0  ;;  %v608_v18 = vld [vmem:[%s166_s18 + $0x48] sm:$0xff] }
  0x12   : > { %v212_v19 = vsel %vm184_vm0, %v608_v18, 0.0  ;;  %v527_v21 = vpop.eup %526 }
  0x13   : > { %v216_v22 = vmul.f32 32.0, %v527_v21  ;;  %vm220_vm1 = vweird.f32 %v527_v21 }
  0x15   : > { %v217_v23 = vsub.f32 1.0, %v216_v22 }
  0x17   : > { %v218_v24 = vmul.f32 %v527_v21, %v217_v23 }
  0x18   : > { %201 = vadd.xlane.f32.xlu2 %v200_v9  ;;  %195 = vadd.xlane.f32.xlu1 %v194_v10 }
  0x19   : > { %189 = vadd.xlane.f32.xlu0 %v188_v11  ;;  %v219_v25 = vadd.f32 %v527_v21, %v218_v24 }
  0x1b   : > { %v612_v26 = vsel %vm220_vm1, %v527_v21, %v219_v25 }
  0x20   : > { %210 = vadd.xlane.f32.xlu2 %v209_v15  ;;  %207 = vadd.xlane.f32.xlu1 %v206_v16 }
  0x21   : > { %204 = vadd.xlane.f32.xlu0 %v203_v17 }
  0x29   : > { %213 = vadd.xlane.f32.xlu0 %v212_v19 }
  0x83   : > { %v199_v27 = vpop.xlane.xlu2 %198  ;;  %v193_v28 = vpop.xlane.xlu1 %192 }
  0x84   : > { %v224_v29 = vmul.f32 %v612_v26, %v193_v28  ;;  %v187_v30 = vpop.xlane.xlu0 %186  ;;  %v226_v46 = vmul.f32 %v612_v26, %v199_v27 }
  0x85   : > { %v222_v31 = vmul.f32 %v612_v26, %v187_v30 }
  0x86   : > { %v616_v32 = vsub.f32 %v176_v1, %v224_v29  ;;  %v645_v53 = vsub.f32 %v593_v0, %v226_v46 }
  0x87   : > { %v618_v33 = vsub.f32 %v174_v2, %v222_v31 }
  0x88   : > { %v244_v34 = vmul.f32 %v616_v32, %v616_v32  ;;  %v246_v63 = vmul.f32 %v645_v53, %v645_v53 }
  0x89   : > { %v242_v35 = vmul.f32 %v618_v33, %v618_v33 }
  0x8a   : > { %v258_v36 = vsel %vm184_vm0, %v244_v34, 0.0  ;;  %v264_v4 = vsel %vm184_vm0, %v246_v63, 0.0 }
  0x8b   : > { %v202_v37 = vpop.xlane.xlu2 %201  ;;  %v196_v38 = vpop.xlane.xlu1 %195  ;;  %259 = vadd.xlane.f32.xlu0 %v258_v36  ;;  %v252_v39 = vsel %vm184_vm0, %v242_v35, 0.0 }
  0x8c   : > { %v227_v40 = vmul.f32 %v612_v26, %v202_v37  ;;  %v225_v41 = vmul.f32 %v612_v26, %v196_v38  ;;  %253 = vadd.xlane.f32.xlu1 %v252_v39  ;;  %v190_v42 = vpop.xlane.xlu0 %189 }
  0x8d   : > { %v223_v43 = vmul.f32 %v612_v26, %v190_v42 }
  0x8e   : > { %v629_v44 = vsub.f32 %v179_v6, %v227_v40  ;;  %v631_v45 = vsub.f32 %v177_v7, %v225_v41 }
  0x8f   : > { %v634_v47 = vsub.f32 %v175_v8, %v223_v43 }
  0x90   : > { %v247_v48 = vmul.f32 %v629_v44, %v629_v44  ;;  %v245_v49 = vmul.f32 %v631_v45, %v631_v45 }
  0x91   : > { %v243_v50 = vmul.f32 %v634_v47, %v634_v47 }
  0x92   : > { %v267_v51 = vsel %vm184_vm0, %v247_v48, 0.0  ;;  %v261_v52 = vsel %vm184_vm0, %v245_v49, 0.0 }
  0x93   : > { %v211_v54 = vpop.xlane.xlu2 %210  ;;  %268 = vadd.xlane.f32.xlu0 %v267_v51  ;;  %v255_v55 = vsel %vm184_vm0, %v243_v50, 0.0  ;;  %v208_v56 = vpop.xlane.xlu1 %207 }
  0x94   : > { %v230_v57 = vmul.f32 %v612_v26, %v211_v54  ;;  %262 = vadd.xlane.f32.xlu1 %v261_v52  ;;  %256 = vadd.xlane.f32.xlu2 %v255_v55  ;;  %v205_v58 = vpop.xlane.xlu0 %204  ;;  %v229_v60 = vmul.f32 %v612_v26, %v208_v56 }
  0x95   : > { %v228_v59 = vmul.f32 %v612_v26, %v205_v58 }
  0x96   : > { %v651_v61 = vsub.f32 %v182_v12, %v230_v57  ;;  %v660_v1 = vsub.f32 %v602_v13, %v229_v60  ;;  %v707_v57 = vld [vmem:[%s821_s1] ss:$0 sm:$0xff] }
  0x97   : > { %v653_v62 = vsub.f32 %v180_v14, %v228_v59 }
  0x98   : > { %v250_v0 = vmul.f32 %v651_v61, %v651_v61  ;;  %v249_v8 = vmul.f32 %v660_v1, %v660_v1 }
  0x99   : > { %v248_v2 = vmul.f32 %v653_v62, %v653_v62 }
  0x9a   : > { %v276_v3 = vsel %vm184_vm0, %v250_v0, 0.0  ;;  %v273_v10 = vsel %vm184_vm0, %v249_v8, 0.0 }
  0x9b   : > { %277 = vadd.xlane.f32.xlu0 %v276_v3  ;;  %v270_v5 = vsel %vm184_vm0, %v248_v2, 0.0 }
  0x9c   : > { %265 = vadd.xlane.f32.xlu2 %v264_v4  ;;  %271 = vadd.xlane.f32.xlu1 %v270_v5  ;;  %v214_v6 = vpop.xlane.xlu0 %213  ;;  %v722_v4 = vld [vmem:[%s822_s2] ss:$0 sm:$0xff] }
  0x9d   : > { %v231_v7 = vmul.f32 %v612_v26, %v214_v6 }
  0x9f   : > { %v671_v9 = vsub.f32 %v608_v18, %v231_v7 }
  0xa1   : > { %v251_v11 = vmul.f32 %v671_v9, %v671_v9 }
  0xa3   : > { %v279_v12 = vsel %vm184_vm0, %v251_v11, 0.0 }
  0xa4   : > { %274 = vadd.xlane.f32.xlu2 %v273_v10  ;;  %280 = vadd.xlane.f32.xlu1 %v279_v12 }
  0xfe   : > { %v260_v13 = vpop.xlane.xlu0 %259 }
  0xff   : > { %v254_v14 = vpop.xlane.xlu1 %253  ;;  %v284_v15 = vmul.f32 %v260_v13, %v612_v26 }
 0x100   : > { %v282_v16 = vmul.f32 %v254_v14, %v612_v26 }
 0x101   : > { %v294_v17 = vadd.f32 1e-05, %v284_v15 }
 0x102   : > { %v292_v19 = vadd.f32 1e-05, %v282_v16 }
 0x103   : > { %528 = vrsqrt.f32 %v294_v17  ;;  %vm328_vm4 = vweird.f32 %v294_v17 }
 0x104   : > { %530 = vrsqrt.f32 %v292_v19  ;;  %vm308_vm5 = vweird.f32 %v292_v19 }
 0x106   : > { %v269_v18 = vpop.xlane.xlu0 %268 }
 0x107   : > { %v263_v20 = vpop.xlane.xlu1 %262  ;;  %v257_v21 = vpop.xlane.xlu2 %256  ;;  %v287_v22 = vmul.f32 %v269_v18, %v612_v26 }
 0x108   : > { %v285_v23 = vmul.f32 %v263_v20, %v612_v26  ;;  %v283_v24 = vmul.f32 %v257_v21, %v612_v26 }
 0x109   : > { %v529_v25 = vpop.eup %528  ;;  %v682_v27 = vadd.f32 1e-05, %v287_v22 }
 0x10a   : > { %v531_v28 = vpop.eup %530  ;;  %v323_v29 = vmul.f32 %v529_v25, %v294_v17  ;;  %v684_v30 = vadd.f32 1e-05, %v285_v23  ;;  %v686_v31 = vadd.f32 1e-05, %v283_v24  ;;  %vm329_vm2 = vweird.f32 %v529_v25 }
 0x10b   : > { %v303_v34 = vmul.f32 %v531_v28, %v292_v19  ;;  %532 = vrsqrt.f32 %v682_v27  ;;  %vm309_vm3 = vweird.f32 %v531_v28  ;;  %vm330_vm6 = vmor %vm328_vm4, %vm329_vm2  ;;  %vm358_vm8 = vweird.f32 %v682_v27 }
 0x10c   : > { %v324_v35 = vmul.f32 %v529_v25, %v323_v29  ;;  %534 = vrsqrt.f32 %v684_v30  ;;  %vm310_vm7 = vmor %vm308_vm5, %vm309_vm3  ;;  %vm338_vm12 = vweird.f32 %v684_v30  ;;  %vm318_vm15 = vweird.f32 %v686_v31 }
 0x10d   : > { %v304_v36 = vmul.f32 %v531_v28, %v303_v34  ;;  %536 = vrsqrt.f32 %v686_v31 }
 0x10e   : > { %v325_v37 = vmul.f32 0.5, %v324_v35  ;;  %v278_v38 = vpop.xlane.xlu0 %277 }
 0x10f   : > { %v305_v39 = vmul.f32 0.5, %v304_v36  ;;  %v266_v40 = vpop.xlane.xlu2 %265  ;;  %v272_v41 = vpop.xlane.xlu1 %271  ;;  %v290_v48 = vmul.f32 %v278_v38, %v612_v26 }
 0x110   : > { %v326_v42 = vsub.f32 1.5, %v325_v37  ;;  %v286_v43 = vmul.f32 %v266_v40, %v612_v26  ;;  %v288_v46 = vmul.f32 %v272_v41, %v612_v26 }
 0x111   : > { %v694_v49 = vpop.eup %532  ;;  %v306_v50 = vsub.f32 1.5, %v305_v39  ;;  %v717_v3 = vadd.f32 1e-05, %v290_v48 }
 0x112   : > { %v696_v51 = vpop.eup %534  ;;  %v327_v52 = vmul.f32 %v529_v25, %v326_v42  ;;  %v353_v54 = vmul.f32 %v694_v49, %v682_v27  ;;  %v700_v55 = vadd.f32 1e-05, %v286_v43  ;;  %v712_v60 = vadd.f32 1e-05, %v288_v46 }
 0x113   : > { %v702_v56 = vpop.eup %536  ;;  %v307_v58 = vmul.f32 %v531_v28, %v306_v50  ;;  %v333_v59 = vmul.f32 %v696_v51, %v684_v30  ;;  %vm359_vm9 = vweird.f32 %v694_v49  ;;  %vm339_vm10 = vweird.f32 %v696_v51 }
 0x114   : > { %v331_v63 = vsel %vm330_vm6, %v529_v25, %v327_v52  ;;  %v313_v0 = vmul.f32 %v702_v56, %v686_v31  ;;  %v354_v2 = vmul.f32 %v694_v49, %v353_v54  ;;  %538 = vrsqrt.f32 %v700_v55  ;;  %vm360_vm13 = vmor %vm358_vm8, %vm359_vm9 }
 0x115   : > { %v311_v5 = vsel %vm310_vm7, %v531_v28, %v307_v58  ;;  %v404_v6 = vmul.f32 %v331_v63, %v616_v32  ;;  %v334_v7 = vmul.f32 %v696_v51, %v333_v59  ;;  %540 = vrsqrt.f32 %v712_v60  ;;  %vm340_vm14 = vmor %vm338_vm12, %vm339_vm10 }
 0x116   : > { %v402_v8 = vmul.f32 %v311_v5, %v618_v33  ;;  %v314_v10 = vmul.f32 %v702_v56, %v313_v0  ;;  %v355_v11 = vmul.f32 0.5, %v354_v2  ;;  %542 = vrsqrt.f32 %v717_v3 }
 0x117   : > { %v418_v12 = vmul.f32 %v707_v57, %v404_v6  ;;  %v335_v13 = vmul.f32 0.5, %v334_v7  ;;  %v275_v14 = vpop.xlane.xlu2 %274  ;;  %vm319_vm11 = vweird.f32 %v702_v56  ;;  %v281_v22 = vpop.xlane.xlu1 %280  ;;  %vm348_vm3 = vweird.f32 %v700_v55 }
 0x118   : > { %v416_v32 = vmul.f32 %v707_v57, %v402_v8  ;;  %v315_v33 = vmul.f32 0.5, %v314_v10  ;;  %v356_v15 = vsub.f32 1.5, %v355_v11  ;;  %v289_v19 = vmul.f32 %v275_v14, %v612_v26  ;;  %vm320_vm1 = vmor %vm318_vm15, %vm319_vm11 }
 0x119   : > { %v432_v16 = vadd.f32 %v722_v4, %v418_v12  ;;  %v336_v17 = vsub.f32 1.5, %v335_v13  ;;  %v291_v36 = vmul.f32 %v281_v22, %v612_v26  ;;  %vm388_vm6 = vweird.f32 %v717_v3 }
 0x11a   : > { %v430_v18 = vadd.f32 %v722_v4, %v416_v32  ;;  %v316_v20 = vsub.f32 1.5, %v315_v33  ;;  %v357_v21 = vmul.f32 %v694_v49, %v356_v15  ;;  %v539_v23 = vpop.eup %538  ;;  %v756_v25 = vadd.f32 1e-05, %v289_v19 }
 0x11b   : > { %442 = vst.msk [vmem:[%s738_s25 + $0x10] sm:$0xff] %vm184_vm0, %v432_v16  ;;  %v337_v24 = vmul.f32 %v696_v51, %v336_v17  ;;  %v343_v34 = vmul.f32 %v539_v23, %v700_v55  ;;  %v541_v35 = vpop.eup %540  ;;  %v301_v50 = vadd.f32 1e-05, %v291_v36  ;;  %vm349_vm2 = vweird.f32 %v539_v23 }
 0x11c   : > { %440 = vst.msk [vmem:[%s738_s25] sm:$0xff] %vm184_vm0, %v430_v18  ;;  %v317_v28 = vmul.f32 %v702_v56, %v316_v20  ;;  %v361_v29 = vsel %vm360_vm13, %v694_v49, %v357_v21  ;;  %544 = vrsqrt.f32 %v756_v25  ;;  %v543_v37 = vpop.eup %542  ;;  %v363_v40 = vmul.f32 %v541_v35, %v712_v60  ;;  %vm350_vm5 = vmor %vm348_vm3, %vm349_vm2 }
 0x11d   : > { %v341_v30 = vsel %vm340_vm14, %v696_v51, %v337_v24  ;;  %v407_v27 = vmul.f32 %v361_v29, %v629_v44  ;;  %v344_v39 = vmul.f32 %v539_v23, %v343_v34  ;;  %v383_v43 = vmul.f32 %v543_v37, %v717_v3 }
 0x11e   : > { %v405_v38 = vmul.f32 %v341_v30, %v631_v45  ;;  %v321_v31 = vsel %vm320_vm1, %v702_v56, %v317_v28  ;;  %v364_v26 = vmul.f32 %v541_v35, %v363_v40  ;;  %546 = vrsqrt.f32 %v301_v50 }
 0x11f   : > { %v403_v41 = vmul.f32 %v321_v31, %v634_v47  ;;  %v421_v42 = vmul.f32 %v707_v57, %v407_v27  ;;  %v345_v46 = vmul.f32 0.5, %v344_v39  ;;  %v384_v49 = vmul.f32 %v543_v37, %v383_v43 }
 0x120   : > { %v419_v44 = vmul.f32 %v707_v57, %v405_v38  ;;  %v365_v52 = vmul.f32 0.5, %v364_v26  ;;  %vm369_vm4 = vweird.f32 %v541_v35  ;;  %vm389_vm7 = vweird.f32 %v543_v37 }
 0x121   : > { %v417_v48 = vmul.f32 %v707_v57, %v403_v41  ;;  %v435_v45 = vadd.f32 %v722_v4, %v421_v42  ;;  %v346_v47 = vsub.f32 1.5, %v345_v46  ;;  %v385_v58 = vmul.f32 0.5, %v384_v49  ;;  %vm390_vm10 = vmor %vm388_vm6, %vm389_vm7 }
 0x122   : > { %v433_v51 = vadd.f32 %v722_v4, %v419_v44  ;;  %v545_v54 = vpop.eup %544  ;;  %v366_v63 = vsub.f32 1.5, %v365_v52  ;;  %vm368_vm8 = vweird.f32 %v712_v60  ;;  %vm378_vm12 = vweird.f32 %v756_v25 }
 0x123   : > { %v431_v56 = vadd.f32 %v722_v4, %v417_v48  ;;  %445 = vst.msk [vmem:[%s738_s25 + $0x28] sm:$0xff] %vm184_vm0, %v435_v45  ;;  %v347_v59 = vmul.f32 %v539_v23, %v346_v47  ;;  %v373_v0 = vmul.f32 %v545_v54, %v756_v25  ;;  %v386_v2 = vsub.f32 1.5, %v385_v58  ;;  %vm370_vm9 = vmor %vm368_vm8, %vm369_vm4 }
 0x124   : > { %443 = vst.msk [vmem:[%s738_s25 + $0x18] sm:$0xff] %vm184_vm0, %v433_v51  ;;  %v367_v6 = vmul.f32 %v541_v35, %v366_v63  ;;  %v547_v12 = vpop.eup %546  ;;  %vm379_vm11 = vweird.f32 %v545_v54  ;;  %vm398_vm15 = vweird.f32 %v301_v50 }
 0x125   : > { %441 = vst.msk [vmem:[%s738_s25 + $0x8] sm:$0xff] %vm184_vm0, %v431_v56  ;;  %v351_v5 = vsel %vm350_vm5, %v539_v23, %v347_v59  ;;  %v374_v55 = vmul.f32 %v545_v54, %v373_v0  ;;  %v387_v8 = vmul.f32 %v543_v37, %v386_v2  ;;  %v393_v60 = vmul.f32 %v547_v12, %v301_v50  ;;  %vm380_vm13 = vmor %vm378_vm12, %vm379_vm11 }
 0x126   : > { %v406_v7 = vmul.f32 %v351_v5, %v645_v53  ;;  %v371_v10 = vsel %vm370_vm9, %v541_v35, %v367_v6  ;;  %vm399_vm14 = vweird.f32 %v547_v12 }
 0x127   : > { %v375_v11 = vmul.f32 0.5, %v374_v55  ;;  %v408_v14 = vmul.f32 %v371_v10, %v653_v62  ;;  %v391_v3 = vsel %vm390_vm10, %v543_v37, %v387_v8  ;;  %v394_v19 = vmul.f32 %v547_v12, %v393_v60  ;;  %vm400_vm1 = vmor %vm398_vm15, %vm399_vm14 }
 0x128   : > { %v420_v13 = vmul.f32 %v707_v57, %v406_v7  ;;  %v410_v32 = vmul.f32 %v391_v3, %v651_v61 }
 0x129   : > { %v376_v33 = vsub.f32 1.5, %v375_v11  ;;  %v422_v15 = vmul.f32 %v707_v57, %v408_v14  ;;  %v395_v20 = vmul.f32 0.5, %v394_v19 }
 0x12a   : > { %v434_v53 = vadd.f32 %v722_v4, %v420_v13  ;;  %v424_v16 = vmul.f32 %v707_v57, %v410_v32 }
 0x12b   : > { %v377_v17 = vmul.f32 %v545_v54, %v376_v33  ;;  %v436_v62 = vadd.f32 %v722_v4, %v422_v15  ;;  %v396_v22 = vsub.f32 1.5, %v395_v20 }
 0x12c   : > { %444 = vst.msk [vmem:[%s738_s25 + $0x20] sm:$0xff] %vm184_vm0, %v434_v53  ;;  %v438_v61 = vadd.f32 %v722_v4, %v424_v16 }
 0x12d   : > { %v381_v18 = vsel %vm380_vm13, %v545_v54, %v377_v17  ;;  %446 = vst.msk [vmem:[%s738_s25 + $0x30] sm:$0xff] %vm184_vm0, %v436_v62  ;;  %v397_v24 = vmul.f32 %v547_v12, %v396_v22 }
 0x12e   : > { %v409_v21 = vmul.f32 %v381_v18, %v660_v1  ;;  %448 = vst.msk [vmem:[%s738_s25 + $0x40] sm:$0xff] %vm184_vm0, %v438_v61 }
 0x12f   : > { %v401_v28 = vsel %vm400_vm1, %v547_v12, %v397_v24 }
 0x130   : > { %v423_v23 = vmul.f32 %v707_v57, %v409_v21  ;;  %v411_v29 = vmul.f32 %v401_v28, %v671_v9 }
 0x132   : > { %v437_v25 = vadd.f32 %v722_v4, %v423_v23  ;;  %v425_v34 = vmul.f32 %v707_v57, %v411_v29 }
 0x134   : > { %447 = vst.msk [vmem:[%s738_s25 + $0x38] sm:$0xff] %vm184_vm0, %v437_v25  ;;  %v439_v1 = vadd.f32 %v722_v4, %v425_v34 }
 0x136   : > { %449 = vst.msk [vmem:[%s738_s25 + $0x48] sm:$0xff] %vm184_vm0, %v439_v1 }
 0x137 PF: > { %s13_s12 = sadd.s32 1, %s554_s12  }
 0x138   : > { %p10_p4 = scmp.ge.s32.totalorder %s13_s12, 4  }
 0x13a   :  { %12 = sbr.rel (!%p10_p4) target bundleno = 1 (0x1), region = 62 }

// kernel: block_forward.7
= control target key start
LH: loop header
LB: loop body
LE: loop exit
PB: predicated region body
PF: predicated region fallthrough
CT: control target
= control target key end

     0   :  { %vm154_vm0 = vcmask 261120   ;;  %s1102_s3 = inlined_call_operand.vmem [shape: f32[32,32], index: 3, kind: input, shape index: {}]   ;;  %s1103_s4 = inlined_call_operand.vmem [shape: f32[32,32], index: 4, kind: input, shape index: {}]   ;;  %s1104_s0 = inlined_call_operand.vmem [shape: f32[9,40,32], index: 0, kind: input, shape index: {}]   ;;  %s1105_s1 = inlined_call_operand.vmem [shape: f32[9,1,32], index: 1, kind: input, shape index: {}]   ;;  %s1106_s2 = inlined_call_operand.vmem [shape: f32[9,1,32], index: 2, kind: input, shape index: {}]   ;;  %s1107_s5 = inlined_call_operand.vmem [shape: f32[1,32], index: 5, kind: input, shape index: {}]   ;;  %s1108_s6 = inlined_call_operand.vmem [shape: f32[1,32], index: 6, kind: input, shape index: {}]   ;;  %s1109_s7 = inlined_call_operand.vmem [shape: f32[40,32], index: 7, kind: output, shape index: {0}]   ;;  %s1110_s8 = inlined_call_operand.vmem [shape: f32[40,32], index: 8, kind: output, shape index: {1}]  }
   0x1   :  { %v409_v0 = vld [vmem:[%s1102_s3 + $0x18] sm:$0xff]  ;;  %v408_v2 = vld [vmem:[%s1102_s3 + $0x10] sm:$0xff]  ;;  %v407_v4 = vld [vmem:[%s1102_s3 + $0x8] sm:$0xff] }
   0x2   :  { %v469_v1 = vld [vmem:[%s1103_s4 + $0x18] sm:$0xff]  ;;  %441 = vmatpush.msra.mxu0 %v409_v0  ;;  %v468_v3 = vld [vmem:[%s1103_s4 + $0x10] sm:$0xff]  ;;  %544 = vmatpush.msra.mxu2 %v409_v0  ;;  %v467_v5 = vld [vmem:[%s1103_s4 + $0x8] sm:$0xff] }
   0x3   :  { %501 = vmatpush.msra.mxu1 %v469_v1  ;;  %548 = vmatpush.msra.mxu3 %v469_v1  ;;  %v406_v6 = vld [vmem:[%s1102_s3] sm:$0xff]  ;;  %v33_v9 = vld [vmem:[%s1104_s0 + $0x28] sm:$0xff]  ;;  %v38_v10 = vld [vmem:[%s1104_s0 + $0x50] sm:$0xff] }
   0x4   :  { %442 = vmatpush.msra.mxu0 %v408_v2  ;;  %545 = vmatpush.msra.mxu2 %v408_v2  ;;  %v466_v7 = vld [vmem:[%s1103_s4] sm:$0xff]  ;;  %v43_v11 = vld [vmem:[%s1104_s0 + $0x78] sm:$0xff]  ;;  %v53_v14 = vld [vmem:[%s1104_s0 + $0xc8] sm:$0xff] }
   0x5   :  { %502 = vmatpush.msra.mxu1 %v468_v3  ;;  %549 = vmatpush.msra.mxu3 %v468_v3  ;;  %v28_v8 = vld [vmem:[%s1104_s0] sm:$0xff]  ;;  %v58_v18 = vld [vmem:[%s1104_s0 + $0xf0] sm:$0xff]  ;;  %v63_v23 = vld [vmem:[%s1104_s0 + $0x118] sm:$0xff] }
   0x6   :  { %443 = vmatpush.msra.mxu0 %v407_v4  ;;  %546 = vmatpush.msra.mxu2 %v407_v4  ;;  %v48_v12 = vld [vmem:[%s1104_s0 + $0xa0] sm:$0xff]  ;;  %v709_v25 = vld [vmem:[%s1105_s1 + $0x8] ss:$0 sm:$0xff]  ;;  %v31_v39 = vld [vmem:[%s1104_s0 + $0x18] sm:$0xff] }
   0x7   :  { %503 = vmatpush.msra.mxu1 %v467_v5  ;;  %550 = vmatpush.msra.mxu3 %v467_v5  ;;  %v659_v13 = vld [vmem:[%s1105_s1] ss:$0 sm:$0xff]  ;;  %v667_v15 = vld [vmem:[%s1105_s1 + $0x1] ss:$0 sm:$0xff]  ;;  %v672_v16 = vld [vmem:[%s1105_s1 + $0x2] ss:$0 sm:$0xff] }
   0x8   :  { %444 = vmatpush.msra.mxu0 %v406_v6  ;;  %547 = vmatpush.msra.mxu2 %v406_v6  ;;  %v677_v17 = vld [vmem:[%s1105_s1 + $0x3] ss:$0 sm:$0xff]  ;;  %v685_v19 = vld [vmem:[%s1105_s1 + $0x4] ss:$0 sm:$0xff]  ;;  %v690_v20 = vld [vmem:[%s1105_s1 + $0x5] ss:$0 sm:$0xff]  ;;  %v109_v22 = vmul.f32 %v659_v13, %v28_v8  ;;  %v114_v26 = vmul.f32 %v667_v15, %v33_v9  ;;  %v119_v27 = vmul.f32 %v672_v16, %v38_v10 }
   0x9   :  { %504 = vmatpush.msra.mxu1 %v466_v7  ;;  %551 = vmatpush.msra.mxu3 %v466_v7  ;;  %v695_v21 = vld [vmem:[%s1105_s1 + $0x6] ss:$0 sm:$0xff]  ;;  %v704_v24 = vld [vmem:[%s1105_s1 + $0x7] ss:$0 sm:$0xff]  ;;  %v124_v28 = vmul.f32 %v677_v17, %v43_v11  ;;  %v129_v30 = vmul.f32 %v685_v19, %v48_v12  ;;  %v134_v34 = vmul.f32 %v690_v20, %v53_v14  ;;  %v733_v43 = vld [vmem:[%s1106_s2] ss:$0 sm:$0xff] }
   0xa   :  { %v68_v29 = vld [vmem:[%s1104_s0 + $0x140] sm:$0xff]  ;;  %v155_v31 = vsel %vm154_vm0, %v109_v22, 0.0  ;;  %v156_v32 = vsel %vm154_vm0, %v114_v26, 0.0  ;;  %v158_v33 = vsel %vm154_vm0, %v119_v27, 0.0  ;;  %v139_v36 = vmul.f32 %v695_v21, %v58_v18  ;;  %v41_v62 = vld [vmem:[%s1104_s0 + $0x68] sm:$0xff]  ;;  %v46_v5 = vld [vmem:[%s1104_s0 + $0x90] sm:$0xff] }
   0xb   :  { %v157_v35 = vadd.f32 %v156_v32, %v155_v31  ;;  %v160_v37 = vsel %vm154_vm0, %v124_v28, 0.0  ;;  %v162_v38 = vsel %vm154_vm0, %v129_v30, 0.0  ;;  %v144_v40 = vmul.f32 %v704_v24, %v63_v23  ;;  %v738_v44 = vld [vmem:[%s1106_s2 + $0x1] ss:$0 sm:$0xff]  ;;  %v743_v45 = vld [vmem:[%s1106_s2 + $0x2] ss:$0 sm:$0xff] }
   0xc   :  { %v149_v41 = vmul.f32 %v709_v25, %v68_v29  ;;  %v748_v46 = vld [vmem:[%s1106_s2 + $0x3] ss:$0 sm:$0xff]  ;;  %v164_v48 = vsel %vm154_vm0, %v134_v34, 0.0  ;;  %v754_v49 = vld [vmem:[%s1106_s2 + $0x4] ss:$0 sm:$0xff]  ;;  %v276_v51 = vmul.f32 %v733_v43, %v28_v8  ;;  %v166_v52 = vsel %vm154_vm0, %v139_v36, 0.0 }
   0xd   :  { %v159_v42 = vadd.f32 %v158_v33, %v157_v35  ;;  %v759_v50 = vld [vmem:[%s1106_s2 + $0x5] ss:$0 sm:$0xff]  ;;  %v766_v53 = vld [vmem:[%s1106_s2 + $0x6] ss:$0 sm:$0xff]  ;;  %v771_v54 = vld [vmem:[%s1106_s2 + $0x7] ss:$0 sm:$0xff]  ;;  %v281_v55 = vmul.f32 %v738_v44, %v33_v9  ;;  %v286_v56 = vmul.f32 %v743_v45, %v38_v10  ;;  %v291_v57 = vmul.f32 %v748_v46, %v43_v11 }
   0xe   :  { %v36_v58 = vld [vmem:[%s1104_s0 + $0x40] sm:$0xff]  ;;  %v168_v60 = vsel %vm154_vm0, %v144_v40, 0.0  ;;  %v170_v61 = vsel %vm154_vm0, %v149_v41, 0.0  ;;  %v112_v63 = vmul.f32 %v659_v13, %v31_v39  ;;  %v788_v0 = vld [vmem:[%s1106_s2 + $0x8] ss:$0 sm:$0xff]  ;;  %v296_v1 = vmul.f32 %v754_v49, %v48_v12 }
   0xf   :  { %v161_v47 = vadd.f32 %v160_v37, %v159_v42  ;;  %v301_v2 = vmul.f32 %v759_v50, %v53_v14  ;;  %v321_v3 = vsel %vm154_vm0, %v276_v51, 0.0  ;;  %v322_v4 = vsel %vm154_vm0, %v281_v55, 0.0  ;;  %v51_v14 = vld [vmem:[%s1104_s0 + $0xb8] sm:$0xff]  ;;  %v56_v32 = vld [vmem:[%s1104_s0 + $0xe0] sm:$0xff]  ;;  %v61_v36 = vld [vmem:[%s1104_s0 + $0x108] sm:$0xff] }
  0x10   :  { %v323_v7 = vadd.f32 %v322_v4, %v321_v3  ;;  %v324_v8 = vsel %vm154_vm0, %v286_v56, 0.0  ;;  %v117_v9 = vmul.f32 %v667_v15, %v36_v58  ;;  %v306_v10 = vmul.f32 %v766_v53, %v58_v18  ;;  %v71_v51 = vld [vmem:[%s1104_s0 + $0x158] sm:$0xff] }
  0x11   :  { %v163_v59 = vadd.f32 %v162_v38, %v161_v47  ;;  %v311_v11 = vmul.f32 %v771_v54, %v63_v23  ;;  %v326_v12 = vsel %vm154_vm0, %v291_v57, 0.0  ;;  %v122_v22 = vmul.f32 %v672_v16, %v41_v62 }
  0x12   :  { %v325_v27 = vadd.f32 %v324_v8, %v323_v7  ;;  %v127_v28 = vmul.f32 %v677_v17, %v46_v5  ;;  %v206_v30 = vsel %vm154_vm0, %v112_v63, 0.0  ;;  %v316_v31 = vmul.f32 %v788_v0, %v68_v29  ;;  %v66_v29 = vld [vmem:[%s1104_s0 + $0x130] sm:$0xff] }
  0x13   :  { %v165_v6 = vadd.f32 %v164_v48, %v163_v59  ;;  %v328_v18 = vsel %vm154_vm0, %v296_v1, 0.0  ;;  %v330_v23 = vsel %vm154_vm0, %v301_v2, 0.0  ;;  %v279_v33 = vmul.f32 %v733_v43, %v31_v39 }
  0x14   :  { %v327_v35 = vadd.f32 %v326_v12, %v325_v27  ;;  %v132_v37 = vmul.f32 %v685_v19, %v51_v14  ;;  %v207_v38 = vsel %vm154_vm0, %v117_v9, 0.0  ;;  %v332_v40 = vsel %vm154_vm0, %v306_v10, 0.0 }
  0x15   :  { %v167_v26 = vadd.f32 %v166_v52, %v165_v6  ;;  %v334_v41 = vsel %vm154_vm0, %v311_v11, 0.0  ;;  %v208_v42 = vadd.f32 %v207_v38, %v206_v30  ;;  %v209_v39 = vsel %vm154_vm0, %v122_v22, 0.0  ;;  %v29_v22 = vld [vmem:[%s1104_s0 + $0x8] sm:$0xff] }
  0x16   :  { %v329_v48 = vadd.f32 %v328_v18, %v327_v35  ;;  %v137_v52 = vmul.f32 %v690_v20, %v56_v32  ;;  %v211_v55 = vsel %vm154_vm0, %v127_v28, 0.0  ;;  %v142_v56 = vmul.f32 %v695_v21, %v61_v36  ;;  %v44_v18 = vld [vmem:[%s1104_s0 + $0x80] sm:$0xff] }
  0x17   :  { %v169_v34 = vadd.f32 %v168_v60, %v167_v26  ;;  %v147_v57 = vmul.f32 %v704_v24, %v66_v29  ;;  %v210_v59 = vadd.f32 %v209_v39, %v208_v42  ;;  %v284_v60 = vmul.f32 %v738_v44, %v36_v58  ;;  %v39_v26 = vld [vmem:[%s1104_s0 + $0x58] sm:$0xff] }
  0x18   :  { %v331_v63 = vadd.f32 %v330_v23, %v329_v48  ;;  %v289_v1 = vmul.f32 %v743_v45, %v41_v62  ;;  %v294_v2 = vmul.f32 %v748_v46, %v46_v5  ;;  %v336_v3 = vsel %vm154_vm0, %v316_v31, 0.0 }
  0x19   :  { %v171_v47 = vadd.f32 %v170_v61, %v169_v34  ;;  %v213_v61 = vsel %vm154_vm0, %v132_v37, 0.0  ;;  %v152_v4 = vmul.f32 %v709_v25, %v71_v51  ;;  %v212_v6 = vadd.f32 %v211_v55, %v210_v59  ;;  %v49_v37 = vld [vmem:[%s1104_s0 + $0xa8] sm:$0xff] }
  0x1a   :  { %v299_v7 = vmul.f32 %v754_v49, %v51_v14  ;;  %v333_v8 = vadd.f32 %v332_v40, %v331_v63  ;;  %v215_v9 = vsel %vm154_vm0, %v137_v52, 0.0  ;;  %v372_v58 = vsel %vm154_vm0, %v279_v33, 0.0  ;;  %v34_v14 = vld [vmem:[%s1104_s0 + $0x30] sm:$0xff] }
  0x1b   :  { %534 = vmatmul.msk.f32.vlgmr.msra.gmra.mxu0 %vm154_vm0, %v171_v47  ;;  %v373_v10 = vsel %vm154_vm0, %v284_v60, 0.0  ;;  %v214_v11 = vadd.f32 %v213_v61, %v212_v6  ;;  %v217_v12 = vsel %vm154_vm0, %v142_v56, 0.0  ;;  %v375_v5 = vsel %vm154_vm0, %v289_v1, 0.0  ;;  %v64_v61 = vld [vmem:[%s1104_s0 + $0x120] sm:$0xff] }
  0x1c   :  { %v374_v62 = vadd.f32 %v373_v10, %v372_v58  ;;  %v335_v27 = vadd.f32 %v334_v41, %v333_v8  ;;  %v219_v28 = vsel %vm154_vm0, %v147_v57, 0.0  ;;  %v304_v30 = vmul.f32 %v759_v50, %v56_v32  ;;  %v59_v57 = vld [vmem:[%s1104_s0 + $0xf8] sm:$0xff]  ;;  %v69_v8 = vld [vmem:[%s1104_s0 + $0x148] sm:$0xff] }
  0x1d   :  { %v377_v31 = vsel %vm154_vm0, %v294_v2, 0.0  ;;  %v216_v23 = vadd.f32 %v215_v9, %v214_v11  ;;  %v309_v33 = vmul.f32 %v766_v53, %v61_v36  ;;  %v379_v35 = vsel %vm154_vm0, %v299_v7, 0.0  ;;  %v54_v36 = vld [vmem:[%s1104_s0 + $0xd0] sm:$0xff] }
  0x1e   :  { %v376_v34 = vadd.f32 %v375_v5, %v374_v62  ;;  %v337_v38 = vadd.f32 %v336_v3, %v335_v27  ;;  %v110_v40 = vmul.f32 %v659_v13, %v29_v22  ;;  %v115_v32 = vmul.f32 %v667_v15, %v34_v14 }
  0x1f   :  { %v120_v41 = vmul.f32 %v672_v16, %v39_v26  ;;  %v218_v42 = vadd.f32 %v217_v12, %v216_v23  ;;  %v221_v39 = vsel %vm154_vm0, %v152_v4, 0.0  ;;  %v125_v48 = vmul.f32 %v677_v17, %v44_v18 }
  0x20   :  { %v378_v47 = vadd.f32 %v377_v31, %v376_v34  ;;  %539 = vmatmul.msk.f32.vlgmr.msra.gmra.mxu1 %vm154_vm0, %v337_v38  ;;  %v314_v52 = vmul.f32 %v771_v54, %v66_v29  ;;  %v319_v55 = vmul.f32 %v788_v0, %v71_v51  ;;  %v381_v56 = vsel %vm154_vm0, %v304_v30, 0.0 }
  0x21   :  { %v130_v59 = vmul.f32 %v685_v19, %v49_v37  ;;  %v220_v60 = vadd.f32 %v219_v28, %v218_v42  ;;  %v172_v1 = vsel %vm154_vm0, %v110_v40, 0.0  ;;  %v173_v29 = vsel %vm154_vm0, %v115_v32, 0.0  ;;  %v32_v42 = vld [vmem:[%s1104_s0 + $0x20] sm:$0xff] }
  0x22   :  { %v380_v63 = vadd.f32 %v379_v35, %v378_v47  ;;  %v383_v51 = vsel %vm154_vm0, %v309_v33, 0.0  ;;  %v135_v2 = vmul.f32 %v690_v20, %v54_v36  ;;  %v174_v3 = vadd.f32 %v173_v29, %v172_v1  ;;  %v52_v1 = vld [vmem:[%s1104_s0 + $0xc0] sm:$0xff] }
  0x23   :  { %v175_v4 = vsel %vm154_vm0, %v120_v41, 0.0  ;;  %v222_v6 = vadd.f32 %v221_v39, %v220_v60  ;;  %v140_v9 = vmul.f32 %v695_v21, %v59_v57  ;;  %v177_v58 = vsel %vm154_vm0, %v125_v48, 0.0  ;;  %v42_v39 = vld [vmem:[%s1104_s0 + $0x70] sm:$0xff] }
  0x24   :  { %v382_v7 = vadd.f32 %v381_v56, %v380_v63  ;;  %v385_v10 = vsel %vm154_vm0, %v314_v52, 0.0  ;;  %v145_v11 = vmul.f32 %v704_v24, %v64_v61  ;;  %v176_v12 = vadd.f32 %v175_v4, %v174_v3 }
  0x25   :  { %v277_v62 = vmul.f32 %v733_v43, %v29_v22  ;;  %537 = vmatmul.msk.f32.vlgmr.msra.gmra.mxu2 %vm154_vm0, %v222_v6  ;;  %v179_v27 = vsel %vm154_vm0, %v130_v59, 0.0  ;;  %v282_v28 = vmul.f32 %v738_v44, %v34_v14  ;;  %v287_v30 = vmul.f32 %v743_v45, %v39_v26 }
  0x26   :  { %v384_v5 = vadd.f32 %v383_v51, %v382_v7  ;;  %v387_v31 = vsel %vm154_vm0, %v319_v55, 0.0  ;;  %v150_v23 = vmul.f32 %v709_v25, %v69_v8  ;;  %v178_v33 = vadd.f32 %v177_v58, %v176_v12  ;;  %v47_v55 = vld [vmem:[%s1104_s0 + $0x98] sm:$0xff]  ;;  %v57_v58 = vld [vmem:[%s1104_s0 + $0xe8] sm:$0xff] }
  0x27   :  { %v292_v34 = vmul.f32 %v748_v46, %v44_v18  ;;  %v181_v38 = vsel %vm154_vm0, %v135_v2, 0.0  ;;  %v183_v22 = vsel %vm154_vm0, %v140_v9, 0.0  ;;  %v338_v40 = vsel %vm154_vm0, %v277_v62, 0.0  ;;  %v37_v18 = vld [vmem:[%s1104_s0 + $0x48] sm:$0xff]  ;;  %v67_v62 = vld [vmem:[%s1104_s0 + $0x138] sm:$0xff] }
  0x28   :  { %v386_v35 = vadd.f32 %v385_v10, %v384_v5  ;;  %v180_v32 = vadd.f32 %v179_v27, %v178_v33  ;;  %v297_v41 = vmul.f32 %v754_v49, %v49_v37  ;;  %v339_v14 = vsel %vm154_vm0, %v282_v28, 0.0  ;;  %v62_v10 = vld [vmem:[%s1104_s0 + $0x110] sm:$0xff] }
  0x29   :  { %v341_v26 = vsel %vm154_vm0, %v287_v30, 0.0  ;;  %v185_v48 = vsel %vm154_vm0, %v145_v11, 0.0  ;;  %v302_v37 = vmul.f32 %v759_v50, %v54_v36  ;;  %v340_v52 = vadd.f32 %v339_v14, %v338_v40 }
  0x2a   :  { %v388_v47 = vadd.f32 %v387_v31, %v386_v35  ;;  %v182_v56 = vadd.f32 %v181_v38, %v180_v32  ;;  %v307_v59 = vmul.f32 %v766_v53, %v59_v57  ;;  %v312_v60 = vmul.f32 %v771_v54, %v64_v61 }
  0x2b   :  { %v343_v63 = vsel %vm154_vm0, %v292_v34, 0.0  ;;  %v342_v29 = vadd.f32 %v341_v26, %v340_v52  ;;  %v113_v36 = vmul.f32 %v659_v13, %v32_v42  ;;  %v118_v51 = vmul.f32 %v667_v15, %v37_v18  ;;  %v72_v34 = vld [vmem:[%s1104_s0 + $0x160] sm:$0xff] }
  0x2c   :  { %542 = vmatmul.msk.f32.vlgmr.msra.gmra.mxu3 %vm154_vm0, %v388_v47  ;;  %v123_v2 = vmul.f32 %v672_v16, %v42_v39  ;;  %v184_v3 = vadd.f32 %v183_v22, %v182_v56  ;;  %v187_v57 = vsel %vm154_vm0, %v150_v23, 0.0  ;;  %v345_v61 = vsel %vm154_vm0, %v297_v41, 0.0 }
  0x2d   :  { %v128_v4 = vmul.f32 %v677_v17, %v47_v55  ;;  %v317_v6 = vmul.f32 %v788_v0, %v69_v8  ;;  %v344_v7 = vadd.f32 %v343_v63, %v342_v29  ;;  %v347_v9 = vsel %vm154_vm0, %v302_v37, 0.0 }
  0x2e   :  { %v133_v11 = vmul.f32 %v685_v19, %v52_v1  ;;  %v186_v12 = vadd.f32 %v185_v48, %v184_v3  ;;  %v223_v8 = vsel %vm154_vm0, %v113_v36, 0.0  ;;  %v224_v5 = vsel %vm154_vm0, %v118_v51, 0.0  ;;  %v35_v3 = vld [vmem:[%s1104_s0 + $0x38] sm:$0xff] }
  0x2f   :  { %v226_v27 = vsel %vm154_vm0, %v123_v2, 0.0  ;;  %v346_v28 = vadd.f32 %v345_v61, %v344_v7  ;;  %v349_v30 = vsel %vm154_vm0, %v307_v59, 0.0  ;;  %v351_v31 = vsel %vm154_vm0, %v312_v60, 0.0  ;;  %v45_v7 = vld [vmem:[%s1104_s0 + $0x88] sm:$0xff] }
  0x30   :  { %v225_v23 = vadd.f32 %v224_v5, %v223_v8  ;;  %v188_v33 = vadd.f32 %v187_v57, %v186_v12  ;;  %v138_v35 = vmul.f32 %v690_v20, %v57_v58  ;;  %v143_v38 = vmul.f32 %v695_v21, %v62_v10  ;;  %v50_v5 = vld [vmem:[%s1104_s0 + $0xb0] sm:$0xff] }
  0x31   :  { %v228_v22 = vsel %vm154_vm0, %v128_v4, 0.0  ;;  %v348_v40 = vadd.f32 %v347_v9, %v346_v28  ;;  %v148_v32 = vmul.f32 %v704_v24, %v67_v62  ;;  %v280_v14 = vmul.f32 %v733_v43, %v32_v42 }
  0x32   :  { %v227_v41 = vadd.f32 %v226_v27, %v225_v23  ;;  %535 = vmatmul.msk.f32.gmra.mxu0 %vm154_vm0, %v188_v33  ;;  %v230_v26 = vsel %vm154_vm0, %v133_v11, 0.0  ;;  %v285_v47 = vmul.f32 %v738_v44, %v37_v18  ;;  %v290_v48 = vmul.f32 %v743_v45, %v42_v39 }
  0x33   :  { %v295_v37 = vmul.f32 %v748_v46, %v47_v55  ;;  %v350_v52 = vadd.f32 %v349_v30, %v348_v40  ;;  %v353_v56 = vsel %vm154_vm0, %v317_v6, 0.0  ;;  %v153_v59 = vmul.f32 %v709_v25, %v72_v34  ;;  %v30_v55 = vld [vmem:[%s1104_s0 + $0x10] sm:$0xff]  ;;  %v60_v40 = vld [vmem:[%s1104_s0 + $0x100] sm:$0xff] }
  0x34   :  { %v229_v60 = vadd.f32 %v228_v22, %v227_v41  ;;  %v232_v63 = vsel %vm154_vm0, %v138_v35, 0.0  ;;  %v300_v42 = vmul.f32 %v754_v49, %v52_v1  ;;  %v389_v29 = vsel %vm154_vm0, %v280_v14, 0.0  ;;  %v40_v1 = vld [vmem:[%s1104_s0 + $0x60] sm:$0xff] }
  0x35   :  { %v390_v36 = vsel %vm154_vm0, %v285_v47, 0.0  ;;  %v352_v51 = vadd.f32 %v351_v31, %v350_v52  ;;  %v392_v39 = vsel %vm154_vm0, %v290_v48, 0.0  ;;  %v234_v57 = vsel %vm154_vm0, %v143_v38, 0.0 }
  0x36   :  { %v231_v18 = vadd.f32 %v230_v26, %v229_v60  ;;  %v391_v2 = vadd.f32 %v390_v36, %v389_v29  ;;  %v236_v61 = vsel %vm154_vm0, %v148_v32, 0.0  ;;  %v305_v4 = vmul.f32 %v759_v50, %v57_v58 }
  0x37   :  { %v394_v6 = vsel %vm154_vm0, %v295_v37, 0.0  ;;  %v354_v9 = vadd.f32 %v353_v56, %v352_v51  ;;  %v310_v12 = vmul.f32 %v766_v53, %v62_v10  ;;  %v396_v27 = vsel %vm154_vm0, %v300_v42, 0.0  ;;  %v65_v56 = vld [vmem:[%s1104_s0 + $0x128] sm:$0xff]  ;;  %v70_v51 = vld [vmem:[%s1104_s0 + $0x150] sm:$0xff] }
  0x38   :  { %v233_v11 = vadd.f32 %v232_v63, %v231_v18  ;;  %v393_v8 = vadd.f32 %v392_v39, %v391_v2  ;;  %v111_v28 = vmul.f32 %v659_v13, %v30_v55  ;;  %v116_v58 = vmul.f32 %v667_v15, %v35_v3  ;;  %v55_v13 = vld [vmem:[%s1104_s0 + $0xd8] sm:$0xff] }
  0x39   :  { %v121_v30 = vmul.f32 %v672_v16, %v40_v1  ;;  %540 = vmatmul.msk.f32.gmra.mxu1 %vm154_vm0, %v354_v9  ;;  %v126_v33 = vmul.f32 %v677_v17, %v45_v7  ;;  %v238_v10 = vsel %vm154_vm0, %v153_v59, 0.0  ;;  %v315_v35 = vmul.f32 %v771_v54, %v67_v62 }
  0x3a   :  { %v235_v31 = vadd.f32 %v234_v57, %v233_v11  ;;  %v395_v23 = vadd.f32 %v394_v6, %v393_v8  ;;  %v398_v38 = vsel %vm154_vm0, %v305_v4, 0.0  ;;  %v131_v15 = vmul.f32 %v685_v19, %v50_v5 }
  0x3b   :  { %v189_v17 = vsel %vm154_vm0, %v111_v28, 0.0  ;;  %v190_v32 = vsel %vm154_vm0, %v116_v58, 0.0  ;;  %v320_v62 = vmul.f32 %v788_v0, %v72_v34  ;;  %v400_v41 = vsel %vm154_vm0, %v310_v12, 0.0 }
  0x3c   :  { %v237_v22 = vadd.f32 %v236_v61, %v235_v31  ;;  %v397_v16 = vadd.f32 %v396_v27, %v395_v23  ;;  %v191_v14 = vadd.f32 %v190_v32, %v189_v17  ;;  %v192_v26 = vsel %vm154_vm0, %v121_v30, 0.0 }
  0x3d   :  { %v136_v19 = vmul.f32 %v690_v20, %v55_v13  ;;  %v194_v37 = vsel %vm154_vm0, %v126_v33, 0.0  ;;  %v402_v52 = vsel %vm154_vm0, %v315_v35, 0.0  ;;  %v141_v59 = vmul.f32 %v695_v21, %v60_v40 }
  0x3e   :  { %v239_v47 = vadd.f32 %v238_v10, %v237_v22  ;;  %v399_v48 = vadd.f32 %v398_v38, %v397_v16  ;;  %v193_v34 = vadd.f32 %v192_v26, %v191_v14  ;;  %v278_v60 = vmul.f32 %v733_v43, %v30_v55  ;;  %v571_v22 = vld [vmem:[%s1108_s6] ss:$0 sm:$0xff] }
  0x3f   :  { %v196_v42 = vsel %vm154_vm0, %v131_v15, 0.0  ;;  %v283_v20 = vmul.f32 %v738_v44, %v35_v3  ;;  %v288_v29 = vmul.f32 %v743_v45, %v40_v1  ;;  %v404_v36 = vsel %vm154_vm0, %v320_v62, 0.0 }
  0x40   :  { %538 = vmatmul.msk.f32.gmra.mxu2 %vm154_vm0, %v239_v47  ;;  %v401_v63 = vadd.f32 %v400_v41, %v399_v48  ;;  %v195_v18 = vadd.f32 %v194_v37, %v193_v34  ;;  %v293_v21 = vmul.f32 %v748_v46, %v45_v7  ;;  %v146_v43 = vmul.f32 %v704_v24, %v65_v56 }
  0x41   :  { %v198_v39 = vsel %vm154_vm0, %v136_v19, 0.0  ;;  %v355_v55 = vsel %vm154_vm0, %v278_v60, 0.0  ;;  %v298_v44 = vmul.f32 %v754_v49, %v50_v5  ;;  %v356_v45 = vsel %vm154_vm0, %v283_v20, 0.0 }
  0x42   :  { %v403_v2 = vadd.f32 %v402_v52, %v401_v63  ;;  %v197_v57 = vadd.f32 %v196_v42, %v195_v18  ;;  %v358_v3 = vsel %vm154_vm0, %v288_v29, 0.0  ;;  %v151_v61 = vmul.f32 %v709_v25, %v70_v51 }
  0x43   :  { %v200_v4 = vsel %vm154_vm0, %v141_v59, 0.0  ;;  %v357_v46 = vadd.f32 %v356_v45, %v355_v55  ;;  %v303_v24 = vmul.f32 %v759_v50, %v55_v13  ;;  %v360_v7 = vsel %vm154_vm0, %v293_v21, 0.0 }
  0x44   :  { %v405_v1 = vadd.f32 %v404_v36, %v403_v2  ;;  %v199_v6 = vadd.f32 %v198_v39, %v197_v57  ;;  %v202_v9 = vsel %vm154_vm0, %v146_v43, 0.0  ;;  %v308_v12 = vmul.f32 %v766_v53, %v60_v40 }
  0x45   :  { %v359_v49 = vadd.f32 %v358_v3, %v357_v46  ;;  %v362_v8 = vsel %vm154_vm0, %v298_v44, 0.0  ;;  %v204_v25 = vsel %vm154_vm0, %v151_v61, 0.0  ;;  %v313_v28 = vmul.f32 %v771_v54, %v65_v56  ;;  %v570_v54 = vld [vmem:[%s1107_s5] ss:$0 sm:$0xff] }
  0x46   :  { %543 = vmatmul.msk.f32.gmra.mxu3 %vm154_vm0, %v405_v1  ;;  %v201_v11 = vadd.f32 %v200_v4, %v199_v6  ;;  %v364_v50 = vsel %vm154_vm0, %v303_v24, 0.0  ;;  %v318_v31 = vmul.f32 %v788_v0, %v70_v51  ;;  %v366_v23 = vsel %vm154_vm0, %v308_v12, 0.0 }
  0x47   :  { %v361_v5 = vadd.f32 %v360_v7, %v359_v49  ;;  %v368_v53 = vsel %vm154_vm0, %v313_v28, 0.0 }
  0x48   :  { %v203_v27 = vadd.f32 %v202_v9, %v201_v11  ;;  %v370_v35 = vsel %vm154_vm0, %v318_v31, 0.0 }
  0x49   :  { %v363_v58 = vadd.f32 %v362_v8, %v361_v5 }
  0x4a   :  { %v205_v30 = vadd.f32 %v204_v25, %v203_v27 }
  0x4b   :  { %v365_v33 = vadd.f32 %v364_v50, %v363_v58 }
  0x4c   :  { %536 = vmatmul.msk.f32.gmra.mxu0 %vm154_vm0, %v205_v30 }
  0x4d   :  { %v367_v10 = vadd.f32 %v366_v23, %v365_v33 }
  0x4f   :  { %v369_v38 = vadd.f32 %v368_v53, %v367_v10 }
  0x51   :  { %v371_v13 = vadd.f32 %v370_v35, %v369_v38 }
  0x53   :  { %541 = vmatmul.msk.f32.gmra.mxu1 %vm154_vm0, %v371_v13 }
  0x98   :  { %v446_v15 = vpop.f32.mrf.mxu0 }
  0x99   :  { %v447_v0 = vadd.f32 %v570_v54, %v446_v15 }
  0x9b   :  { %461 = vst.msk [vmem:[%s1109_s7] sm:$0xff] %vm154_vm0, %v447_v0 }
  0x9d   :  { %v506_v16 = vpop.f32.mrf.mxu1 }
  0x9e   :  { %v507_v40 = vadd.f32 %v571_v22, %v506_v16 }
  0xa0   :  { %521 = vst.msk [vmem:[%s1110_s8] sm:$0xff] %vm154_vm0, %v507_v40 }
  0xa8   :  { %v455_v17 = vpop.f32.mrf.mxu2 }
  0xa9   :  { %v456_v32 = vadd.f32 %v570_v54, %v455_v17 }
  0xab   :  { %464 = vst.msk [vmem:[%s1109_s7 + $0x18] sm:$0xff] %vm154_vm0, %v456_v32 }
  0xaf   :  { %v515_v62 = vpop.f32.mrf.mxu3  ;;  %v449_v41 = vpop.f32.mrf.mxu0 }
  0xb0   :  { %v516_v14 = vadd.f32 %v571_v22, %v515_v62  ;;  %v450_v26 = vadd.f32 %v570_v54, %v449_v41 }
  0xb2   :  { %524 = vst.msk [vmem:[%s1110_s8 + $0x18] sm:$0xff] %vm154_vm0, %v516_v14 }
  0xb3   :  { %462 = vst.msk [vmem:[%s1109_s7 + $0x8] sm:$0xff] %vm154_vm0, %v450_v26 }
  0xb6   :  { %v509_v47 = vpop.f32.mrf.mxu1 }
  0xb7   :  { %v510_v48 = vadd.f32 %v571_v22, %v509_v47 }
  0xb9   :  { %522 = vst.msk [vmem:[%s1110_s8 + $0x8] sm:$0xff] %vm154_vm0, %v510_v48 }
  0xc3   :  { %v458_v19 = vpop.f32.mrf.mxu2 }
  0xc4   :  { %v459_v37 = vadd.f32 %v570_v54, %v458_v19 }
  0xc6   :  { %465 = vst.msk [vmem:[%s1109_s7 + $0x20] sm:$0xff] %vm154_vm0, %v459_v37 }
  0xc9   :  { %v518_v52 = vpop.f32.mrf.mxu3  ;;  %v452_v56 = vpop.f32.mrf.mxu0 }
  0xca   :  { %v519_v59 = vadd.f32 %v571_v22, %v518_v52  ;;  %v453_v34 = vadd.f32 %v570_v54, %v452_v56 }
  0xcc   :  { %525 = vst.msk [vmem:[%s1110_s8 + $0x20] sm:$0xff] %vm154_vm0, %v519_v59 }
  0xcd   :  { %463 = vst.msk [vmem:[%s1109_s7 + $0x10] sm:$0xff] %vm154_vm0, %v453_v34 }
  0xd0   :  { %v512_v60 = vpop.f32.mrf.mxu1 }
  0xd1   :  { %v513_v63 = vadd.f32 %v571_v22, %v512_v60 }
  0xd3   :  { %523 = vst.msk [vmem:[%s1110_s8 + $0x10] sm:$0xff] %vm154_vm0, %v513_v63 }

// kernel: block_forward.6
= control target key start
LH: loop header
LB: loop body
LE: loop exit
PB: predicated region body
PF: predicated region fallthrough
CT: control target
= control target key end

     0   :  { %s1253_s15 = smov 0   ;;  %s1255_s16 = smov 0   ;;  %s1841_s0 = inlined_call_operand.vmem [shape: f32[9,160,32], index: 0, kind: input, shape index: {}]   ;;  %s1842_s1 = inlined_call_operand.vmem [shape: f32[9,1,32], index: 1, kind: input, shape index: {}]   ;;  %s1843_s2 = inlined_call_operand.vmem [shape: f32[32,32], index: 2, kind: input, shape index: {}]   ;;  %s1844_s3 = inlined_call_operand.vmem [shape: f32[1,32], index: 3, kind: input, shape index: {}]   ;;  %s1845_s4 = inlined_call_operand.vmem [shape: f32[160,32], index: 4, kind: output, shape index: {}]  }
   0x1   :  { %s1257_s17 = smov 0  }
   0x2 LB: > { %s1136_s18 = sadd.s32 4294967295, %s1226_s17   ;;  %s1270_s19 = sadd.s32 1, %s1226_s17   ;;  %s1226_s17 = sphi %s1257_s17, %s1848_s17   ;;  %s1222_s16 = sphi %s1255_s16, %s1847_s16   ;;  %s1218_s15 = sphi %s1253_s15, %s1846_s15  }
   0x3   : > { %s18_s20 = ssub.s32 %s1226_s17, %s1270_s19  ;;  %s21_s21 = sadd.s32 1, %s1222_s16 }
   0x4   : > { %p19_p0 = scmp.eq.s32.totalorder %s18_s20, 0  ;;  %p28_p1 = scmp.ne.s32.totalorder %s1222_s16, %s1218_s15 }
   0x5   : > { %p29_p2 = scmp.eq.s32.totalorder %s1226_s17, 0  ;;  %p1139_p4 = scmp.ge.s32.totalorder %s1226_s17, 2 }
   0x6   : > { %s1279_s22 = scalar_select %p19_p0, %s1222_s16, %s21_s21  }
   0x7   : > { %p30_p3 = por %p29_p2, %p28_p1  ;;  %152 = sbr.rel (%p1139_p4) target bundleno = 107 (0x6b), region = 28 }
   0xc   : > { %155 = sbr.rel (!%p30_p3) target bundleno = 107 (0x6b), region = 32  ;;  %s157_s23 = sand.u32 (%p30_p3), 1, %s1222_s16  }
   0xd   : > { %s1155_s24 = smul.u32 (%p30_p3), 80, %s1226_s17 }
   0xe   : > { %s1168_s25 = smul.u32 (%p30_p3), 720, %s157_s23 }
   0xf   : > { %s1287_s28 = scalar_lea.vmem (%p30_p3), %s1841_s0, %s1155_s24 }
  0x10   : > { %v369_v0 = vld [vmem:[%s1287_s28] sm:$0xff] (%p30_p3)  ;;  %v371_v1 = vld [vmem:[%s1287_s28 + $0x8] sm:$0xff] (%p30_p3)  ;;  %v373_v2 = vld [vmem:[%s1287_s28 + $0x10] sm:$0xff] (%p30_p3)  ;;  %s1292_s29 = scalar_lea.vmem (%p30_p3), [#allocation2], %s1168_s25 }
  0x11   : > { %370 = vst [vmem:[%s1292_s29] sm:$0xff] %v369_v0  ;;  %v375_v3 = vld [vmem:[%s1287_s28 + $0x18] sm:$0xff]  ;;  %v377_v4 = vld [vmem:[%s1287_s28 + $0x20] sm:$0xff]  ;;  %v379_v5 = vld [vmem:[%s1287_s28 + $0x28] sm:$0xff] }
  0x12   : > { %372 = vst [vmem:[%s1292_s29 + $0x8] sm:$0xff] %v371_v1  ;;  %v381_v6 = vld [vmem:[%s1287_s28 + $0x30] sm:$0xff]  ;;  %v383_v7 = vld [vmem:[%s1287_s28 + $0x38] sm:$0xff]  ;;  %v385_v8 = vld [vmem:[%s1287_s28 + $0x40] sm:$0xff] }
  0x13   : > { %374 = vst [vmem:[%s1292_s29 + $0x10] sm:$0xff] %v373_v2  ;;  %v387_v9 = vld [vmem:[%s1287_s28 + $0x48] sm:$0xff]  ;;  %v389_v10 = vld [vmem:[%s1287_s28 + $0xa0] sm:$0xff]  ;;  %v393_v12 = vld [vmem:[%s1287_s28 + $0xb0] sm:$0xff] }
  0x14   : > { %376 = vst [vmem:[%s1292_s29 + $0x18] sm:$0xff] %v375_v3  ;;  %v391_v11 = vld [vmem:[%s1287_s28 + $0xa8] sm:$0xff]  ;;  %v395_v13 = vld [vmem:[%s1287_s28 + $0xb8] sm:$0xff]  ;;  %v397_v14 = vld [vmem:[%s1287_s28 + $0xc0] sm:$0xff] }
  0x15   : > { %378 = vst [vmem:[%s1292_s29 + $0x20] sm:$0xff] %v377_v4  ;;  %v399_v15 = vld [vmem:[%s1287_s28 + $0xc8] sm:$0xff]  ;;  %v401_v16 = vld [vmem:[%s1287_s28 + $0xd0] sm:$0xff]  ;;  %v403_v17 = vld [vmem:[%s1287_s28 + $0xd8] sm:$0xff] }
  0x16   : > { %380 = vst [vmem:[%s1292_s29 + $0x28] sm:$0xff] %v379_v5  ;;  %v405_v18 = vld [vmem:[%s1287_s28 + $0xe0] sm:$0xff]  ;;  %v407_v19 = vld [vmem:[%s1287_s28 + $0xe8] sm:$0xff]  ;;  %v413_v22 = vld [vmem:[%s1287_s28 + $0x150] sm:$0xff] }
  0x17   : > { %382 = vst [vmem:[%s1292_s29 + $0x30] sm:$0xff] %v381_v6  ;;  %v409_v20 = vld [vmem:[%s1287_s28 + $0x140] sm:$0xff]  ;;  %v411_v21 = vld [vmem:[%s1287_s28 + $0x148] sm:$0xff]  ;;  %v415_v23 = vld [vmem:[%s1287_s28 + $0x158] sm:$0xff] }
  0x18   : > { %384 = vst [vmem:[%s1292_s29 + $0x38] sm:$0xff] %v383_v7  ;;  %v417_v24 = vld [vmem:[%s1287_s28 + $0x160] sm:$0xff]  ;;  %v419_v25 = vld [vmem:[%s1287_s28 + $0x168] sm:$0xff]  ;;  %v421_v26 = vld [vmem:[%s1287_s28 + $0x170] sm:$0xff] }
  0x19   : > { %386 = vst [vmem:[%s1292_s29 + $0x40] sm:$0xff] %v385_v8  ;;  %v423_v27 = vld [vmem:[%s1287_s28 + $0x178] sm:$0xff]  ;;  %v425_v28 = vld [vmem:[%s1287_s28 + $0x180] sm:$0xff]  ;;  %v427_v29 = vld [vmem:[%s1287_s28 + $0x188] sm:$0xff] }
  0x1a   : > { %388 = vst [vmem:[%s1292_s29 + $0x48] sm:$0xff] %v387_v9  ;;  %v429_v30 = vld [vmem:[%s1287_s28 + $0x1e0] sm:$0xff]  ;;  %v431_v31 = vld [vmem:[%s1287_s28 + $0x1e8] sm:$0xff]  ;;  %v433_v32 = vld [vmem:[%s1287_s28 + $0x1f0] sm:$0xff] }
  0x1b   : > { %390 = vst [vmem:[%s1292_s29 + $0x50] sm:$0xff] %v389_v10  ;;  %v435_v33 = vld [vmem:[%s1287_s28 + $0x1f8] sm:$0xff]  ;;  %v437_v34 = vld [vmem:[%s1287_s28 + $0x200] sm:$0xff]  ;;  %v439_v35 = vld [vmem:[%s1287_s28 + $0x208] sm:$0xff] }
  0x1c   : > { %392 = vst [vmem:[%s1292_s29 + $0x58] sm:$0xff] %v391_v11  ;;  %v441_v36 = vld [vmem:[%s1287_s28 + $0x210] sm:$0xff]  ;;  %v443_v37 = vld [vmem:[%s1287_s28 + $0x218] sm:$0xff]  ;;  %v445_v38 = vld [vmem:[%s1287_s28 + $0x220] sm:$0xff] }
  0x1d   : > { %394 = vst [vmem:[%s1292_s29 + $0x60] sm:$0xff] %v393_v12  ;;  %v447_v39 = vld [vmem:[%s1287_s28 + $0x228] sm:$0xff]  ;;  %v449_v40 = vld [vmem:[%s1287_s28 + $0x280] sm:$0xff]  ;;  %v453_v42 = vld [vmem:[%s1287_s28 + $0x290] sm:$0xff] }
  0x1e   : > { %396 = vst [vmem:[%s1292_s29 + $0x68] sm:$0xff] %v395_v13  ;;  %v451_v41 = vld [vmem:[%s1287_s28 + $0x288] sm:$0xff]  ;;  %v455_v43 = vld [vmem:[%s1287_s28 + $0x298] sm:$0xff]  ;;  %v457_v44 = vld [vmem:[%s1287_s28 + $0x2a0] sm:$0xff] }
  0x1f   : > { %398 = vst [vmem:[%s1292_s29 + $0x70] sm:$0xff] %v397_v14  ;;  %v459_v45 = vld [vmem:[%s1287_s28 + $0x2a8] sm:$0xff]  ;;  %v461_v46 = vld [vmem:[%s1287_s28 + $0x2b0] sm:$0xff]  ;;  %v463_v47 = vld [vmem:[%s1287_s28 + $0x2b8] sm:$0xff] }
  0x20   : > { %400 = vst [vmem:[%s1292_s29 + $0x78] sm:$0xff] %v399_v15  ;;  %v465_v48 = vld [vmem:[%s1287_s28 + $0x2c0] sm:$0xff]  ;;  %v467_v49 = vld [vmem:[%s1287_s28 + $0x2c8] sm:$0xff]  ;;  %v473_v52 = vld [vmem:[%s1287_s28 + $0x330] sm:$0xff] }
  0x21   : > { %402 = vst [vmem:[%s1292_s29 + $0x80] sm:$0xff] %v401_v16  ;;  %v469_v50 = vld [vmem:[%s1287_s28 + $0x320] sm:$0xff]  ;;  %v471_v51 = vld [vmem:[%s1287_s28 + $0x328] sm:$0xff]  ;;  %v475_v53 = vld [vmem:[%s1287_s28 + $0x338] sm:$0xff] }
  0x22   : > { %404 = vst [vmem:[%s1292_s29 + $0x88] sm:$0xff] %v403_v17  ;;  %v477_v54 = vld [vmem:[%s1287_s28 + $0x340] sm:$0xff]  ;;  %v479_v55 = vld [vmem:[%s1287_s28 + $0x348] sm:$0xff]  ;;  %v481_v56 = vld [vmem:[%s1287_s28 + $0x350] sm:$0xff] }
  0x23   : > { %406 = vst [vmem:[%s1292_s29 + $0x90] sm:$0xff] %v405_v18  ;;  %v483_v57 = vld [vmem:[%s1287_s28 + $0x358] sm:$0xff]  ;;  %v485_v58 = vld [vmem:[%s1287_s28 + $0x360] sm:$0xff]  ;;  %v487_v59 = vld [vmem:[%s1287_s28 + $0x368] sm:$0xff] }
  0x24   : > { %408 = vst [vmem:[%s1292_s29 + $0x98] sm:$0xff] %v407_v19  ;;  %v489_v60 = vld [vmem:[%s1287_s28 + $0x3c0] sm:$0xff]  ;;  %v491_v61 = vld [vmem:[%s1287_s28 + $0x3c8] sm:$0xff]  ;;  %v493_v62 = vld [vmem:[%s1287_s28 + $0x3d0] sm:$0xff] }
  0x25   : > { %410 = vst [vmem:[%s1292_s29 + $0xa0] sm:$0xff] %v409_v20  ;;  %v495_v63 = vld [vmem:[%s1287_s28 + $0x3d8] sm:$0xff]  ;;  %v497_v0 = vld [vmem:[%s1287_s28 + $0x3e0] sm:$0xff]  ;;  %v499_v1 = vld [vmem:[%s1287_s28 + $0x3e8] sm:$0xff] }
  0x26   : > { %412 = vst [vmem:[%s1292_s29 + $0xa8] sm:$0xff] %v411_v21  ;;  %v501_v2 = vld [vmem:[%s1287_s28 + $0x3f0] sm:$0xff]  ;;  %v503_v3 = vld [vmem:[%s1287_s28 + $0x3f8] sm:$0xff]  ;;  %v505_v4 = vld [vmem:[%s1287_s28 + $0x400] sm:$0xff] }
  0x27   : > { %414 = vst [vmem:[%s1292_s29 + $0xb0] sm:$0xff] %v413_v22  ;;  %v507_v5 = vld [vmem:[%s1287_s28 + $0x408] sm:$0xff]  ;;  %v509_v6 = vld [vmem:[%s1287_s28 + $0x460] sm:$0xff]  ;;  %v513_v8 = vld [vmem:[%s1287_s28 + $0x470] sm:$0xff] }
  0x28   : > { %416 = vst [vmem:[%s1292_s29 + $0xb8] sm:$0xff] %v415_v23  ;;  %v511_v7 = vld [vmem:[%s1287_s28 + $0x468] sm:$0xff]  ;;  %v515_v9 = vld [vmem:[%s1287_s28 + $0x478] sm:$0xff]  ;;  %v517_v10 = vld [vmem:[%s1287_s28 + $0x480] sm:$0xff] }
  0x29   : > { %418 = vst [vmem:[%s1292_s29 + $0xc0] sm:$0xff] %v417_v24  ;;  %v519_v11 = vld [vmem:[%s1287_s28 + $0x488] sm:$0xff]  ;;  %v521_v12 = vld [vmem:[%s1287_s28 + $0x490] sm:$0xff]  ;;  %v523_v13 = vld [vmem:[%s1287_s28 + $0x498] sm:$0xff] }
  0x2a   : > { %420 = vst [vmem:[%s1292_s29 + $0xc8] sm:$0xff] %v419_v25  ;;  %v525_v14 = vld [vmem:[%s1287_s28 + $0x4a0] sm:$0xff]  ;;  %v527_v15 = vld [vmem:[%s1287_s28 + $0x4a8] sm:$0xff]  ;;  %v533_v18 = vld [vmem:[%s1287_s28 + $0x510] sm:$0xff] }
  0x2b   : > { %422 = vst [vmem:[%s1292_s29 + $0xd0] sm:$0xff] %v421_v26  ;;  %v529_v16 = vld [vmem:[%s1287_s28 + $0x500] sm:$0xff]  ;;  %v531_v17 = vld [vmem:[%s1287_s28 + $0x508] sm:$0xff]  ;;  %v535_v19 = vld [vmem:[%s1287_s28 + $0x518] sm:$0xff] }
  0x2c   : > { %424 = vst [vmem:[%s1292_s29 + $0xd8] sm:$0xff] %v423_v27  ;;  %v537_v20 = vld [vmem:[%s1287_s28 + $0x520] sm:$0xff]  ;;  %v539_v21 = vld [vmem:[%s1287_s28 + $0x528] sm:$0xff]  ;;  %v541_v22 = vld [vmem:[%s1287_s28 + $0x530] sm:$0xff] }
  0x2d   : > { %426 = vst [vmem:[%s1292_s29 + $0xe0] sm:$0xff] %v425_v28  ;;  %v543_v23 = vld [vmem:[%s1287_s28 + $0x538] sm:$0xff]  ;;  %v545_v24 = vld [vmem:[%s1287_s28 + $0x540] sm:$0xff]  ;;  %v547_v25 = vld [vmem:[%s1287_s28 + $0x548] sm:$0xff] }
  0x2e   : > { %428 = vst [vmem:[%s1292_s29 + $0xe8] sm:$0xff] %v427_v29 }
  0x2f   : > { %430 = vst [vmem:[%s1292_s29 + $0xf0] sm:$0xff] %v429_v30 }
  0x30   : > { %432 = vst [vmem:[%s1292_s29 + $0xf8] sm:$0xff] %v431_v31 }
  0x31   : > { %434 = vst [vmem:[%s1292_s29 + $0x100] sm:$0xff] %v433_v32 }
  0x32   : > { %436 = vst [vmem:[%s1292_s29 + $0x108] sm:$0xff] %v435_v33 }
  0x33   : > { %438 = vst [vmem:[%s1292_s29 + $0x110] sm:$0xff] %v437_v34 }
  0x34   : > { %440 = vst [vmem:[%s1292_s29 + $0x118] sm:$0xff] %v439_v35 }
  0x35   : > { %442 = vst [vmem:[%s1292_s29 + $0x120] sm:$0xff] %v441_v36 }
  0x36   : > { %444 = vst [vmem:[%s1292_s29 + $0x128] sm:$0xff] %v443_v37 }
  0x37   : > { %446 = vst [vmem:[%s1292_s29 + $0x130] sm:$0xff] %v445_v38 }
  0x38   : > { %448 = vst [vmem:[%s1292_s29 + $0x138] sm:$0xff] %v447_v39 }
  0x39   : > { %450 = vst [vmem:[%s1292_s29 + $0x140] sm:$0xff] %v449_v40 }
  0x3a   : > { %452 = vst [vmem:[%s1292_s29 + $0x148] sm:$0xff] %v451_v41 }
  0x3b   : > { %454 = vst [vmem:[%s1292_s29 + $0x150] sm:$0xff] %v453_v42 }
  0x3c   : > { %456 = vst [vmem:[%s1292_s29 + $0x158] sm:$0xff] %v455_v43 }
  0x3d   : > { %458 = vst [vmem:[%s1292_s29 + $0x160] sm:$0xff] %v457_v44 }
  0x3e   : > { %460 = vst [vmem:[%s1292_s29 + $0x168] sm:$0xff] %v459_v45 }
  0x3f   : > { %462 = vst [vmem:[%s1292_s29 + $0x170] sm:$0xff] %v461_v46 }
  0x40   : > { %464 = vst [vmem:[%s1292_s29 + $0x178] sm:$0xff] %v463_v47 }
  0x41   : > { %466 = vst [vmem:[%s1292_s29 + $0x180] sm:$0xff] %v465_v48 }
  0x42   : > { %468 = vst [vmem:[%s1292_s29 + $0x188] sm:$0xff] %v467_v49 }
  0x43   : > { %470 = vst [vmem:[%s1292_s29 + $0x190] sm:$0xff] %v469_v50 }
  0x44   : > { %472 = vst [vmem:[%s1292_s29 + $0x198] sm:$0xff] %v471_v51 }
  0x45   : > { %474 = vst [vmem:[%s1292_s29 + $0x1a0] sm:$0xff] %v473_v52 }
  0x46   : > { %476 = vst [vmem:[%s1292_s29 + $0x1a8] sm:$0xff] %v475_v53 }
  0x47   : > { %478 = vst [vmem:[%s1292_s29 + $0x1b0] sm:$0xff] %v477_v54 }
  0x48   : > { %480 = vst [vmem:[%s1292_s29 + $0x1b8] sm:$0xff] %v479_v55 }
  0x49   : > { %482 = vst [vmem:[%s1292_s29 + $0x1c0] sm:$0xff] %v481_v56 }
  0x4a   : > { %484 = vst [vmem:[%s1292_s29 + $0x1c8] sm:$0xff] %v483_v57 }
  0x4b   : > { %486 = vst [vmem:[%s1292_s29 + $0x1d0] sm:$0xff] %v485_v58 }
  0x4c   : > { %488 = vst [vmem:[%s1292_s29 + $0x1d8] sm:$0xff] %v487_v59 }
  0x4d   : > { %490 = vst [vmem:[%s1292_s29 + $0x1e0] sm:$0xff] %v489_v60 }
  0x4e   : > { %492 = vst [vmem:[%s1292_s29 + $0x1e8] sm:$0xff] %v491_v61 }
  0x4f   : > { %494 = vst [vmem:[%s1292_s29 + $0x1f0] sm:$0xff] %v493_v62 }
  0x50   : > { %496 = vst [vmem:[%s1292_s29 + $0x1f8] sm:$0xff] %v495_v63 }
  0x51   : > { %498 = vst [vmem:[%s1292_s29 + $0x200] sm:$0xff] %v497_v0 }
  0x52   : > { %500 = vst [vmem:[%s1292_s29 + $0x208] sm:$0xff] %v499_v1 }
  0x53   : > { %502 = vst [vmem:[%s1292_s29 + $0x210] sm:$0xff] %v501_v2 }
  0x54   : > { %504 = vst [vmem:[%s1292_s29 + $0x218] sm:$0xff] %v503_v3 }
  0x55   : > { %506 = vst [vmem:[%s1292_s29 + $0x220] sm:$0xff] %v505_v4 }
  0x56   : > { %508 = vst [vmem:[%s1292_s29 + $0x228] sm:$0xff] %v507_v5 }
  0x57   : > { %510 = vst [vmem:[%s1292_s29 + $0x230] sm:$0xff] %v509_v6 }
  0x58   : > { %512 = vst [vmem:[%s1292_s29 + $0x238] sm:$0xff] %v511_v7 }
  0x59   : > { %514 = vst [vmem:[%s1292_s29 + $0x240] sm:$0xff] %v513_v8 }
  0x5a   : > { %516 = vst [vmem:[%s1292_s29 + $0x248] sm:$0xff] %v515_v9 }
  0x5b   : > { %518 = vst [vmem:[%s1292_s29 + $0x250] sm:$0xff] %v517_v10 }
  0x5c   : > { %520 = vst [vmem:[%s1292_s29 + $0x258] sm:$0xff] %v519_v11 }
  0x5d   : > { %522 = vst [vmem:[%s1292_s29 + $0x260] sm:$0xff] %v521_v12 }
  0x5e   : > { %524 = vst [vmem:[%s1292_s29 + $0x268] sm:$0xff] %v523_v13 }
  0x5f   : > { %526 = vst [vmem:[%s1292_s29 + $0x270] sm:$0xff] %v525_v14 }
  0x60   : > { %528 = vst [vmem:[%s1292_s29 + $0x278] sm:$0xff] %v527_v15 }
  0x61   : > { %530 = vst [vmem:[%s1292_s29 + $0x280] sm:$0xff] %v529_v16 }
  0x62   : > { %532 = vst [vmem:[%s1292_s29 + $0x288] sm:$0xff] %v531_v17 }
  0x63   : > { %534 = vst [vmem:[%s1292_s29 + $0x290] sm:$0xff] %v533_v18 }
  0x64   : > { %536 = vst [vmem:[%s1292_s29 + $0x298] sm:$0xff] %v535_v19 }
  0x65   : > { %538 = vst [vmem:[%s1292_s29 + $0x2a0] sm:$0xff] %v537_v20 }
  0x66   : > { %540 = vst [vmem:[%s1292_s29 + $0x2a8] sm:$0xff] %v539_v21 }
  0x67   : > { %542 = vst [vmem:[%s1292_s29 + $0x2b0] sm:$0xff] %v541_v22 }
  0x68   : > { %544 = vst [vmem:[%s1292_s29 + $0x2b8] sm:$0xff] %v543_v23 }
  0x69   : > { %546 = vst [vmem:[%s1292_s29 + $0x2c0] sm:$0xff] %v545_v24 }
  0x6a   : > { %548 = vst [vmem:[%s1292_s29 + $0x2c8] sm:$0xff] %v547_v25 }
  0x6b PF: > { %p1141_p5 = scmp.ge.s32.totalorder %s1226_s17, 1  ;;  %p553_p6 = scmp.lt.s32.totalorder %s1226_s17, 3 }
  0x6d   : > { %p554_p7 = pnand %p1141_p5, %p553_p6 }
  0x6e   : > { %s560_s8 = sand.u32 (!%p554_p7), 1, %s1218_s15   ;;  %s586_s12 = smul.u32 (!%p554_p7), 10, %s1136_s18 }
  0x6f   : > { %557 = sbr.rel (%p554_p7) target bundleno = 324 (0x144), region = 70 }
  0x70   : > { %s1169_s11 = smul.u32 (!%p554_p7), 720, %s560_s8  ;;  %p587_p8 = scmp.lt.s32.totalorder (!%p554_p7), %s586_s12, 19 }
  0x72   : > { %s1486_s14 = scalar_lea.vmem (!%p554_p7), [#allocation2], %s1169_s11 }
  0x74   : > { %v982_v26 = vld [vmem:[%s1843_s2 + $0x18] sm:$0xff]  ;;  %v981_v27 = vld [vmem:[%s1843_s2 + $0x10] sm:$0xff]  ;;  %v980_v28 = vld [vmem:[%s1843_s2 + $0x8] sm:$0xff]  ;;  %vm808_vm0 = vcmask 261120   ;;  %s1850_s12 = smov (!%p587_p8, %s586_s12), 19 }
  0x75   : > { %1157 = vmatpush.msra.mxu2 %v982_v26  ;;  %1156 = vmatpush.msra.mxu1 %v982_v26  ;;  %v979_v29 = vld [vmem:[%s1843_s2] sm:$0xff]  ;;  %v597_v30 = vld [vmem:[%s1486_s14 + $0x28] sm:$0xff]  ;;  %v607_v31 = vld [vmem:[%s1486_s14 + $0x78] sm:$0xff]  ;;  %s1142_s13 = sshll.u32 %s1850_s12, 3 }
  0x76   : > { %1158 = vmatpush.msra.mxu3 %v982_v26  ;;  %1029 = vmatpush.msra.mxu0 %v982_v26  ;;  %v617_v32 = vld [vmem:[%s1486_s14 + $0xc8] sm:$0xff]  ;;  %v627_v33 = vld [vmem:[%s1486_s14 + $0x118] sm:$0xff]  ;;  %v1498_v37 = vld [vmem:[%s1842_s1] ss:$0 sm:$0xff]  ;;  %s590_s23 = scalar_lea.vmem %s1845_s4, %s1142_s13 }
  0x77   : > { %1160 = vmatpush.msra.mxu2 %v981_v27  ;;  %1159 = vmatpush.msra.mxu1 %v981_v27  ;;  %v637_v34 = vld [vmem:[%s1486_s14 + $0x168] sm:$0xff]  ;;  %v647_v35 = vld [vmem:[%s1486_s14 + $0x1b8] sm:$0xff]  ;;  %v1503_v38 = vld [vmem:[%s1842_s1 + $0x1] ss:$0 sm:$0xff]  ;;  %v723_v44 = vmul.f32 %v1498_v37, %v597_v30 }
  0x78   : > { %1161 = vmatpush.msra.mxu3 %v981_v27  ;;  %1030 = vmatpush.msra.mxu0 %v981_v27  ;;  %v657_v36 = vld [vmem:[%s1486_s14 + $0x208] sm:$0xff]  ;;  %v1508_v39 = vld [vmem:[%s1842_s1 + $0x2] ss:$0 sm:$0xff]  ;;  %v1513_v40 = vld [vmem:[%s1842_s1 + $0x3] ss:$0 sm:$0xff]  ;;  %v733_v47 = vmul.f32 %v1503_v38, %v607_v31 }
  0x79   : > { %1163 = vmatpush.msra.mxu2 %v980_v28  ;;  %1162 = vmatpush.msra.mxu1 %v980_v28  ;;  %v1518_v41 = vld [vmem:[%s1842_s1 + $0x4] ss:$0 sm:$0xff]  ;;  %v1523_v42 = vld [vmem:[%s1842_s1 + $0x5] ss:$0 sm:$0xff]  ;;  %v1528_v43 = vld [vmem:[%s1842_s1 + $0x6] ss:$0 sm:$0xff]  ;;  %v743_v48 = vmul.f32 %v1508_v39, %v617_v32  ;;  %v753_v49 = vmul.f32 %v1513_v40, %v627_v33 }
  0x7a   : > { %1164 = vmatpush.msra.mxu3 %v980_v28  ;;  %1031 = vmatpush.msra.mxu0 %v980_v28  ;;  %v1534_v45 = vld [vmem:[%s1842_s1 + $0x7] ss:$0 sm:$0xff]  ;;  %v1539_v46 = vld [vmem:[%s1842_s1 + $0x8] ss:$0 sm:$0xff]  ;;  %v763_v52 = vmul.f32 %v1518_v41, %v637_v34  ;;  %v894_v53 = vsel %vm808_vm0, %v723_v44, 0.0  ;;  %v773_v55 = vmul.f32 %v1523_v42, %v647_v35  ;;  %v783_v56 = vmul.f32 %v1528_v43, %v657_v36 }
  0x7b   : > { %1166 = vmatpush.msra.mxu2 %v979_v29  ;;  %1165 = vmatpush.msra.mxu1 %v979_v29  ;;  %v667_v50 = vld [vmem:[%s1486_s14 + $0x258] sm:$0xff]  ;;  %v677_v51 = vld [vmem:[%s1486_s14 + $0x2a8] sm:$0xff]  ;;  %v594_v54 = vld [vmem:[%s1486_s14 + $0x10] sm:$0xff]  ;;  %v895_v57 = vsel %vm808_vm0, %v733_v47, 0.0  ;;  %v897_v58 = vsel %vm808_vm0, %v743_v48, 0.0  ;;  %v899_v1 = vsel %vm808_vm0, %v753_v49, 0.0 }
  0x7c   : > { %1167 = vmatpush.msra.mxu3 %v979_v29  ;;  %1032 = vmatpush.msra.mxu0 %v979_v29  ;;  %v604_v59 = vld [vmem:[%s1486_s14 + $0x60] sm:$0xff]  ;;  %v614_v60 = vld [vmem:[%s1486_s14 + $0xb0] sm:$0xff]  ;;  %v896_v62 = vadd.f32 %v895_v57, %v894_v53  ;;  %v793_v63 = vmul.f32 %v1534_v45, %v667_v50  ;;  %v803_v0 = vmul.f32 %v1539_v46, %v677_v51  ;;  %v901_v9 = vsel %vm808_vm0, %v763_v52, 0.0 }
  0x7d   : > { %v624_v61 = vld [vmem:[%s1486_s14 + $0x100] sm:$0xff]  ;;  %v634_v2 = vld [vmem:[%s1486_s14 + $0x150] sm:$0xff]  ;;  %v720_v3 = vmul.f32 %v1498_v37, %v594_v54  ;;  %v730_v6 = vmul.f32 %v1503_v38, %v604_v59  ;;  %v740_v7 = vmul.f32 %v1508_v39, %v614_v60  ;;  %v903_v10 = vsel %vm808_vm0, %v773_v55, 0.0 }
  0x7e   : > { %v898_v4 = vadd.f32 %v897_v58, %v896_v62  ;;  %v644_v5 = vld [vmem:[%s1486_s14 + $0x1a0] sm:$0xff]  ;;  %v750_v8 = vmul.f32 %v1513_v40, %v624_v61  ;;  %v905_v11 = vsel %vm808_vm0, %v783_v56, 0.0  ;;  %v654_v12 = vld [vmem:[%s1486_s14 + $0x1f0] sm:$0xff]  ;;  %v760_v15 = vmul.f32 %v1518_v41, %v634_v2 }
  0x7f   : > { %v664_v14 = vld [vmem:[%s1486_s14 + $0x240] sm:$0xff]  ;;  %v843_v16 = vsel %vm808_vm0, %v720_v3, 0.0  ;;  %v844_v17 = vsel %vm808_vm0, %v730_v6, 0.0  ;;  %v598_v18 = vld [vmem:[%s1486_s14 + $0x30] sm:$0xff]  ;;  %v907_v20 = vsel %vm808_vm0, %v793_v63, 0.0  ;;  %v770_v21 = vmul.f32 %v1523_v42, %v644_v5 }
  0x80   : > { %v900_v13 = vadd.f32 %v899_v1, %v898_v4  ;;  %v608_v19 = vld [vmem:[%s1486_s14 + $0x80] sm:$0xff]  ;;  %v845_v22 = vadd.f32 %v844_v17, %v843_v16  ;;  %v846_v23 = vsel %vm808_vm0, %v740_v7, 0.0  ;;  %v618_v24 = vld [vmem:[%s1486_s14 + $0xd0] sm:$0xff]  ;;  %v909_v27 = vsel %vm808_vm0, %v803_v0, 0.0 }
  0x81   : > { %v628_v25 = vld [vmem:[%s1486_s14 + $0x120] sm:$0xff]  ;;  %v674_v28 = vld [vmem:[%s1486_s14 + $0x290] sm:$0xff]  ;;  %v780_v29 = vmul.f32 %v1528_v43, %v654_v12  ;;  %v848_v30 = vsel %vm808_vm0, %v750_v8, 0.0  ;;  %v790_v32 = vmul.f32 %v1534_v45, %v664_v14  ;;  %v724_v34 = vmul.f32 %v1498_v37, %v598_v18 }
  0x82   : > { %v902_v26 = vadd.f32 %v901_v9, %v900_v13  ;;  %v638_v31 = vld [vmem:[%s1486_s14 + $0x170] sm:$0xff]  ;;  %v847_v33 = vadd.f32 %v846_v23, %v845_v22  ;;  %v734_v35 = vmul.f32 %v1503_v38, %v608_v19  ;;  %v850_v44 = vsel %vm808_vm0, %v760_v15, 0.0  ;;  %v648_v52 = vld [vmem:[%s1486_s14 + $0x1c0] sm:$0xff] }
  0x83   : > { %v744_v47 = vmul.f32 %v1508_v39, %v618_v24  ;;  %v754_v48 = vmul.f32 %v1513_v40, %v628_v25  ;;  %v800_v49 = vmul.f32 %v1539_v46, %v674_v28  ;;  %v852_v51 = vsel %vm808_vm0, %v770_v21, 0.0  ;;  %v658_v53 = vld [vmem:[%s1486_s14 + $0x210] sm:$0xff]  ;;  %v600_v63 = vld [vmem:[%s1486_s14 + $0x40] sm:$0xff] }
  0x84   : > { %v904_v36 = vadd.f32 %v903_v10, %v902_v26  ;;  %v849_v50 = vadd.f32 %v848_v30, %v847_v33  ;;  %v764_v54 = vmul.f32 %v1518_v41, %v638_v31  ;;  %v854_v56 = vsel %vm808_vm0, %v780_v29, 0.0  ;;  %v610_v0 = vld [vmem:[%s1486_s14 + $0x90] sm:$0xff]  ;;  %v620_v1 = vld [vmem:[%s1486_s14 + $0xe0] sm:$0xff] }
  0x85   : > { %v911_v57 = vsel %vm808_vm0, %v724_v34, 0.0  ;;  %v912_v58 = vsel %vm808_vm0, %v734_v35, 0.0  ;;  %v856_v60 = vsel %vm808_vm0, %v790_v32, 0.0  ;;  %v914_v62 = vsel %vm808_vm0, %v744_v47, 0.0  ;;  %v668_v3 = vld [vmem:[%s1486_s14 + $0x260] sm:$0xff]  ;;  %v630_v7 = vld [vmem:[%s1486_s14 + $0x130] sm:$0xff] }
  0x86   : > { %v906_v55 = vadd.f32 %v905_v11, %v904_v36  ;;  %v851_v59 = vadd.f32 %v850_v44, %v849_v50  ;;  %v913_v61 = vadd.f32 %v912_v58, %v911_v57  ;;  %v774_v4 = vmul.f32 %v1523_v42, %v648_v52  ;;  %v678_v10 = vld [vmem:[%s1486_s14 + $0x2b0] sm:$0xff]  ;;  %v640_v13 = vld [vmem:[%s1486_s14 + $0x180] sm:$0xff] }
  0x87   : > { %v784_v5 = vmul.f32 %v1528_v43, %v658_v53  ;;  %v916_v6 = vsel %vm808_vm0, %v754_v48, 0.0  ;;  %v858_v9 = vsel %vm808_vm0, %v800_v49, 0.0  ;;  %v918_v12 = vsel %vm808_vm0, %v764_v54, 0.0  ;;  %v650_v21 = vld [vmem:[%s1486_s14 + $0x1d0] sm:$0xff]  ;;  %v660_v22 = vld [vmem:[%s1486_s14 + $0x220] sm:$0xff] }
  0x88   : > { %v908_v2 = vadd.f32 %v907_v20, %v906_v55  ;;  %v853_v8 = vadd.f32 %v852_v51, %v851_v59  ;;  %v915_v11 = vadd.f32 %v914_v62, %v913_v61  ;;  %v726_v15 = vmul.f32 %v1498_v37, %v600_v63  ;;  %v592_v33 = vld [vmem:[%s1486_s14] sm:$0xff]  ;;  %v602_v47 = vld [vmem:[%s1486_s14 + $0x50] sm:$0xff] }
  0x89   : > { %v736_v16 = vmul.f32 %v1503_v38, %v610_v0  ;;  %v746_v17 = vmul.f32 %v1508_v39, %v620_v1  ;;  %v794_v19 = vmul.f32 %v1534_v45, %v668_v3  ;;  %v756_v23 = vmul.f32 %v1513_v40, %v630_v7  ;;  %v612_v48 = vld [vmem:[%s1486_s14 + $0xa0] sm:$0xff]  ;;  %v622_v54 = vld [vmem:[%s1486_s14 + $0xf0] sm:$0xff] }
  0x8a   : > { %v910_v14 = vadd.f32 %v909_v27, %v908_v2  ;;  %v855_v18 = vadd.f32 %v854_v56, %v853_v8  ;;  %v917_v20 = vadd.f32 %v916_v6, %v915_v11  ;;  %v804_v24 = vmul.f32 %v1539_v46, %v678_v10  ;;  %v670_v27 = vld [vmem:[%s1486_s14 + $0x270] sm:$0xff]  ;;  %v680_v51 = vld [vmem:[%s1486_s14 + $0x2c0] sm:$0xff] }
  0x8b   : > { %v920_v25 = vsel %vm808_vm0, %v774_v4, 0.0  ;;  %v922_v26 = vsel %vm808_vm0, %v784_v5, 0.0  ;;  %v766_v28 = vmul.f32 %v1518_v41, %v640_v13  ;;  %v945_v31 = vsel %vm808_vm0, %v726_v15, 0.0  ;;  %v632_v61 = vld [vmem:[%s1486_s14 + $0x140] sm:$0xff]  ;;  %v642_v3 = vld [vmem:[%s1486_s14 + $0x190] sm:$0xff]  ;;  %v595_v15 = vld [vmem:[%s1486_s14 + $0x18] sm:$0xff] }
  0x8c   : > { %1148 = vmatmul.msk.f32.vlgmr.msra.gmra.mxu2 %vm808_vm0, %v910_v14  ;;  %v857_v29 = vadd.f32 %v856_v60, %v855_v18  ;;  %v919_v30 = vadd.f32 %v918_v12, %v917_v20  ;;  %v946_v32 = vsel %vm808_vm0, %v736_v16, 0.0  ;;  %v776_v34 = vmul.f32 %v1523_v42, %v650_v21  ;;  %v652_v4 = vld [vmem:[%s1486_s14 + $0x1e0] sm:$0xff]  ;;  %v605_v16 = vld [vmem:[%s1486_s14 + $0x68] sm:$0xff] }
  0x8d   : > { %v786_v35 = vmul.f32 %v1528_v43, %v660_v22  ;;  %v947_v36 = vadd.f32 %v946_v32, %v945_v31  ;;  %v948_v44 = vsel %vm808_vm0, %v746_v17, 0.0  ;;  %v796_v52 = vmul.f32 %v1534_v45, %v670_v27  ;;  %v615_v17 = vld [vmem:[%s1486_s14 + $0xb8] sm:$0xff] }
  0x8e   : > { %v859_v49 = vadd.f32 %v858_v9, %v857_v29  ;;  %v921_v50 = vadd.f32 %v920_v25, %v919_v30  ;;  %v950_v53 = vsel %vm808_vm0, %v756_v23, 0.0  ;;  %v924_v55 = vsel %vm808_vm0, %v794_v19, 0.0  ;;  %v662_v9 = vld [vmem:[%s1486_s14 + $0x230] sm:$0xff]  ;;  %v672_v19 = vld [vmem:[%s1486_s14 + $0x280] sm:$0xff]  ;;  %v625_v23 = vld [vmem:[%s1486_s14 + $0x108] sm:$0xff] }
  0x8f   : > { %v926_v56 = vsel %vm808_vm0, %v804_v24, 0.0  ;;  %v949_v57 = vadd.f32 %v948_v44, %v947_v36  ;;  %v718_v58 = vmul.f32 %v1498_v37, %v592_v33  ;;  %v952_v60 = vsel %vm808_vm0, %v766_v28, 0.0  ;;  %v635_v28 = vld [vmem:[%s1486_s14 + $0x158] sm:$0xff]  ;;  %v645_v36 = vld [vmem:[%s1486_s14 + $0x1a8] sm:$0xff] }
  0x90   : > { %1145 = vmatmul.msk.f32.vlgmr.msra.gmra.mxu1 %vm808_vm0, %v859_v49  ;;  %v923_v59 = vadd.f32 %v922_v26, %v921_v50  ;;  %v728_v62 = vmul.f32 %v1503_v38, %v602_v47  ;;  %v738_v63 = vmul.f32 %v1508_v39, %v612_v48  ;;  %v806_v0 = vmul.f32 %v1539_v46, %v680_v51  ;;  %v655_v50 = vld [vmem:[%s1486_s14 + $0x1f8] sm:$0xff] }
  0x91   : > { %v951_v1 = vadd.f32 %v950_v53, %v949_v57  ;;  %v954_v2 = vsel %vm808_vm0, %v776_v34, 0.0  ;;  %v748_v5 = vmul.f32 %v1513_v40, %v622_v54  ;;  %v956_v7 = vsel %vm808_vm0, %v786_v35, 0.0  ;;  %v665_v53 = vld [vmem:[%s1486_s14 + $0x248] sm:$0xff]  ;;  %v599_v57 = vld [vmem:[%s1486_s14 + $0x38] sm:$0xff] }
  0x92   : > { %v925_v6 = vadd.f32 %v924_v55, %v923_v59  ;;  %v958_v8 = vsel %vm808_vm0, %v796_v52, 0.0  ;;  %v809_v10 = vsel %vm808_vm0, %v718_v58, 0.0  ;;  %v758_v12 = vmul.f32 %v1518_v41, %v632_v61 }
  0x93   : > { %v953_v11 = vadd.f32 %v952_v60, %v951_v1  ;;  %v810_v13 = vsel %vm808_vm0, %v728_v62, 0.0  ;;  %v812_v14 = vsel %vm808_vm0, %v738_v63, 0.0  ;;  %v768_v20 = vmul.f32 %v1523_v42, %v642_v3  ;;  %v609_v62 = vld [vmem:[%s1486_s14 + $0x88] sm:$0xff]  ;;  %v619_v63 = vld [vmem:[%s1486_s14 + $0xd8] sm:$0xff] }
  0x94   : > { %v927_v18 = vadd.f32 %v926_v56, %v925_v6  ;;  %v778_v21 = vmul.f32 %v1528_v43, %v652_v4  ;;  %v811_v22 = vadd.f32 %v810_v13, %v809_v10  ;;  %v960_v25 = vsel %vm808_vm0, %v806_v0, 0.0  ;;  %v629_v0 = vld [vmem:[%s1486_s14 + $0x128] sm:$0xff]  ;;  %v675_v3 = vld [vmem:[%s1486_s14 + $0x298] sm:$0xff] }
  0x95   : > { %v955_v24 = vadd.f32 %v954_v2, %v953_v11  ;;  %v788_v26 = vmul.f32 %v1534_v45, %v662_v9  ;;  %v814_v27 = vsel %vm808_vm0, %v748_v5, 0.0  ;;  %v721_v30 = vmul.f32 %v1498_v37, %v595_v15  ;;  %v639_v9 = vld [vmem:[%s1486_s14 + $0x178] sm:$0xff] }
  0x96   : > { %1149 = vmatmul.msk.f32.gmra.mxu2 %vm808_vm0, %v927_v18  ;;  %v813_v29 = vadd.f32 %v812_v14, %v811_v22  ;;  %v731_v31 = vmul.f32 %v1503_v38, %v605_v16  ;;  %v741_v32 = vmul.f32 %v1508_v39, %v615_v17  ;;  %v798_v34 = vmul.f32 %v1539_v46, %v672_v19  ;;  %v649_v19 = vld [vmem:[%s1486_s14 + $0x1c8] sm:$0xff] }
  0x97   : > { %v957_v33 = vadd.f32 %v956_v7, %v955_v24  ;;  %v816_v35 = vsel %vm808_vm0, %v758_v12, 0.0  ;;  %v751_v44 = vmul.f32 %v1513_v40, %v625_v23  ;;  %v818_v48 = vsel %vm808_vm0, %v768_v20, 0.0  ;;  %v659_v20 = vld [vmem:[%s1486_s14 + $0x218] sm:$0xff]  ;;  %v669_v22 = vld [vmem:[%s1486_s14 + $0x268] sm:$0xff] }
  0x98   : > { %v815_v47 = vadd.f32 %v814_v27, %v813_v29  ;;  %v820_v49 = vsel %vm808_vm0, %v778_v21, 0.0  ;;  %v761_v51 = vmul.f32 %v1518_v41, %v635_v28  ;;  %v860_v54 = vsel %vm808_vm0, %v721_v30, 0.0  ;;  %v601_v30 = vld [vmem:[%s1486_s14 + $0x48] sm:$0xff] }
  0x99   : > { %v959_v52 = vadd.f32 %v958_v8, %v957_v33  ;;  %v861_v55 = vsel %vm808_vm0, %v731_v31, 0.0  ;;  %v863_v56 = vsel %vm808_vm0, %v741_v32, 0.0  ;;  %v822_v59 = vsel %vm808_vm0, %v788_v26, 0.0  ;;  %v611_v31 = vld [vmem:[%s1486_s14 + $0x98] sm:$0xff]  ;;  %v621_v32 = vld [vmem:[%s1486_s14 + $0xe8] sm:$0xff] }
  0x9a   : > { %v817_v58 = vadd.f32 %v816_v35, %v815_v47  ;;  %v771_v60 = vmul.f32 %v1523_v42, %v645_v36  ;;  %v862_v61 = vadd.f32 %v861_v55, %v860_v54  ;;  %v824_v2 = vsel %vm808_vm0, %v798_v34, 0.0 }
  0x9b   : > { %v961_v1 = vadd.f32 %v960_v25, %v959_v52  ;;  %v781_v4 = vmul.f32 %v1528_v43, %v655_v50  ;;  %v865_v5 = vsel %vm808_vm0, %v751_v44, 0.0  ;;  %v791_v7 = vmul.f32 %v1534_v45, %v665_v53  ;;  %v631_v44 = vld [vmem:[%s1486_s14 + $0x138] sm:$0xff]  ;;  %v641_v52 = vld [vmem:[%s1486_s14 + $0x188] sm:$0xff] }
  0x9c   : > { %v819_v6 = vadd.f32 %v818_v48, %v817_v58  ;;  %v864_v8 = vadd.f32 %v863_v56, %v862_v61  ;;  %v725_v10 = vmul.f32 %v1498_v37, %v599_v57  ;;  %v867_v11 = vsel %vm808_vm0, %v761_v51, 0.0 }
  0x9d   : > { %1151 = vmatmul.msk.f32.vlgmr.msra.gmra.mxu3 %vm808_vm0, %v961_v1  ;;  %v735_v12 = vmul.f32 %v1503_v38, %v609_v62  ;;  %v745_v13 = vmul.f32 %v1508_v39, %v619_v63  ;;  %v755_v14 = vmul.f32 %v1513_v40, %v629_v0  ;;  %v801_v16 = vmul.f32 %v1539_v46, %v675_v3  ;;  %v651_v63 = vld [vmem:[%s1486_s14 + $0x1d8] sm:$0xff]  ;;  %v661_v3 = vld [vmem:[%s1486_s14 + $0x228] sm:$0xff] }
  0x9e   : > { %v821_v15 = vadd.f32 %v820_v49, %v819_v6  ;;  %v866_v17 = vadd.f32 %v865_v5, %v864_v8  ;;  %v869_v18 = vsel %vm808_vm0, %v771_v60, 0.0  ;;  %v871_v21 = vsel %vm808_vm0, %v781_v4, 0.0  ;;  %v679_v49 = vld [vmem:[%s1486_s14 + $0x2b8] sm:$0xff]  ;;  %v593_v6 = vld [vmem:[%s1486_s14 + $0x8] sm:$0xff] }
  0x9f   : > { %v765_v23 = vmul.f32 %v1518_v41, %v639_v9  ;;  %v928_v24 = vsel %vm808_vm0, %v725_v10, 0.0  ;;  %v929_v25 = vsel %vm808_vm0, %v735_v12, 0.0  ;;  %v931_v29 = vsel %vm808_vm0, %v745_v13, 0.0  ;;  %v613_v12 = vld [vmem:[%s1486_s14 + $0xa8] sm:$0xff] }
  0xa0   : > { %v823_v26 = vadd.f32 %v822_v59, %v821_v15  ;;  %v868_v27 = vadd.f32 %v867_v11, %v866_v17  ;;  %v930_v28 = vadd.f32 %v929_v25, %v928_v24  ;;  %v873_v33 = vsel %vm808_vm0, %v791_v7, 0.0  ;;  %v603_v11 = vld [vmem:[%s1486_s14 + $0x58] sm:$0xff] }
  0xa1   : > { %v775_v34 = vmul.f32 %v1523_v42, %v649_v19  ;;  %v785_v35 = vmul.f32 %v1528_v43, %v659_v20  ;;  %v933_v36 = vsel %vm808_vm0, %v755_v14, 0.0  ;;  %v795_v50 = vmul.f32 %v1534_v45, %v669_v22  ;;  %v671_v15 = vld [vmem:[%s1486_s14 + $0x278] sm:$0xff] }
  0xa2   : > { %v825_v47 = vadd.f32 %v824_v2, %v823_v26  ;;  %v870_v48 = vadd.f32 %v869_v18, %v868_v27  ;;  %v932_v51 = vadd.f32 %v931_v29, %v930_v28  ;;  %v935_v53 = vsel %vm808_vm0, %v765_v23, 0.0  ;;  %v623_v19 = vld [vmem:[%s1486_s14 + $0xf8] sm:$0xff]  ;;  %v633_v26 = vld [vmem:[%s1486_s14 + $0x148] sm:$0xff] }
  0xa3   : > { %v727_v54 = vmul.f32 %v1498_v37, %v601_v30  ;;  %v737_v55 = vmul.f32 %v1503_v38, %v611_v31  ;;  %v747_v56 = vmul.f32 %v1508_v39, %v621_v32  ;;  %v757_v59 = vmul.f32 %v1513_v40, %v631_v44  ;;  %v643_v32 = vld [vmem:[%s1486_s14 + $0x198] sm:$0xff] }
  0xa4   : > { %1143 = vmatmul.msk.f32.vlgmr.msra.gmra.mxu0 %vm808_vm0, %v825_v47  ;;  %v872_v57 = vadd.f32 %v871_v21, %v870_v48  ;;  %v934_v58 = vadd.f32 %v933_v36, %v932_v51  ;;  %v875_v60 = vsel %vm808_vm0, %v801_v16, 0.0  ;;  %v805_v61 = vmul.f32 %v1539_v46, %v679_v49  ;;  %v681_v16 = vld [vmem:[%s1486_s14 + $0x2c8] sm:$0xff]  ;;  %v606_v51 = vld [vmem:[%s1486_s14 + $0x70] sm:$0xff] }
  0xa5   : > { %v937_v62 = vsel %vm808_vm0, %v775_v34, 0.0  ;;  %v767_v0 = vmul.f32 %v1518_v41, %v641_v52  ;;  %v962_v4 = vsel %vm808_vm0, %v727_v54, 0.0  ;;  %v963_v5 = vsel %vm808_vm0, %v737_v55, 0.0  ;;  %v616_v52 = vld [vmem:[%s1486_s14 + $0xc0] sm:$0xff]  ;;  %v653_v55 = vld [vmem:[%s1486_s14 + $0x1e8] sm:$0xff] }
  0xa6   : > { %v874_v1 = vadd.f32 %v873_v33, %v872_v57  ;;  %v936_v2 = vadd.f32 %v935_v53, %v934_v58  ;;  %v939_v7 = vsel %vm808_vm0, %v785_v35, 0.0  ;;  %v941_v8 = vsel %vm808_vm0, %v795_v50, 0.0  ;;  %v596_v50 = vld [vmem:[%s1486_s14 + $0x20] sm:$0xff]  ;;  %v626_v58 = vld [vmem:[%s1486_s14 + $0x110] sm:$0xff] }
  0xa7   : > { %v964_v9 = vadd.f32 %v963_v5, %v962_v4  ;;  %v965_v10 = vsel %vm808_vm0, %v747_v56, 0.0  ;;  %v777_v17 = vmul.f32 %v1523_v42, %v651_v63  ;;  %v967_v18 = vsel %vm808_vm0, %v757_v59, 0.0 }
  0xa8   : > { %v876_v13 = vadd.f32 %v875_v60, %v874_v1  ;;  %v938_v14 = vadd.f32 %v937_v62, %v936_v2  ;;  %v943_v20 = vsel %vm808_vm0, %v805_v61, 0.0  ;;  %v787_v21 = vmul.f32 %v1528_v43, %v661_v3  ;;  %v663_v62 = vld [vmem:[%s1486_s14 + $0x238] sm:$0xff] }
  0xa9   : > { %v966_v22 = vadd.f32 %v965_v10, %v964_v9  ;;  %v719_v23 = vmul.f32 %v1498_v37, %v593_v6  ;;  %v969_v25 = vsel %vm808_vm0, %v767_v0, 0.0  ;;  %v729_v27 = vmul.f32 %v1503_v38, %v603_v11  ;;  %v636_v0 = vld [vmem:[%s1486_s14 + $0x160] sm:$0xff]  ;;  %v673_v6 = vld [vmem:[%s1486_s14 + $0x288] sm:$0xff] }
  0xaa   : > { %1146 = vmatmul.msk.f32.gmra.mxu1 %vm808_vm0, %v876_v13  ;;  %v940_v24 = vadd.f32 %v939_v7, %v938_v14  ;;  %v739_v28 = vmul.f32 %v1508_v39, %v613_v12  ;;  %v797_v29 = vmul.f32 %v1534_v45, %v671_v15  ;;  %v807_v30 = vmul.f32 %v1539_v46, %v681_v16 }
  0xab   : > { %v968_v31 = vadd.f32 %v967_v18, %v966_v22  ;;  %v749_v33 = vmul.f32 %v1513_v40, %v623_v19  ;;  %v971_v35 = vsel %vm808_vm0, %v777_v17, 0.0  ;;  %v826_v36 = vsel %vm808_vm0, %v719_v23, 0.0  ;;  %v656_v17 = vld [vmem:[%s1486_s14 + $0x200] sm:$0xff]  ;;  %v666_v23 = vld [vmem:[%s1486_s14 + $0x250] sm:$0xff] }
  0xac   : > { %v942_v34 = vadd.f32 %v941_v8, %v940_v24  ;;  %v759_v47 = vmul.f32 %v1518_v41, %v633_v26  ;;  %v827_v48 = vsel %vm808_vm0, %v729_v27, 0.0  ;;  %v829_v49 = vsel %vm808_vm0, %v739_v28, 0.0 }
  0xad   : > { %v970_v44 = vadd.f32 %v969_v25, %v968_v31  ;;  %v973_v54 = vsel %vm808_vm0, %v787_v21, 0.0  ;;  %v769_v56 = vmul.f32 %v1523_v42, %v643_v32  ;;  %v828_v57 = vadd.f32 %v827_v48, %v826_v36 }
  0xae   : > { %v944_v53 = vadd.f32 %v943_v20, %v942_v34  ;;  %v975_v60 = vsel %vm808_vm0, %v797_v29, 0.0  ;;  %v977_v61 = vsel %vm808_vm0, %v807_v30, 0.0  ;;  %v831_v63 = vsel %vm808_vm0, %v749_v33, 0.0  ;;  %v676_v29 = vld [vmem:[%s1486_s14 + $0x2a0] sm:$0xff] }
  0xaf   : > { %v972_v59 = vadd.f32 %v971_v35, %v970_v44  ;;  %v830_v1 = vadd.f32 %v829_v49, %v828_v57  ;;  %v722_v2 = vmul.f32 %v1498_v37, %v596_v50  ;;  %v732_v3 = vmul.f32 %v1503_v38, %v606_v51  ;;  %v646_v37 = vld [vmem:[%s1486_s14 + $0x1b0] sm:$0xff] }
  0xb0   : > { %1150 = vmatmul.msk.f32.gmra.mxu2 %vm808_vm0, %v944_v53  ;;  %v742_v4 = vmul.f32 %v1508_v39, %v616_v52  ;;  %v779_v7 = vmul.f32 %v1528_v43, %v653_v55  ;;  %v833_v8 = vsel %vm808_vm0, %v759_v47, 0.0  ;;  %v752_v9 = vmul.f32 %v1513_v40, %v626_v58 }
  0xb1   : > { %v974_v5 = vadd.f32 %v973_v54, %v972_v59  ;;  %v789_v10 = vmul.f32 %v1534_v45, %v663_v62  ;;  %v832_v11 = vadd.f32 %v831_v63, %v830_v1  ;;  %v835_v12 = vsel %vm808_vm0, %v769_v56, 0.0 }
  0xb2   : > { %v762_v38 = vmul.f32 %v1518_v41, %v636_v0  ;;  %v877_v39 = vsel %vm808_vm0, %v722_v2, 0.0  ;;  %v878_v14 = vsel %vm808_vm0, %v732_v3, 0.0  ;;  %v880_v15 = vsel %vm808_vm0, %v742_v4, 0.0 }
  0xb3   : > { %v976_v13 = vadd.f32 %v975_v60, %v974_v5  ;;  %v799_v16 = vmul.f32 %v1539_v46, %v673_v6  ;;  %v834_v40 = vadd.f32 %v833_v8, %v832_v11  ;;  %v879_v18 = vadd.f32 %v878_v14, %v877_v39 }
  0xb4   : > { %v837_v20 = vsel %vm808_vm0, %v779_v7, 0.0  ;;  %v772_v21 = vmul.f32 %v1523_v42, %v646_v37  ;;  %v882_v41 = vsel %vm808_vm0, %v752_v9, 0.0  ;;  %v839_v25 = vsel %vm808_vm0, %v789_v10, 0.0 }
  0xb5   : > { %v978_v19 = vadd.f32 %v977_v61, %v976_v13  ;;  %v836_v22 = vadd.f32 %v835_v12, %v834_v40  ;;  %v881_v24 = vadd.f32 %v880_v15, %v879_v18  ;;  %v782_v26 = vmul.f32 %v1528_v43, %v656_v17 }
  0xb6   : > { %v884_v27 = vsel %vm808_vm0, %v762_v38, 0.0  ;;  %v841_v31 = vsel %vm808_vm0, %v799_v16, 0.0  ;;  %v792_v42 = vmul.f32 %v1534_v45, %v666_v23  ;;  %v886_v32 = vsel %vm808_vm0, %v772_v21, 0.0  ;;  %v1203_v45 = vld [vmem:[%s1844_s3] ss:$0 sm:$0xff] }
  0xb7   : > { %1152 = vmatmul.msk.f32.gmra.mxu3 %vm808_vm0, %v978_v19  ;;  %v838_v28 = vadd.f32 %v837_v20, %v836_v22  ;;  %v883_v30 = vadd.f32 %v882_v41, %v881_v24  ;;  %v802_v35 = vmul.f32 %v1539_v46, %v676_v29  ;;  %v888_v36 = vsel %vm808_vm0, %v782_v26, 0.0 }
  0xb8   : > { %v890_v47 = vsel %vm808_vm0, %v792_v42, 0.0 }
  0xb9   : > { %v840_v33 = vadd.f32 %v839_v25, %v838_v28  ;;  %v885_v34 = vadd.f32 %v884_v27, %v883_v30  ;;  %v892_v49 = vsel %vm808_vm0, %v802_v35, 0.0 }
  0xbb   : > { %v842_v44 = vadd.f32 %v841_v31, %v840_v33  ;;  %v887_v43 = vadd.f32 %v886_v32, %v885_v34 }
  0xbd   : > { %1144 = vmatmul.msk.f32.gmra.mxu0 %vm808_vm0, %v842_v44  ;;  %v889_v48 = vadd.f32 %v888_v36, %v887_v43 }
  0xbf   : > { %v891_v50 = vadd.f32 %v890_v47, %v889_v48 }
  0xc1   : > { %v893_v51 = vadd.f32 %v892_v49, %v891_v50 }
  0xc3   : > { %1147 = vmatmul.msk.f32.gmra.mxu1 %vm808_vm0, %v893_v51 }
 0x10d   : > { %v1040_v46 = vpop.f32.mrf.mxu1 }
 0x10e   : > { %v1041_v52 = vadd.f32 %v1203_v45, %v1040_v46 }
 0x10f   : > { %v1049_v53 = vpop.f32.mrf.mxu2 }
 0x110   : > { %v1050_v54 = vadd.f32 %v1203_v45, %v1049_v53  ;;  %1066 = vst.msk [vmem:[%s590_s23 + $0x10] sm:$0xff] %vm808_vm0, %v1041_v52 }
 0x112   : > { %1069 = vst.msk [vmem:[%s590_s23 + $0x28] sm:$0xff] %vm808_vm0, %v1050_v54 }
 0x119   : > { %v1052_v55 = vpop.f32.mrf.mxu2 }
 0x11a   : > { %v1053_v56 = vadd.f32 %v1203_v45, %v1052_v55 }
 0x11c   : > { %1070 = vst.msk [vmem:[%s590_s23 + $0x30] sm:$0xff] %vm808_vm0, %v1053_v56 }
 0x120   : > { %v1058_v57 = vpop.f32.mrf.mxu3 }
 0x121   : > { %v1034_v58 = vpop.f32.mrf.mxu0  ;;  %v1059_v59 = vadd.f32 %v1203_v45, %v1058_v57 }
 0x122   : > { %v1035_v60 = vadd.f32 %v1203_v45, %v1034_v58 }
 0x123   : > { %1072 = vst.msk [vmem:[%s590_s23 + $0x40] sm:$0xff] %vm808_vm0, %v1059_v59 }
 0x124   : > { %1064 = vst.msk [vmem:[%s590_s23] sm:$0xff] %vm808_vm0, %v1035_v60 }
 0x127   : > { %v1043_v61 = vpop.f32.mrf.mxu1 }
 0x128   : > { %v1044_v62 = vadd.f32 %v1203_v45, %v1043_v61 }
 0x12a   : > { %1067 = vst.msk [vmem:[%s590_s23 + $0x18] sm:$0xff] %vm808_vm0, %v1044_v62 }
 0x133   : > { %v1055_v63 = vpop.f32.mrf.mxu2 }
 0x134   : > { %v1056_v0 = vadd.f32 %v1203_v45, %v1055_v63 }
 0x136   : > { %1071 = vst.msk [vmem:[%s590_s23 + $0x38] sm:$0xff] %vm808_vm0, %v1056_v0 }
 0x13a   : > { %v1061_v1 = vpop.f32.mrf.mxu3  ;;  %v1037_v2 = vpop.f32.mrf.mxu0 }
 0x13b   : > { %v1062_v3 = vadd.f32 %v1203_v45, %v1061_v1  ;;  %v1038_v4 = vadd.f32 %v1203_v45, %v1037_v2 }
 0x13d   : > { %1073 = vst.msk [vmem:[%s590_s23 + $0x48] sm:$0xff] %vm808_vm0, %v1062_v3 }
 0x13e   : > { %1065 = vst.msk [vmem:[%s590_s23 + $0x8] sm:$0xff] %vm808_vm0, %v1038_v4 }
 0x140   : > { %v1046_v5 = vpop.f32.mrf.mxu1 }
 0x141   : > { %v1047_v6 = vadd.f32 %v1203_v45, %v1046_v5 }
 0x143   : > { %1068 = vst.msk [vmem:[%s590_s23 + $0x20] sm:$0xff] %vm808_vm0, %v1047_v6 }
 0x144 PF: > { %p11_p9 = scmp.ge.s32.totalorder %s1270_s19, 4   ;;  %s1846_s15 = smov %s1222_s16 }
 0x145   : > { %s1847_s16 = smov %s1279_s22  ;;  %s1848_s17 = smov %s1270_s19 }
 0x146   :  { %13 = sbr.rel (!%p11_p9) target bundleno = 2 (0x2), region = 109 }

// kernel: block_forward.8
= control target key start
LH: loop header
LB: loop body
LE: loop exit
PB: predicated region body
PF: predicated region fallthrough
CT: control target
= control target key end

     0   :  { %s1768_s21 = smov 0   ;;  %s2235_s0 = inlined_call_operand.vmem [shape: f32[2,80,32], index: 0, kind: input, shape index: {}]   ;;  %s2236_s1 = inlined_call_operand.vmem [shape: f32[2,20,32], index: 1, kind: input, shape index: {}]   ;;  %s2237_s2 = inlined_call_operand.vmem [shape: f32[2,20,32], index: 2, kind: input, shape index: {}]   ;;  %s2238_s3 = inlined_call_operand.vmem [shape: f32[2,80,32], index: 3, kind: input, shape index: {}]   ;;  %s2239_s4 = inlined_call_operand.vmem [shape: f32[32,32], index: 4, kind: input, shape index: {}]   ;;  %s2240_s5 = inlined_call_operand.vmem [shape: f32[1,32], index: 5, kind: input, shape index: {}]   ;;  %s2241_s6 = inlined_call_operand.vmem [shape: f32[2,80,32], index: 6, kind: output, shape index: {}]  }
   0x1 LB: > { %s1542_s22 = sadd.s32 4294967295, %s1730_s21   ;;  %p1546_p0 = scmp.ge.s32.totalorder %s1730_s21, 1  ;;  %s1730_s21 = sphi %s1768_s21, %s16_s21  }
   0x2   : > { %p242_p1 = scmp.lt.s32.totalorder %s1730_s21, 3 }
   0x4   : > { %p243_p2 = pnand %p1546_p0, %p242_p1 }
   0x5   : > { %p287_p3 = scmp.lt.s32.totalorder (!%p243_p2), %s1542_s22, 1  ;;  %s1732_s14 = smov (!%p243_p2), 112  }
   0x6   : > { %246 = sbr.rel (%p243_p2) target bundleno = 1970 (0x7b2), region = 44 }
   0xb   : > { %s2245_s22 = smov (!%p287_p3, %s1542_s22), 1  ;;  %vm356_vm0 = vcmask 130048   ;;  %vm389_vm1 = vcmask 31744   ;;  %vm444_vm2 = vcmask 1043456   ;;  %v329_v39 = vld [vmem:[%s2239_s4 + $0x8] sm:$0xff]  ;;  %v328_v48 = vld [vmem:[%s2239_s4] sm:$0xff] }
   0xc   : > { %s1779_s23 = smul.u32 80, %s2245_s22  ;;  %vm542_vm11 = vcmask 162816  }
   0xd   : > { %s1633_s24 = smul.u32 24, %s2245_s22 }
   0xe   : > { %s1786_s27 = scalar_lea.vmem %s2235_s0, %s1779_s23  ;;  %s2072_s22 = scalar_lea.vmem %s2238_s3, %s1779_s23 }
   0xf   : > { %s1793_s30 = scalar_lea.vmem %s2236_s1, %s1633_s24  ;;  %v1801_v1 = vld [vmem:[%s1786_s27] sm:$0xff]  ;;  %v1806_v2 = vld [vmem:[%s1786_s27 + $0x8] sm:$0xff]  ;;  %s1819_s9 = scalar_lea.vmem %s2237_s2, %s1633_s24  ;;  %v1850_v45 = vld [vmem:[%s1786_s27 + $0x10] sm:$0xff] }
  0x10   : > { %v1796_v0 = vld [vmem:[%s1793_s30] sm:$0xff]  ;;  %v1827_v18 = vld [vmem:[%s1793_s30 + $0x10] sm:$0xf]  ;;  %v1834_v19 = vld [vmem:[%s1793_s30 + $0x8] sm:$0xff]  ;;  %s2085_s28 = scalar_lea.vmem %s2241_s6, %s1779_s23 }
  0x11   : > { %1552 = vmatpush.xpose.msk.msra.mxu0 %vm356_vm0, %v1796_v0  ;;  %v1822_v17 = vld [vmem:[%s1819_s9] sm:$0xff]  ;;  %1626 = vmatpush.xpose.msk.msra.mxu2 %vm356_vm0, %v1827_v18  ;;  %v1855_v46 = vld [vmem:[%s1786_s27 + $0x18] sm:$0xff]  ;;  %v1878_v58 = vld [vmem:[%s1819_s9 + $0x10] sm:$0xf] }
  0x12   : > { %1555 = vmatpush.msk.msra.mxu1 %vm444_vm2, %v1822_v17  ;;  %v1860_v47 = vld [vmem:[%s1786_s27 + $0x20] sm:$0xff]  ;;  %v1881_v59 = vld [vmem:[%s1819_s9 + $0x8] sm:$0xff]  ;;  %1629 = vmatpush.msk.msra.mxu3 %vm444_vm2, %v1878_v58 }
  0x13   : > { %v317_v62 = vld [vmem:[%s1786_s27 + $0x28] sm:$0xff] }
  0x14   : > { %1553 = vmatmul.msk.f32.vlgmr.msra.gmra.mxu0 %vm356_vm0, %v1801_v1  ;;  %1558 = vmatpush.xpose.msk.msrb.mxu1 %vm356_vm0, %v1827_v18 }
  0x15   : > { %1627 = vmatpush.xpose.msk.msra.mxu2 %vm356_vm0, %v1834_v19  ;;  %1569 = vmatpush.msk.msrb.mxu0 %vm444_vm2, %v1878_v58 }
  0x16   : > { %1630 = vmatpush.msra.mxu3 %v1881_v59 }
  0x17   : > { %776 = vmatpush.msrb.mxu0 %v1881_v59 }
  0x18   : > { %1559 = vmatpush.xpose.msk.msrb.mxu1 %vm356_vm0, %v1834_v19  ;;  %1631 = vmatpush.msra.mxu3 %v1822_v17 }
  0x19   : > { %1628 = vmatpush.xpose.msk.msra.mxu2 %vm356_vm0, %v1796_v0  ;;  %777 = vmatpush.msrb.mxu0 %v1822_v17 }
  0x1c   : > { %1554 = vmatmul.msk.f32.gmra.mxu0 %vm356_vm0, %v1806_v2  ;;  %1560 = vmatpush.xpose.msk.msrb.mxu1 %vm356_vm0, %v1796_v0 }
  0x1d   : > { %1564 = vmatmul.msk.f32.vlgmr.msra.gmra.mxu2 %vm356_vm0, %v317_v62 }
  0x91   : > { %v383_v3 = vpop.f32.mrf.mxu0 }
  0x92   : > { %v390_v4 = vsel %vm389_vm1, %v383_v3, -inf }
  0x93   : > { %391 = vmax.xlane.f32.xlu0 %v390_v4 }
  0x99   : > { %v386_v5 = vpop.f32.mrf.mxu0 }
  0x9a   : > { %v393_v6 = vsel %vm389_vm1, %v386_v5, -inf }
  0x9b   : > { %394 = vmax.xlane.f32.xlu0 %v393_v6 }
  0xaf   : > { %894 = vrot.lane.b32.xlu0 %v1796_v0, %s1732_s14 }
 0x106   : > { %v392_v7 = vpop.xlane.xlu0 %391 }
 0x107   : > { %v396_v8 = vsub.f32 %v383_v3, %v392_v7 }
 0x109   : > { %v398_v9 = vmul.f32 1.442695, %v396_v8 }
 0x10b   : > { %1644 = vpow2.f32 %v398_v9 }
 0x10e   : > { %v395_v10 = vpop.xlane.xlu0 %394 }
 0x10f   : > { %v397_v11 = vsub.f32 %v386_v5, %v395_v10 }
 0x111   : > { %v1645_v12 = vpop.eup %1644  ;;  %v400_v13 = vmul.f32 1.442695, %v397_v11  ;;  %v319_v11 = vld [vmem:[%s1786_s27 + $0x38] sm:$0xff] }
 0x112   : > { %v402_v14 = vsel %vm389_vm1, %v1645_v12, 0.0 }
 0x113   : > { %1646 = vpow2.f32 %v400_v13  ;;  %403 = vadd.xlane.f32.xlu1 %v402_v14 }
 0x119   : > { %v1647_v15 = vpop.eup %1646 }
 0x11a   : > { %v405_v16 = vsel %vm389_vm1, %v1647_v15, 0.0 }
 0x11b   : > { %406 = vadd.xlane.f32.xlu1 %v405_v16 }
 0x121   : > { %v1891_v60 = vpop.permute.xlu0 %894 }
 0x122   : > { %1588 = vmatpush.xpose.msk.msra.mxu0 %vm356_vm0, %v1891_v60 }
 0x134   : > { %890 = vrot.lane.b32.xlu1 %v1801_v1, %s1732_s14 }
 0x186   : > { %v404_v20 = vpop.xlane.xlu1 %403 }
 0x187   : > { %1648 = vrcp.f32 %v404_v20  ;;  %v419_v25 = vand.u32 2147483648, %v404_v20  ;;  %v417_v27 = vand.u32 2147483647, %v404_v20  ;;  %vm413_vm4 = vweird.f32 %v404_v20 }
 0x189   : > { %v420_v30 = vor.u32 1.1754944e-38, %v419_v25  ;;  %vm418_vm6 = vcmp.eq.f32.partialorder %v417_v27, 8.507059e+37 }
 0x18d   : > { %v1649_v21 = vpop.eup %1648 }
 0x18e   : > { %v409_v22 = vmul.f32 %v1649_v21, %v404_v20  ;;  %v407_v23 = vpop.xlane.xlu1 %406  ;;  %vm414_vm3 = vweird.f32 %v1649_v21 }
 0x18f   : > { %1650 = vrcp.f32 %v407_v23  ;;  %vm415_vm5 = vmor %vm413_vm4, %vm414_vm3  ;;  %v434_v36 = vand.u32 2147483648, %v407_v23  ;;  %v432_v38 = vand.u32 2147483647, %v407_v23  ;;  %vm428_vm8 = vweird.f32 %v407_v23 }
 0x190   : > { %v410_v24 = vsub.f32 1.0, %v409_v22  ;;  %v320_v22 = vld [vmem:[%s1786_s27 + $0x40] sm:$0xff] }
 0x191   : > { %v435_v41 = vor.u32 1.1754944e-38, %v434_v36  ;;  %vm433_vm10 = vcmp.eq.f32.partialorder %v432_v38, 8.507059e+37 }
 0x192   : > { %v411_v26 = vmul.f32 %v1649_v21, %v410_v24  ;;  %v1922_v24 = vpop.f32.mrf.mxu2 }
 0x194   : > { %v412_v28 = vadd.f32 %v1649_v21, %v411_v26 }
 0x195   : > { %v1651_v29 = vpop.eup %1650 }
 0x196   : > { %v424_v31 = vmul.f32 %v1651_v29, %v407_v23  ;;  %v416_v32 = vsel %vm415_vm5, %v1649_v21, %v412_v28  ;;  %vm429_vm7 = vweird.f32 %v1651_v29  ;;  %v321_v23 = vld [vmem:[%s1786_s27 + $0x48] sm:$0xff] }
 0x197   : > { %v421_v33 = vsel %vm418_vm6, %v420_v30, %v416_v32  ;;  %vm430_vm9 = vmor %vm428_vm8, %vm429_vm7 }
 0x198   : > { %v425_v34 = vsub.f32 1.0, %v424_v31  ;;  %v422_v35 = vmul.f32 %v1645_v12, %v421_v33 }
 0x19a   : > { %v426_v37 = vmul.f32 %v1651_v29, %v425_v34  ;;  %1556 = vmatmul.msk.f32.vlgmr.msra.gmra.mxu1 %vm389_vm1, %v422_v35 }
 0x19b   : > { %847 = vmatpush.msra.mxu1 %v329_v39 }
 0x19c   : > { %v427_v40 = vadd.f32 %v1651_v29, %v426_v37 }
 0x19d   : > { %848 = vmatpush.msra.mxu1 %v328_v48 }
 0x19e   : > { %v431_v42 = vsel %vm430_vm9, %v1651_v29, %v427_v40 }
 0x19f   : > { %v436_v43 = vsel %vm433_vm10, %v435_v41, %v431_v42 }
 0x1a0   : > { %v437_v44 = vmul.f32 %v1647_v15, %v436_v43  ;;  %v552_v43 = vsel %vm542_vm11, %v1922_v24, -inf }
 0x1a2   : > { %1557 = vmatmul.msk.f32.gmra.mxu1 %vm389_vm1, %v437_v44 }
 0x1a6   : > { %v891_v12 = vpop.permute.xlu1 %890 }
 0x1aa   : > { %1561 = vmatmul.msk.f32.vlgmr.msrb.gmra.mxu1 %vm356_vm0, %v1850_v45 }
 0x1b2   : > { %1562 = vmatmul.msk.f32.gmra.mxu1 %vm356_vm0, %v1855_v46 }
 0x1ba   : > { %1563 = vmatmul.msk.f32.gmra.mxu1 %vm356_vm0, %v1860_v47 }
 0x217   : > { %v465_v49 = vpop.f32.mrf.mxu1 }
 0x218   : > { %1578 = vmatmul.msk.f32.vlgmr.msra.gmra.mxu1 %vm356_vm0, %v465_v49 }
 0x21f   : > { %v468_v50 = vpop.f32.mrf.mxu1 }
 0x220   : > { %1579 = vmatmul.msk.f32.gmra.mxu1 %vm356_vm0, %v468_v50 }
 0x227   : > { %v518_v51 = vpop.f32.mrf.mxu1 }
 0x228   : > { %v543_v52 = vsel %vm542_vm11, %v518_v51, -inf }
 0x229   : > { %544 = vmax.xlane.f32.xlu2 %v543_v52 }
 0x22f   : > { %v1924_v25 = vpop.f32.mrf.mxu1 }
 0x29c   : > { %v545_v53 = vpop.xlane.xlu2 %544 }
 0x29d   : > { %v567_v54 = vsub.f32 %v518_v51, %v545_v53 }
 0x29f   : > { %v575_v55 = vmul.f32 1.442695, %v567_v54 }
 0x2a1   : > { %1652 = vpow2.f32 %v575_v55 }
 0x2a7   : > { %v1653_v56 = vpop.eup %1652 }
 0x2a8   : > { %v591_v57 = vsel %vm542_vm11, %v1653_v56, 0.0 }
 0x2a9   : > { %592 = vadd.xlane.f32.xlu2 %v591_v57 }
 0x2c1   : > { %892 = vrot.lane.b32.xlu2 %v1806_v2, %s1732_s14  ;;  %v1898_v2 = vld [vmem:[%s1786_s27 + $0x30] sm:$0xff] }
 0x2c2   : > { %1565 = vmatmul.msk.f32.gmra.mxu2 %vm356_vm0, %v1898_v2 }
 0x2ca   : > { %1566 = vmatmul.msk.f32.gmra.mxu2 %vm356_vm0, %v319_v11 }
 0x2d2   : > { %1567 = vmatmul.msk.f32.gmra.mxu2 %vm356_vm0, %v320_v22 }
 0x2da   : > { %1568 = vmatmul.msk.f32.gmra.mxu2 %vm356_vm0, %v321_v23 }
 0x31c   : > { %v593_v61 = vpop.xlane.xlu2 %592 }
 0x31d   : > { %1654 = vrcp.f32 %v593_v61  ;;  %v626_v3 = vand.u32 2147483648, %v593_v61  ;;  %v624_v5 = vand.u32 2147483647, %v593_v61  ;;  %vm620_vm13 = vweird.f32 %v593_v61 }
 0x31f   : > { %v627_v7 = vor.u32 1.1754944e-38, %v626_v3  ;;  %vm625_vm15 = vcmp.eq.f32.partialorder %v624_v5, 8.507059e+37 }
 0x323   : > { %v1655_v63 = vpop.eup %1654 }
 0x324   : > { %v616_v0 = vmul.f32 %v1655_v63, %v593_v61  ;;  %vm621_vm12 = vweird.f32 %v1655_v63  ;;  %v893_v13 = vpop.permute.xlu2 %892 }
 0x325   : > { %vm622_vm14 = vmor %vm620_vm13, %vm621_vm12 }
 0x326   : > { %v617_v1 = vsub.f32 1.0, %v616_v0 }
 0x328   : > { %v618_v4 = vmul.f32 %v1655_v63, %v617_v1 }
 0x32a   : > { %v619_v6 = vadd.f32 %v1655_v63, %v618_v4 }
 0x32c   : > { %v623_v8 = vsel %vm622_vm14, %v1655_v63, %v619_v6 }
 0x32d   : > { %v628_v9 = vsel %vm625_vm15, %v627_v7, %v623_v8 }
 0x32e   : > { %v629_v10 = vmul.f32 %v1653_v56, %v628_v9 }
 0x330   : > { %1570 = vmatmul.msk.f32.vlgmr.msrb.gmra.mxu0 %vm542_vm11, %v629_v10 }
 0x338   : > { %1589 = vmatmul.msk.f32.vlgmr.msra.gmra.mxu0 %vm356_vm0, %v891_v12 }
 0x340   : > { %1590 = vmatmul.msk.f32.gmra.mxu0 %vm356_vm0, %v893_v13 }
 0x345   : > { %v1926_v26 = vpop.f32.mrf.mxu2 }
 0x34d   : > { %v533_v28 = vpop.f32.mrf.mxu2 }
 0x355   : > { %v1962_v44 = vpop.f32.mrf.mxu2 }
 0x356   : > { %v561_v49 = vsel %vm542_vm11, %v1962_v44, -inf }
 0x35d   : > { %v1968_v51 = vpop.f32.mrf.mxu2 }
 0x35e   : > { %v564_v53 = vsel %vm542_vm11, %v1968_v51, -inf }
 0x3ad   : > { %v779_v14 = vpop.f32.mrf.mxu0 }
 0x3ae   : > { %1580 = vmatmul.msk.f32.gmra.mxu1 %vm356_vm0, %v779_v14 }
 0x3b5   : > { %v919_v15 = vpop.f32.mrf.mxu0 }
 0x3b6   : > { %v925_v16 = vsel %vm389_vm1, %v919_v15, -inf }
 0x3b7   : > { %926 = vmax.xlane.f32.xlu0 %v925_v16 }
 0x3bd   : > { %v922_v20 = vpop.f32.mrf.mxu0 }
 0x3be   : > { %v928_v21 = vsel %vm389_vm1, %v922_v20, -inf }
 0x3bf   : > { %929 = vmax.xlane.f32.xlu2 %v928_v21 }
 0x3cb   : > { %1022 = vrot.lane.b32.xlu0 %v1834_v19, %s1732_s14  ;;  %v524_v19 = vpop.f32.mrf.mxu1 }
 0x3cc   : > { %v549_v27 = vsel %vm542_vm11, %v524_v19, -inf }
 0x3d7   : > { %973 = vrot.lane.b32.xlu2 %v1822_v17, %s1732_s14  ;;  %v558_v17 = vsel %vm542_vm11, %v533_v28, -inf }
 0x3df   : > { %1006 = vrot.lane.b32.xlu2 %v1850_v45, %s1732_s14 }
 0x3e7   : > { %1012 = vrot.lane.b32.xlu2 %v317_v62, %s1732_s14 }
 0x3ef   : > { %1018 = vrot.lane.b32.xlu2 %v320_v22, %s1732_s14 }
 0x418   : > { %550 = vmax.xlane.f32.xlu2 %v549_v27 }
 0x420   : > { %559 = vmax.xlane.f32.xlu2 %v558_v17 }
 0x42a   : > { %v927_v29 = vpop.xlane.xlu0 %926 }
 0x42b   : > { %v931_v30 = vsub.f32 %v919_v15, %v927_v29 }
 0x42d   : > { %v933_v31 = vmul.f32 1.442695, %v931_v30 }
 0x42f   : > { %1656 = vpow2.f32 %v933_v31 }
 0x432   : > { %v930_v32 = vpop.xlane.xlu2 %929 }
 0x433   : > { %v932_v33 = vsub.f32 %v922_v20, %v930_v32 }
 0x435   : > { %v1930_v34 = vpop.eup %1656  ;;  %v935_v35 = vmul.f32 1.442695, %v932_v33 }
 0x436   : > { %v937_v36 = vsel %vm389_vm1, %v1930_v34, 0.0 }
 0x437   : > { %1658 = vpow2.f32 %v935_v35  ;;  %938 = vadd.xlane.f32.xlu1 %v937_v36 }
 0x43a   : > { %v1938_v39 = vpop.permute.xlu2 %973 }
 0x43b   : > { %1591 = vmatpush.msk.msrb.mxu0 %vm444_vm2, %v1938_v39 }
 0x43d   : > { %v1934_v37 = vpop.eup %1658  ;;  %v1023_v62 = vpop.permute.xlu0 %1022 }
 0x43e   : > { %v940_v38 = vsel %vm389_vm1, %v1934_v37, 0.0 }
 0x43f   : > { %941 = vadd.xlane.f32.xlu0 %v940_v38 }
 0x442   : > { %v1952_v40 = vpop.permute.xlu2 %1006 }
 0x44a   : > { %v1954_v41 = vpop.permute.xlu2 %1012 }
 0x450   : > { %1024 = vrot.lane.b32.xlu1 %v1827_v18, %s1732_s14  ;;  %v546_v18 = vsel %vm542_vm11, %v1924_v25, -inf }
 0x452   : > { %v1956_v42 = vpop.permute.xlu2 %1018 }
 0x453   : > { %1008 = vrot.lane.b32.xlu0 %v1855_v46, %s1732_s14 }
 0x458   : > { %1010 = vrot.lane.b32.xlu1 %v1860_v47, %s1732_s14  ;;  %v555_v47 = vsel %vm542_vm11, %v1926_v26, -inf }
 0x45b   : > { %1014 = vrot.lane.b32.xlu0 %v1898_v2, %s1732_s14 }
 0x460   : > { %1016 = vrot.lane.b32.xlu1 %v319_v11, %s1732_s14 }
 0x463   : > { %1020 = vrot.lane.b32.xlu0 %v321_v23, %s1732_s14 }
 0x48a   : > { %547 = vmax.xlane.f32.xlu1 %v546_v18 }
 0x48b   : > { %v551_v45 = vpop.xlane.xlu2 %550 }
 0x48c   : > { %v569_v46 = vsub.f32 %v524_v19, %v551_v45 }
 0x48d   : > { %553 = vmax.xlane.f32.xlu0 %v552_v43 }
 0x48e   : > { %v579_v48 = vmul.f32 1.442695, %v569_v46 }
 0x490   : > { %1660 = vpow2.f32 %v579_v48 }
 0x492   : > { %556 = vmax.xlane.f32.xlu1 %v555_v47 }
 0x493   : > { %v560_v50 = vpop.xlane.xlu2 %559 }
 0x494   : > { %v572_v52 = vsub.f32 %v533_v28, %v560_v50 }
 0x495   : > { %562 = vmax.xlane.f32.xlu0 %v561_v49 }
 0x496   : > { %v585_v54 = vmul.f32 1.442695, %v572_v52  ;;  %v1972_v55 = vpop.eup %1660 }
 0x497   : > { %v597_v56 = vsel %vm542_vm11, %v1972_v55, 0.0 }
 0x498   : > { %1662 = vpow2.f32 %v585_v54 }
 0x49a   : > { %565 = vmax.xlane.f32.xlu1 %v564_v53 }
 0x49e   : > { %v1976_v57 = vpop.eup %1662 }
 0x49f   : > { %v606_v61 = vsel %vm542_vm11, %v1976_v57, 0.0 }
 0x4a2   : > { %598 = vadd.xlane.f32.xlu1 %v597_v56 }
 0x4aa   : > { %v939_v63 = vpop.xlane.xlu1 %938  ;;  %607 = vadd.xlane.f32.xlu1 %v606_v61 }
 0x4ab   : > { %1664 = vrcp.f32 %v939_v63  ;;  %v954_v4 = vand.u32 2147483648, %v939_v63  ;;  %v952_v6 = vand.u32 2147483647, %v939_v63  ;;  %vm948_vm4 = vweird.f32 %v939_v63 }
 0x4ad   : > { %v955_v9 = vor.u32 1.1754944e-38, %v954_v4  ;;  %vm953_vm6 = vcmp.eq.f32.partialorder %v952_v6, 8.507059e+37 }
 0x4b1   : > { %v1665_v0 = vpop.eup %1664 }
 0x4b2   : > { %v944_v1 = vmul.f32 %v1665_v0, %v939_v63  ;;  %v942_v2 = vpop.xlane.xlu0 %941  ;;  %vm949_vm3 = vweird.f32 %v1665_v0 }
 0x4b3   : > { %1666 = vrcp.f32 %v942_v2  ;;  %vm950_vm5 = vmor %vm948_vm4, %vm949_vm3  ;;  %v969_v15 = vand.u32 2147483648, %v942_v2  ;;  %v967_v20 = vand.u32 2147483647, %v942_v2  ;;  %vm963_vm8 = vweird.f32 %v942_v2 }
 0x4b4   : > { %v945_v3 = vsub.f32 1.0, %v944_v1 }
 0x4b5   : > { %v970_v22 = vor.u32 1.1754944e-38, %v969_v15  ;;  %vm968_vm10 = vcmp.eq.f32.partialorder %v967_v20, 8.507059e+37 }
 0x4b6   : > { %v946_v5 = vmul.f32 %v1665_v0, %v945_v3 }
 0x4b8   : > { %v947_v7 = vadd.f32 %v1665_v0, %v946_v5 }
 0x4b9   : > { %v1667_v8 = vpop.eup %1666 }
 0x4ba   : > { %v951_v10 = vsel %vm950_vm5, %v1665_v0, %v947_v7  ;;  %v959_v11 = vmul.f32 %v1667_v8, %v942_v2  ;;  %vm964_vm7 = vweird.f32 %v1667_v8 }
 0x4bb   : > { %v956_v12 = vsel %vm953_vm6, %v955_v9, %v951_v10  ;;  %vm965_vm9 = vmor %vm963_vm8, %vm964_vm7  ;;  %vm1440_vm6 = vcmask 261120  }
 0x4bc   : > { %v960_v13 = vsub.f32 1.0, %v959_v11  ;;  %v957_v14 = vmul.f32 %v1930_v34, %v956_v12 }
 0x4be   : > { %v961_v16 = vmul.f32 %v1667_v8, %v960_v13  ;;  %1592 = vmatmul.msk.f32.vlgmr.msrb.gmra.mxu0 %vm389_vm1, %v957_v14 }
 0x4c0   : > { %v962_v21 = vadd.f32 %v1667_v8, %v961_v16 }
 0x4c2   : > { %v1025_v23 = vpop.permute.xlu1 %1024  ;;  %v966_v19 = vsel %vm965_vm9, %v1667_v8, %v962_v21 }
 0x4c3   : > { %1594 = vmatpush.xpose.msk.msra.mxu0 %vm356_vm0, %v1025_v23  ;;  %v971_v27 = vsel %vm968_vm10, %v970_v22, %v966_v19 }
 0x4c4   : > { %v972_v28 = vmul.f32 %v1934_v37, %v971_v27  ;;  %v331_v37 = vld [vmem:[%s2239_s4 + $0x18] sm:$0xff] }
 0x4c5   : > { %v1009_v17 = vpop.permute.xlu0 %1008  ;;  %1397 = vmatpush.msrb.mxu2 %v331_v37 }
 0x4c6   : > { %1593 = vmatmul.msk.f32.gmra.mxu0 %vm389_vm1, %v972_v28 }
 0x4c7   : > { %1595 = vmatpush.xpose.msk.msra.mxu0 %vm356_vm0, %v1023_v62 }
 0x4ca   : > { %v1011_v29 = vpop.permute.xlu1 %1010 }
 0x4cb   : > { %1596 = vmatpush.xpose.msk.msra.mxu0 %vm356_vm0, %v1891_v60 }
 0x4cd   : > { %v1015_v30 = vpop.permute.xlu0 %1014 }
 0x4ce   : > { %1597 = vmatmul.msk.f32.vlgmr.msra.gmra.mxu0 %vm356_vm0, %v1952_v40 }
 0x4d2   : > { %v1017_v31 = vpop.permute.xlu1 %1016 }
 0x4d5   : > { %v1021_v34 = vpop.permute.xlu0 %1020 }
 0x4d6   : > { %1598 = vmatmul.msk.f32.gmra.mxu0 %vm356_vm0, %v1009_v17 }
 0x4de   : > { %1599 = vmatmul.msk.f32.gmra.mxu0 %vm356_vm0, %v1011_v29 }
 0x4e6   : > { %1600 = vmatmul.msk.f32.gmra.mxu0 %vm356_vm0, %v1954_v41 }
 0x4ee   : > { %1601 = vmatmul.msk.f32.gmra.mxu0 %vm356_vm0, %v1015_v30 }
 0x4f6   : > { %1602 = vmatmul.msk.f32.gmra.mxu0 %vm356_vm0, %v1017_v31 }
 0x4fd   : > { %v548_v32 = vpop.xlane.xlu1 %547 }
 0x4fe   : > { %v568_v60 = vsub.f32 %v1924_v25, %v548_v32  ;;  %1603 = vmatmul.msk.f32.gmra.mxu0 %vm356_vm0, %v1956_v42  ;;  %v330_v25 = vld [vmem:[%s2239_s4 + $0x10] sm:$0xff] }
 0x4ff   : > { %1398 = vmatpush.msrb.mxu2 %v330_v25 }
 0x500   : > { %v577_v33 = vmul.f32 1.442695, %v568_v60  ;;  %v554_v40 = vpop.xlane.xlu0 %553 }
 0x501   : > { %v570_v41 = vsub.f32 %v1922_v24, %v554_v40 }
 0x502   : > { %1668 = vpow2.f32 %v577_v33 }
 0x503   : > { %v581_v18 = vmul.f32 1.442695, %v570_v41 }
 0x505   : > { %v557_v43 = vpop.xlane.xlu1 %556  ;;  %1670 = vpow2.f32 %v581_v18  ;;  %v332_v18 = vld [vmem:[%s2072_s22] sm:$0xff] }
 0x506   : > { %1604 = vmatmul.msk.f32.gmra.mxu0 %vm356_vm0, %v1021_v34  ;;  %v571_v45 = vsub.f32 %v1926_v26, %v557_v43  ;;  %v850_v43 = vpop.f32.mrf.mxu1 }
 0x508   : > { %v2000_v35 = vpop.eup %1668  ;;  %v583_v48 = vmul.f32 1.442695, %v571_v45  ;;  %v563_v26 = vpop.xlane.xlu0 %562 }
 0x509   : > { %v594_v36 = vsel %vm542_vm11, %v2000_v35, 0.0  ;;  %v573_v54 = vsub.f32 %v1962_v44, %v563_v26 }
 0x50a   : > { %595 = vadd.xlane.f32.xlu2 %v594_v36  ;;  %1672 = vpow2.f32 %v583_v48 }
 0x50b   : > { %v2018_v49 = vpop.eup %1670  ;;  %v587_v63 = vmul.f32 1.442695, %v573_v54 }
 0x50c   : > { %v600_v24 = vsel %vm542_vm11, %v2018_v49, 0.0 }
 0x50d   : > { %v566_v0 = vpop.xlane.xlu1 %565  ;;  %1674 = vpow2.f32 %v587_v63 }
 0x50e   : > { %v574_v1 = vsub.f32 %v1968_v51, %v566_v0 }
 0x510   : > { %v2026_v53 = vpop.eup %1672  ;;  %v589_v3 = vmul.f32 1.442695, %v574_v1 }
 0x511   : > { %v603_v61 = vsel %vm542_vm11, %v2026_v53, 0.0 }
 0x512   : > { %1676 = vpow2.f32 %v589_v3 }
 0x513   : > { %v2040_v4 = vpop.eup %1674 }
 0x514   : > { %v609_v6 = vsel %vm542_vm11, %v2040_v4, 0.0 }
 0x515   : > { %v599_v11 = vpop.xlane.xlu1 %598 }
 0x516   : > { %1678 = vrcp.f32 %v599_v11  ;;  %vm650_vm12 = vweird.f32 %v599_v11  ;;  %v656_v32 = vand.u32 2147483648, %v599_v11  ;;  %v654_v36 = vand.u32 2147483647, %v599_v11 }
 0x518   : > { %v2048_v51 = vpop.eup %1676  ;;  %vm655_vm5 = vcmp.eq.f32.partialorder %v654_v36, 8.507059e+37 }
 0x519   : > { %v612_v9 = vsel %vm542_vm11, %v2048_v51, 0.0 }
 0x51c   : > { %v1679_v15 = vpop.eup %1678 }
 0x51d   : > { %v646_v16 = vmul.f32 %v1679_v15, %v599_v11  ;;  %vm651_vm14 = vweird.f32 %v1679_v15  ;;  %v2092_v0 = vpop.xlane.xlu1 %607 }
 0x51e   : > { %vm652_vm4 = vmor %vm650_vm12, %vm651_vm14 }
 0x51f   : > { %v647_v23 = vsub.f32 1.0, %v646_v16 }
 0x521   : > { %v648_v17 = vmul.f32 %v1679_v15, %v647_v23 }
 0x523   : > { %v649_v34 = vadd.f32 %v1679_v15, %v648_v17 }
 0x525   : > { %v653_v40 = vsel %vm652_vm4, %v1679_v15, %v649_v34 }
 0x53b   : > { %v1000_v38 = vpop.f32.mrf.mxu0 }
 0x53c   : > { %1614 = vmatmul.msk.f32.vlgmr.msrb.gmra.mxu2 %vm356_vm0, %v1000_v38  ;;  %v657_v38 = vor.u32 1.1754944e-38, %v656_v32 }
 0x53e   : > { %v658_v41 = vsel %vm655_vm5, %v657_v38, %v653_v40 }
 0x543   : > { %v1003_v42 = vpop.f32.mrf.mxu0 }
 0x544   : > { %1615 = vmatmul.msk.f32.gmra.mxu2 %vm356_vm0, %v1003_v42  ;;  %v659_v42 = vmul.f32 %v1972_v55, %v658_v41  ;;  %v333_v55 = vld [vmem:[%s2072_s22 + $0x8] sm:$0xff] }
 0x54b   : > { %v2014_v46 = vpop.f32.mrf.mxu0 }
 0x54c   : > { %v1087_v47 = vsel %vm542_vm11, %v2014_v46, -inf }
 0x54d   : > { %1088 = vmax.xlane.f32.xlu0 %v1087_v47 }
 0x553   : > { %v2020_v50 = vpop.f32.mrf.mxu0 }
 0x554   : > { %v1090_v52 = vsel %vm542_vm11, %v2020_v50, -inf }
 0x555   : > { %601 = vadd.xlane.f32.xlu0 %v600_v24  ;;  %1091 = vmax.xlane.f32.xlu2 %v1090_v52 }
 0x55b   : > { %v2029_v56 = vpop.f32.mrf.mxu0 }
 0x55c   : > { %v1093_v62 = vsel %vm542_vm11, %v2029_v56, -inf }
 0x55d   : > { %604 = vadd.xlane.f32.xlu2 %v603_v61  ;;  %1094 = vmax.xlane.f32.xlu1 %v1093_v62  ;;  %v853_v61 = vpop.f32.mrf.mxu1 }
 0x563   : > { %v2036_v2 = vpop.f32.mrf.mxu0 }
 0x564   : > { %v1096_v44 = vsel %vm542_vm11, %v2036_v2, -inf }
 0x565   : > { %1097 = vmax.xlane.f32.xlu0 %v1096_v44 }
 0x56b   : > { %v2042_v5 = vpop.f32.mrf.mxu0 }
 0x56c   : > { %v1099_v7 = vsel %vm542_vm11, %v2042_v5, -inf }
 0x56d   : > { %610 = vadd.xlane.f32.xlu0 %v609_v6  ;;  %1100 = vmax.xlane.f32.xlu2 %v1099_v7 }
 0x573   : > { %v2050_v8 = vpop.f32.mrf.mxu0 }
 0x574   : > { %v1102_v10 = vsel %vm542_vm11, %v2050_v8, -inf }
 0x575   : > { %613 = vadd.xlane.f32.xlu2 %v612_v9  ;;  %1103 = vmax.xlane.f32.xlu1 %v1102_v10 }
 0x57b   : > { %v2056_v12 = vpop.f32.mrf.mxu0 }
 0x57c   : > { %v1105_v13 = vsel %vm542_vm11, %v2056_v12, -inf }
 0x57d   : > { %1106 = vmax.xlane.f32.xlu0 %v1105_v13  ;;  %v596_v14 = vpop.xlane.xlu2 %595 }
 0x57e   : > { %1680 = vrcp.f32 %v596_v14  ;;  %v641_v28 = vand.u32 2147483648, %v596_v14  ;;  %v639_v30 = vand.u32 2147483647, %v596_v14  ;;  %vm635_vm13 = vweird.f32 %v596_v14 }
 0x580   : > { %v642_v60 = vor.u32 1.1754944e-38, %v641_v28  ;;  %vm640_vm3 = vcmp.eq.f32.partialorder %v639_v30, 8.507059e+37 }
 0x583   : > { %v2060_v20 = vpop.f32.mrf.mxu0 }
 0x584   : > { %v1681_v21 = vpop.eup %1680  ;;  %v1108_v22 = vsel %vm542_vm11, %v2060_v20, -inf }
 0x585   : > { %v631_v19 = vmul.f32 %v1681_v21, %v596_v14  ;;  %1109 = vmax.xlane.f32.xlu2 %v1108_v22  ;;  %vm636_vm1 = vweird.f32 %v1681_v21 }
 0x586   : > { %vm637_vm15 = vmor %vm635_vm13, %vm636_vm1  ;;  %vm695_vm13 = vweird.f32 %v2092_v0 }
 0x587   : > { %v632_v27 = vsub.f32 1.0, %v631_v19 }
 0x589   : > { %v633_v29 = vmul.f32 %v1681_v21, %v632_v27 }
 0x58b   : > { %v634_v31 = vadd.f32 %v1681_v21, %v633_v29 }
 0x58d   : > { %v638_v33 = vsel %vm637_vm15, %v1681_v21, %v634_v31 }
 0x58e   : > { %v643_v37 = vsel %vm640_vm3, %v642_v60, %v638_v33 }
 0x58f   : > { %v644_v25 = vmul.f32 %v2000_v35, %v643_v37  ;;  %v2077_v35 = vld [vmem:[%s2240_s5] ss:$0 sm:$0xff] }
 0x590   : > { %v346_v45 = vadd.f32 %v2077_v35, %v332_v18  ;;  %v347_v54 = vadd.f32 %v2077_v35, %v333_v55 }
 0x591   : > { %1571 = vmatmul.msk.f32.vlgmr.msra.gmra.mxu3 %vm542_vm11, %v644_v25 }
 0x592   : > { %v880_v47 = vadd.f32 %v850_v43, %v346_v45  ;;  %v881_v63 = vadd.f32 %v853_v61, %v347_v54 }
 0x599   : > { %1572 = vmatmul.msk.f32.gmra.mxu3 %vm542_vm11, %v659_v42 }
 0x5bf   : > { %v1400_v48 = vpop.f32.mrf.mxu2 }
 0x5c0   : > { %v1430_v24 = vadd.f32 %v1400_v48, %v880_v47  ;;  %v1089_v52 = vpop.xlane.xlu0 %1088 }
 0x5c1   : > { %v1111_v26 = vsub.f32 %v2014_v46, %v1089_v52 }
 0x5c2   : > { %1441 = vst.msk [vmem:[%s2085_s28] sm:$0xff] %vm1440_vm6, %v1430_v24 }
 0x5c3   : > { %v1119_v62 = vmul.f32 1.442695, %v1111_v26  ;;  %v699_v26 = vand.u32 2147483647, %v2092_v0 }
 0x5c5   : > { %1682 = vpow2.f32 %v1119_v62  ;;  %vm700_vm5 = vcmp.eq.f32.partialorder %v699_v26, 8.507059e+37 }
 0x5c7   : > { %v1403_v1 = vpop.f32.mrf.mxu2 }
 0x5c8   : > { %v1431_v44 = vadd.f32 %v1403_v1, %v881_v63  ;;  %v602_v3 = vpop.xlane.xlu0 %601  ;;  %v1092_v6 = vpop.xlane.xlu2 %1091 }
 0x5c9   : > { %1684 = vrcp.f32 %v602_v3  ;;  %v1112_v7 = vsub.f32 %v2020_v50, %v1092_v6  ;;  %v671_v23 = vand.u32 2147483648, %v602_v3  ;;  %v669_v17 = vand.u32 2147483647, %v602_v3 }
 0x5ca   : > { %1442 = vst.msk [vmem:[%s2085_s28 + $0x8] sm:$0xff] %vm1440_vm6, %v1431_v44  ;;  %1686 = vrcp.f32 %v2092_v0  ;;  %vm665_vm8 = vweird.f32 %v602_v3 }
 0x5cb   : > { %v2097_v46 = vpop.eup %1682  ;;  %v1121_v9 = vmul.f32 1.442695, %v1112_v7  ;;  %v672_v31 = vor.u32 1.1754944e-38, %v671_v23  ;;  %vm670_vm10 = vcmp.eq.f32.partialorder %v669_v17, 8.507059e+37 }
 0x5cc   : > { %v1135_v10 = vsel %vm542_vm11, %v2097_v46, 0.0 }
 0x5cd   : > { %1688 = vpow2.f32 %v1121_v9  ;;  %1136 = vadd.xlane.f32.xlu1 %v1135_v10 }
 0x5cf   : > { %v1685_v11 = vpop.eup %1684 }
 0x5d0   : > { %v661_v13 = vmul.f32 %v1685_v11, %v602_v3  ;;  %v1095_v14 = vpop.xlane.xlu1 %1094  ;;  %v605_v15 = vpop.xlane.xlu2 %604  ;;  %vm666_vm7 = vweird.f32 %v1685_v11 }
 0x5d1   : > { %v1113_v16 = vsub.f32 %v2029_v56, %v1095_v14  ;;  %1690 = vrcp.f32 %v605_v15  ;;  %v2103_v50 = vpop.eup %1686  ;;  %vm667_vm9 = vmor %vm665_vm8, %vm666_vm7  ;;  %v686_v18 = vand.u32 2147483648, %v605_v15  ;;  %vm680_vm12 = vweird.f32 %v605_v15 }
 0x5d2   : > { %v662_v21 = vsub.f32 1.0, %v661_v13  ;;  %v691_v29 = vmul.f32 %v2103_v50, %v2092_v0  ;;  %vm696_vm15 = vweird.f32 %v2103_v50 }
 0x5d3   : > { %v2105_v22 = vpop.eup %1688  ;;  %v1123_v19 = vmul.f32 1.442695, %v1113_v16  ;;  %v687_v55 = vor.u32 1.1754944e-38, %v686_v18  ;;  %vm2125_vm4 = vmor %vm695_vm13, %vm696_vm15 }
 0x5d4   : > { %v663_v27 = vmul.f32 %v1685_v11, %v662_v21  ;;  %v1138_v28 = vsel %vm542_vm11, %v2105_v22, 0.0  ;;  %v692_v34 = vsub.f32 1.0, %v691_v29 }
 0x5d5   : > { %1692 = vpow2.f32 %v1123_v19  ;;  %1139 = vadd.xlane.f32.xlu0 %v1138_v28 }
 0x5d6   : > { %v664_v56 = vadd.f32 %v1685_v11, %v663_v27  ;;  %v693_v45 = vmul.f32 %v2103_v50, %v692_v34 }
 0x5d7   : > { %v1691_v30 = vpop.eup %1690 }
 0x5d8   : > { %v676_v32 = vmul.f32 %v1691_v30, %v605_v15  ;;  %v1098_v60 = vpop.xlane.xlu0 %1097  ;;  %v668_v33 = vsel %vm667_vm9, %v1685_v11, %v664_v56  ;;  %vm681_vm1 = vweird.f32 %v1691_v30  ;;  %v694_v61 = vadd.f32 %v2103_v50, %v693_v45 }
 0x5d9   : > { %v1114_v36 = vsub.f32 %v2036_v2, %v1098_v60  ;;  %v673_v37 = vsel %vm670_vm10, %v672_v31, %v668_v33  ;;  %v684_v2 = vand.u32 2147483647, %v605_v15  ;;  %vm682_vm14 = vmor %vm680_vm12, %vm681_vm1 }
 0x5da   : > { %v677_v25 = vsub.f32 1.0, %v676_v32  ;;  %v674_v38 = vmul.f32 %v2018_v49, %v673_v37  ;;  %v701_v49 = vand.u32 2147483648, %v2092_v0 }
 0x5db   : > { %v2113_v40 = vpop.eup %1692  ;;  %v1125_v41 = vmul.f32 1.442695, %v1114_v36  ;;  %vm685_vm3 = vcmp.eq.f32.partialorder %v684_v2, 8.507059e+37 }
 0x5dc   : > { %v678_v42 = vmul.f32 %v1691_v30, %v677_v25  ;;  %1573 = vmatmul.msk.f32.gmra.mxu3 %vm542_vm11, %v674_v38  ;;  %v1141_v43 = vsel %vm542_vm11, %v2113_v40, 0.0  ;;  %v702_v6 = vor.u32 1.1754944e-38, %v701_v49 }
 0x5dd   : > { %1694 = vpow2.f32 %v1125_v41  ;;  %1142 = vadd.xlane.f32.xlu2 %v1141_v43 }
 0x5de   : > { %v679_v47 = vadd.f32 %v1691_v30, %v678_v42 }
 0x5e0   : > { %v611_v48 = vpop.xlane.xlu0 %610  ;;  %v1101_v24 = vpop.xlane.xlu2 %1100  ;;  %v683_v52 = vsel %vm682_vm14, %v1691_v30, %v679_v47 }
 0x5e1   : > { %1696 = vrcp.f32 %v611_v48  ;;  %v1115_v54 = vsub.f32 %v2042_v5, %v1101_v24  ;;  %v688_v62 = vsel %vm685_vm3, %v687_v55, %v683_v52  ;;  %v698_v5 = vsel %vm2125_vm4, %v2103_v50, %v694_v61 }
 0x5e2   : > { %v689_v3 = vmul.f32 %v2026_v53, %v688_v62  ;;  %v703_v53 = vsel %vm700_vm5, %v702_v6, %v698_v5  ;;  %v716_v14 = vand.u32 2147483648, %v611_v48  ;;  %vm710_vm8 = vweird.f32 %v611_v48 }
 0x5e3   : > { %v2129_v1 = vpop.eup %1694  ;;  %v1127_v44 = vmul.f32 1.442695, %v1115_v54  ;;  %v704_v15 = vmul.f32 %v1976_v57, %v703_v53 }
 0x5e4   : > { %v1144_v0 = vsel %vm542_vm11, %v2129_v1, 0.0  ;;  %1574 = vmatmul.msk.f32.gmra.mxu3 %vm542_vm11, %v689_v3  ;;  %v717_v19 = vor.u32 1.1754944e-38, %v716_v14 }
 0x5e5   : > { %1698 = vpow2.f32 %v1127_v44  ;;  %1145 = vadd.xlane.f32.xlu2 %v1144_v0 }
 0x5e6   : > { %1282 = vrot.lane.b32.xlu1 %v1878_v58, %s1732_s14  ;;  %v714_v58 = vand.u32 2147483647, %v611_v48 }
 0x5e7   : > { %v1697_v7 = vpop.eup %1696 }
 0x5e8   : > { %v706_v9 = vmul.f32 %v1697_v7, %v611_v48  ;;  %v614_v10 = vpop.xlane.xlu2 %613  ;;  %vm711_vm7 = vweird.f32 %v1697_v7  ;;  %vm715_vm10 = vcmp.eq.f32.partialorder %v714_v58, 8.507059e+37  ;;  %v1104_v25 = vpop.xlane.xlu1 %1103 }
 0x5e9   : > { %1700 = vrcp.f32 %v614_v10  ;;  %1280 = vrot.lane.b32.xlu0 %v1881_v59, %s1732_s14  ;;  %vm712_vm9 = vmor %vm710_vm8, %vm711_vm7  ;;  %v731_v29 = vand.u32 2147483648, %v614_v10  ;;  %v729_v30 = vand.u32 2147483647, %v614_v10  ;;  %vm725_vm12 = vweird.f32 %v614_v10 }
 0x5ea   : > { %v707_v11 = vsub.f32 1.0, %v706_v9  ;;  %v1116_v38 = vsub.f32 %v2050_v8, %v1104_v25 }
 0x5eb   : > { %v2142_v13 = vpop.eup %1698  ;;  %v732_v32 = vor.u32 1.1754944e-38, %v731_v29  ;;  %vm730_vm14 = vcmp.eq.f32.partialorder %v729_v30, 8.507059e+37 }
 0x5ec   : > { %v708_v16 = vmul.f32 %v1697_v7, %v707_v11  ;;  %v1147_v50 = vsel %vm542_vm11, %v2142_v13, 0.0  ;;  %1575 = vmatmul.msk.f32.gmra.mxu3 %vm542_vm11, %v704_v15  ;;  %v1129_v18 = vmul.f32 1.442695, %v1116_v38 }
 0x5ed   : > { %1148 = vadd.xlane.f32.xlu2 %v1147_v50 }
 0x5ee   : > { %v709_v21 = vadd.f32 %v1697_v7, %v708_v16 }
 0x5ef   : > { %v1701_v23 = vpop.eup %1700 }
 0x5f0   : > { %v721_v59 = vmul.f32 %v1701_v23, %v614_v10  ;;  %v713_v27 = vsel %vm712_vm9, %v1697_v7, %v709_v21  ;;  %vm726_vm1 = vweird.f32 %v1701_v23  ;;  %v1107_v41 = vpop.xlane.xlu0 %1106 }
 0x5f1   : > { %v718_v28 = vsel %vm715_vm10, %v717_v19, %v713_v27  ;;  %vm727_vm13 = vmor %vm725_vm12, %vm726_vm1  ;;  %v1117_v42 = vsub.f32 %v2056_v12, %v1107_v41 }
 0x5f2   : > { %v722_v17 = vsub.f32 1.0, %v721_v59  ;;  %v719_v57 = vmul.f32 %v2040_v4, %v718_v28 }
 0x5f4   : > { %v723_v56 = vmul.f32 %v1701_v23, %v722_v17  ;;  %1576 = vmatmul.msk.f32.gmra.mxu3 %vm542_vm11, %v719_v57 }
 0x5f6   : > { %v724_v31 = vadd.f32 %v1701_v23, %v723_v56 }
 0x5f8   : > { %v1110_v60 = vpop.xlane.xlu2 %1109  ;;  %v728_v33 = vsel %vm727_vm13, %v1701_v23, %v724_v31 }
 0x5f9   : > { %v1118_v34 = vsub.f32 %v2060_v20, %v1110_v60  ;;  %v733_v36 = vsel %vm730_vm14, %v732_v32, %v728_v33  ;;  %v1131_v20 = vmul.f32 1.442695, %v1117_v42 }
 0x5fa   : > { %v734_v37 = vmul.f32 %v2048_v51, %v733_v36 }
 0x5fb   : > { %v1133_v4 = vmul.f32 1.442695, %v1118_v34 }
 0x5fc   : > { %1577 = vmatmul.msk.f32.gmra.mxu3 %vm542_vm11, %v734_v37 }
 0x5fd   : > { %1702 = vpow2.f32 %v1133_v4 }
 0x5fe   : > { %1704 = vpow2.f32 %v1129_v18 }
 0x5ff   : > { %1706 = vpow2.f32 %v1131_v20 }
 0x603   : > { %v2155_v43 = vpop.eup %1702 }
 0x604   : > { %v1156_v45 = vsel %vm542_vm11, %v2155_v43, 0.0  ;;  %v2159_v51 = vpop.eup %1704 }
 0x605   : > { %1157 = vadd.xlane.f32.xlu2 %v1156_v45  ;;  %v2161_v2 = vpop.eup %1706  ;;  %v1150_v8 = vsel %vm542_vm11, %v2159_v51, 0.0 }
 0x606   : > { %v1153_v12 = vsel %vm542_vm11, %v2161_v2, 0.0 }
 0x610   : > { %1151 = vadd.xlane.f32.xlu1 %v1150_v8 }
 0x613   : > { %1154 = vadd.xlane.f32.xlu0 %v1153_v12 }
 0x614   : > { %v782_v47 = vpop.f32.mrf.mxu3 }
 0x615   : > { %1581 = vmatmul.msk.f32.gmra.mxu1 %vm356_vm0, %v782_v47 }
 0x61c   : > { %v785_v49 = vpop.f32.mrf.mxu3 }
 0x61d   : > { %1582 = vmatmul.msk.f32.gmra.mxu1 %vm356_vm0, %v785_v49 }
 0x640   : > { %v1137_v55 = vpop.xlane.xlu1 %1136 }
 0x641   : > { %1708 = vrcp.f32 %v1137_v55  ;;  %v1170_v6 = vand.u32 2147483648, %v1137_v55  ;;  %vm1164_vm3 = vweird.f32 %v1137_v55  ;;  %v1168_v0 = vand.u32 2147483647, %v1137_v55 }
 0x643   : > { %v1171_v10 = vor.u32 1.1754944e-38, %v1170_v6  ;;  %vm1169_vm5 = vcmp.eq.f32.partialorder %v1168_v0, 8.507059e+37 }
 0x647   : > { %v1709_v48 = vpop.eup %1708 }
 0x648   : > { %v1160_v24 = vmul.f32 %v1709_v48, %v1137_v55  ;;  %v1140_v52 = vpop.xlane.xlu0 %1139  ;;  %vm1165_vm15 = vweird.f32 %v1709_v48 }
 0x649   : > { %1710 = vrcp.f32 %v1140_v52  ;;  %vm1166_vm4 = vmor %vm1164_vm3, %vm1165_vm15  ;;  %v1185_v21 = vand.u32 2147483648, %v1140_v52  ;;  %vm1179_vm8 = vweird.f32 %v1140_v52  ;;  %v1183_v19 = vand.u32 2147483647, %v1140_v52 }
 0x64a   : > { %v1161_v26 = vsub.f32 1.0, %v1160_v24 }
 0x64b   : > { %v1186_v57 = vor.u32 1.1754944e-38, %v1185_v21 }
 0x64c   : > { %v1162_v61 = vmul.f32 %v1709_v48, %v1161_v26 }
 0x64e   : > { %v1163_v44 = vadd.f32 %v1709_v48, %v1162_v61 }
 0x64f   : > { %v1711_v54 = vpop.eup %1710 }
 0x650   : > { %v1175_v62 = vmul.f32 %v1711_v54, %v1140_v52  ;;  %v1143_v63 = vpop.xlane.xlu2 %1142  ;;  %v1167_v9 = vsel %vm1166_vm4, %v1709_v48, %v1163_v44  ;;  %vm1180_vm7 = vweird.f32 %v1711_v54 }
 0x651   : > { %1712 = vrcp.f32 %v1143_v63  ;;  %v1172_v15 = vsel %vm1169_vm5, %v1171_v10, %v1167_v9  ;;  %vm1181_vm9 = vmor %vm1179_vm8, %vm1180_vm7  ;;  %v1200_v32 = vand.u32 2147483648, %v1143_v63  ;;  %vm1194_vm1 = vweird.f32 %v1143_v63 }
 0x652   : > { %v1176_v3 = vsub.f32 1.0, %v1175_v62  ;;  %v1173_v23 = vmul.f32 %v2097_v46, %v1172_v15  ;;  %v1198_v60 = vand.u32 2147483647, %v1143_v63 }
 0x653   : > { %v1201_v37 = vor.u32 1.1754944e-38, %v1200_v32 }
 0x654   : > { %v1177_v7 = vmul.f32 %v1711_v54, %v1176_v3  ;;  %vm1199_vm13 = vcmp.eq.f32.partialorder %v1198_v60, 8.507059e+37 }
 0x656   : > { %v1178_v58 = vadd.f32 %v1711_v54, %v1177_v7 }
 0x657   : > { %v1713_v5 = vpop.eup %1712 }
 0x658   : > { %v1190_v53 = vmul.f32 %v1713_v5, %v1143_v63  ;;  %v1283_v11 = vpop.permute.xlu1 %1282  ;;  %v1146_v14 = vpop.xlane.xlu2 %1145  ;;  %v1182_v17 = vsel %vm1181_vm9, %v1711_v54, %v1178_v58  ;;  %vm1195_vm10 = vweird.f32 %v1713_v5 }
 0x659   : > { %1714 = vrcp.f32 %v1146_v14  ;;  %1605 = vmatpush.msk.msrb.mxu3 %vm444_vm2, %v1283_v11  ;;  %vm1184_vm2 = vcmp.eq.f32.partialorder %v1183_v19, 8.507059e+37  ;;  %vm1196_vm12 = vmor %vm1194_vm1, %vm1195_vm10  ;;  %v1215_v18 = vand.u32 2147483648, %v1146_v14  ;;  %vm1209_vm15 = vweird.f32 %v1146_v14 }
 0x65a   : > { %v1191_v16 = vsub.f32 1.0, %v1190_v53  ;;  %v1187_v30 = vsel %vm1184_vm2, %v1186_v57, %v1182_v17  ;;  %v1213_v45 = vand.u32 2147483647, %v1146_v14 }
 0x65b   : > { %v1281_v50 = vpop.permute.xlu0 %1280  ;;  %v1216_v12 = vor.u32 1.1754944e-38, %v1215_v18  ;;  %v856_v18 = vpop.f32.mrf.mxu1 }
 0x65c   : > { %1326 = vmatpush.msrb.mxu3 %v1281_v50  ;;  %v1192_v27 = vmul.f32 %v1713_v5, %v1191_v16  ;;  %vm1214_vm4 = vcmp.eq.f32.partialorder %v1213_v45, 8.507059e+37 }
 0x65e   : > { %1327 = vmatpush.msrb.mxu3 %v1938_v39  ;;  %v1193_v46 = vadd.f32 %v1713_v5, %v1192_v27  ;;  %v1188_v39 = vmul.f32 %v2105_v22, %v1187_v30 }
 0x65f   : > { %v1715_v59 = vpop.eup %1714  ;;  %v788_v28 = vpop.f32.mrf.mxu3  ;;  %1606 = vmatmul.msk.f32.vlgmr.msrb.gmra.mxu3 %vm542_vm11, %v1173_v23 }
 0x660   : > { %v1205_v29 = vmul.f32 %v1715_v59, %v1146_v14  ;;  %1583 = vmatmul.msk.f32.gmra.mxu1 %vm356_vm0, %v788_v28  ;;  %v1149_v56 = vpop.xlane.xlu2 %1148  ;;  %v1197_v36 = vsel %vm1196_vm12, %v1713_v5, %v1193_v46  ;;  %vm1210_vm14 = vweird.f32 %v1715_v59 }
 0x661   : > { %1716 = vrcp.f32 %v1149_v56  ;;  %v1202_v38 = vsel %vm1199_vm13, %v1201_v37, %v1197_v36  ;;  %vm1211_vm3 = vmor %vm1209_vm15, %vm1210_vm14  ;;  %v1230_v48 = vand.u32 2147483648, %v1149_v56  ;;  %vm1224_vm7 = vweird.f32 %v1149_v56 }
 0x662   : > { %v1206_v31 = vsub.f32 1.0, %v1205_v29  ;;  %v1203_v22 = vmul.f32 %v2113_v40, %v1202_v38  ;;  %v1228_v52 = vand.u32 2147483647, %v1149_v56 }
 0x663   : > { %v1231_v26 = vor.u32 1.1754944e-38, %v1230_v48  ;;  %v336_v48 = vld [vmem:[%s2072_s22 + $0x20] sm:$0xff] }
 0x664   : > { %v1207_v34 = vmul.f32 %v1715_v59, %v1206_v31  ;;  %vm1229_vm9 = vcmp.eq.f32.partialorder %v1228_v52, 8.507059e+37 }
 0x666   : > { %v1208_v42 = vadd.f32 %v1715_v59, %v1207_v34 }
 0x667   : > { %v1717_v33 = vpop.eup %1716  ;;  %1607 = vmatmul.msk.f32.gmra.mxu3 %vm542_vm11, %v1188_v39  ;;  %v791_v4 = vpop.f32.mrf.mxu3 }
 0x668   : > { %v1220_v25 = vmul.f32 %v1717_v33, %v1149_v56  ;;  %1584 = vmatmul.msk.f32.gmra.mxu1 %vm356_vm0, %v791_v4  ;;  %v1212_v8 = vsel %vm1211_vm3, %v1715_v59, %v1208_v42  ;;  %vm1225_vm5 = vweird.f32 %v1717_v33  ;;  %v334_v42 = vld [vmem:[%s2072_s22 + $0x10] sm:$0xff] }
 0x669   : > { %v1217_v49 = vsel %vm1214_vm4, %v1216_v12, %v1212_v8  ;;  %vm1226_vm8 = vmor %vm1224_vm7, %vm1225_vm5 }
 0x66a   : > { %v1221_v41 = vsub.f32 1.0, %v1220_v25  ;;  %v1218_v24 = vmul.f32 %v2129_v1, %v1217_v49 }
 0x66c   : > { %v1222_v20 = vmul.f32 %v1717_v33, %v1221_v41 }
 0x66e   : > { %v1223_v55 = vadd.f32 %v1717_v33, %v1222_v20  ;;  %v335_v20 = vld [vmem:[%s2072_s22 + $0x18] sm:$0xff] }
 0x66f   : > { %1608 = vmatmul.msk.f32.gmra.mxu3 %vm542_vm11, %v1203_v22  ;;  %v794_v47 = vpop.f32.mrf.mxu3  ;;  %v348_v22 = vadd.f32 %v2077_v35, %v334_v42  ;;  %v349_v49 = vadd.f32 %v2077_v35, %v335_v20 }
 0x670   : > { %1585 = vmatmul.msk.f32.gmra.mxu1 %vm356_vm0, %v794_v47  ;;  %v1227_v40 = vsel %vm1226_vm8, %v1717_v33, %v1223_v55 }
 0x671   : > { %v1232_v61 = vsel %vm1229_vm9, %v1231_v26, %v1227_v40  ;;  %v882_v45 = vadd.f32 %v856_v18, %v348_v22  ;;  %v350_v26 = vadd.f32 %v2077_v35, %v336_v48 }
 0x672   : > { %v1233_v62 = vmul.f32 %v2142_v13, %v1232_v61  ;;  %v337_v61 = vld [vmem:[%s2072_s22 + $0x28] sm:$0xff] }
 0x677   : > { %1609 = vmatmul.msk.f32.gmra.mxu3 %vm542_vm11, %v1218_v24  ;;  %v797_v54 = vpop.f32.mrf.mxu3 }
 0x678   : > { %1586 = vmatmul.msk.f32.gmra.mxu1 %vm356_vm0, %v797_v54  ;;  %v1158_v44 = vpop.xlane.xlu2 %1157 }
 0x679   : > { %v1275_v46 = vand.u32 2147483648, %v1158_v44  ;;  %vm1269_vm5 = vweird.f32 %v1158_v44  ;;  %v1273_v32 = vand.u32 2147483647, %v1158_v44 }
 0x67b   : > { %vm1274_vm8 = vcmp.eq.f32.partialorder %v1273_v32, 8.507059e+37 }
 0x67f   : > { %1610 = vmatmul.msk.f32.gmra.mxu3 %vm542_vm11, %v1233_v62  ;;  %v800_v63 = vpop.f32.mrf.mxu3 }
 0x680   : > { %1587 = vmatmul.msk.f32.gmra.mxu1 %vm356_vm0, %v800_v63 }
 0x683   : > { %v1152_v1 = vpop.xlane.xlu1 %1151 }
 0x684   : > { %1718 = vrcp.f32 %v1152_v1  ;;  %v1245_v10 = vand.u32 2147483648, %v1152_v1  ;;  %v1243_v14 = vand.u32 2147483647, %v1152_v1  ;;  %vm1239_vm10 = vweird.f32 %v1152_v1 }
 0x685   : > { %1720 = vrcp.f32 %v1158_v44 }
 0x686   : > { %v1155_v3 = vpop.xlane.xlu0 %1154  ;;  %v1246_v50 = vor.u32 1.1754944e-38, %v1245_v10  ;;  %vm1244_vm12 = vcmp.eq.f32.partialorder %v1243_v14, 8.507059e+37 }
 0x687   : > { %1722 = vrcp.f32 %v1155_v3  ;;  %v1260_v59 = vand.u32 2147483648, %v1155_v3  ;;  %vm1254_vm14 = vweird.f32 %v1155_v3  ;;  %v1258_v28 = vand.u32 2147483647, %v1155_v3 }
 0x689   : > { %v1261_v56 = vor.u32 1.1754944e-38, %v1260_v59  ;;  %vm1259_vm3 = vcmp.eq.f32.partialorder %v1258_v28, 8.507059e+37 }
 0x68a   : > { %v1719_v6 = vpop.eup %1718 }
 0x68b   : > { %v1235_v0 = vmul.f32 %v1719_v6, %v1152_v1  ;;  %v1721_v5 = vpop.eup %1720  ;;  %vm1240_vm2 = vweird.f32 %v1719_v6  ;;  %v351_v1 = vadd.f32 %v2077_v35, %v337_v61 }
 0x68c   : > { %v1265_v11 = vmul.f32 %v1721_v5, %v1158_v44  ;;  %vm1241_vm1 = vmor %vm1239_vm10, %vm1240_vm2  ;;  %vm1270_vm4 = vweird.f32 %v1721_v5 }
 0x68d   : > { %v1723_v7 = vpop.eup %1722  ;;  %v1236_v9 = vsub.f32 1.0, %v1235_v0  ;;  %vm1271_vm7 = vmor %vm1269_vm5, %vm1270_vm4 }
 0x68e   : > { %v1250_v53 = vmul.f32 %v1723_v7, %v1155_v3  ;;  %v1266_v21 = vsub.f32 1.0, %v1265_v11  ;;  %vm1255_vm13 = vweird.f32 %v1723_v7 }
 0x68f   : > { %v1237_v13 = vmul.f32 %v1719_v6, %v1236_v9  ;;  %vm1256_vm15 = vmor %vm1254_vm14, %vm1255_vm13 }
 0x690   : > { %v1251_v15 = vsub.f32 1.0, %v1250_v53  ;;  %v1267_v57 = vmul.f32 %v1721_v5, %v1266_v21 }
 0x691   : > { %v1238_v16 = vadd.f32 %v1719_v6, %v1237_v13  ;;  %v339_v13 = vld [vmem:[%s2072_s22 + $0x38] sm:$0xff] }
 0x692   : > { %v1252_v58 = vmul.f32 %v1723_v7, %v1251_v15  ;;  %v1268_v31 = vadd.f32 %v1721_v5, %v1267_v57  ;;  %v859_v8 = vpop.f32.mrf.mxu1  ;;  %v353_v15 = vadd.f32 %v2077_v35, %v339_v13 }
 0x693   : > { %v1242_v23 = vsel %vm1241_vm1, %v1719_v6, %v1238_v16  ;;  %v883_v55 = vadd.f32 %v859_v8, %v349_v49  ;;  %v338_v6 = vld [vmem:[%s2072_s22 + $0x30] sm:$0xff] }
 0x694   : > { %v1253_v19 = vadd.f32 %v1723_v7, %v1252_v58  ;;  %v1247_v27 = vsel %vm1244_vm12, %v1246_v50, %v1242_v23  ;;  %v1272_v60 = vsel %vm1271_vm7, %v1721_v5, %v1268_v31  ;;  %v340_v50 = vld [vmem:[%s2072_s22 + $0x40] sm:$0xff] }
 0x695   : > { %v1248_v17 = vmul.f32 %v2159_v51, %v1247_v27  ;;  %v1276_v51 = vor.u32 1.1754944e-38, %v1275_v46  ;;  %v341_v27 = vld [vmem:[%s2072_s22 + $0x48] sm:$0xff] }
 0x696   : > { %v1257_v29 = vsel %vm1256_vm15, %v1723_v7, %v1253_v19  ;;  %v352_v7 = vadd.f32 %v2077_v35, %v338_v6  ;;  %v354_v19 = vadd.f32 %v2077_v35, %v340_v50  ;;  %v355_v57 = vadd.f32 %v2077_v35, %v341_v27 }
 0x697   : > { %1611 = vmatmul.msk.f32.gmra.mxu3 %vm542_vm11, %v1248_v17  ;;  %v1262_v30 = vsel %vm1259_vm3, %v1261_v56, %v1257_v29  ;;  %v1277_v33 = vsel %vm1274_vm8, %v1276_v51, %v1272_v60 }
 0x698   : > { %v1263_v39 = vmul.f32 %v2161_v2, %v1262_v30  ;;  %v1278_v34 = vmul.f32 %v2155_v43, %v1277_v33 }
 0x69a   : > { %v862_v40 = vpop.f32.mrf.mxu1 }
 0x69b   : > { %v884_v54 = vadd.f32 %v862_v40, %v350_v26 }
 0x69f   : > { %1612 = vmatmul.msk.f32.gmra.mxu3 %vm542_vm11, %v1263_v39 }
 0x6a7   : > { %1613 = vmatmul.msk.f32.gmra.mxu3 %vm542_vm11, %v1278_v34 }
 0x6dd   : > { %v865_v44 = vpop.f32.mrf.mxu1 }
 0x6de   : > { %v885_v3 = vadd.f32 %v865_v44, %v351_v1 }
 0x6e2   : > { %v1329_v36 = vpop.f32.mrf.mxu3 }
 0x6e3   : > { %1616 = vmatmul.msk.f32.gmra.mxu2 %vm356_vm0, %v1329_v36 }
 0x6e5   : > { %v868_v9 = vpop.f32.mrf.mxu1 }
 0x6e6   : > { %v886_v10 = vadd.f32 %v868_v9, %v352_v7 }
 0x6ea   : > { %v1332_v37 = vpop.f32.mrf.mxu3 }
 0x6eb   : > { %1617 = vmatmul.msk.f32.gmra.mxu2 %vm356_vm0, %v1332_v37 }
 0x6ed   : > { %v871_v14 = vpop.f32.mrf.mxu1 }
 0x6ee   : > { %v887_v16 = vadd.f32 %v871_v14, %v353_v15 }
 0x6f2   : > { %v1335_v25 = vpop.f32.mrf.mxu3 }
 0x6f3   : > { %1618 = vmatmul.msk.f32.gmra.mxu2 %vm356_vm0, %v1335_v25 }
 0x6f5   : > { %v874_v23 = vpop.f32.mrf.mxu1 }
 0x6f6   : > { %v888_v59 = vadd.f32 %v874_v23, %v354_v19 }
 0x6fa   : > { %v1338_v2 = vpop.f32.mrf.mxu3 }
 0x6fb   : > { %1619 = vmatmul.msk.f32.gmra.mxu2 %vm356_vm0, %v1338_v2 }
 0x6fd   : > { %v877_v29 = vpop.f32.mrf.mxu1 }
 0x6fe   : > { %v889_v56 = vadd.f32 %v877_v29, %v355_v57 }
 0x702   : > { %v1341_v4 = vpop.f32.mrf.mxu3 }
 0x703   : > { %1620 = vmatmul.msk.f32.gmra.mxu2 %vm356_vm0, %v1341_v4 }
 0x71a   : > { %v1344_v43 = vpop.f32.mrf.mxu3 }
 0x71b   : > { %1621 = vmatmul.msk.f32.gmra.mxu2 %vm356_vm0, %v1344_v43 }
 0x722   : > { %v1347_v38 = vpop.f32.mrf.mxu3 }
 0x723   : > { %1622 = vmatmul.msk.f32.gmra.mxu2 %vm356_vm0, %v1347_v38 }
 0x72a   : > { %v1350_v41 = vpop.f32.mrf.mxu3 }
 0x72b   : > { %1623 = vmatmul.msk.f32.gmra.mxu2 %vm356_vm0, %v1350_v41 }
 0x766   : > { %v1406_v12 = vpop.f32.mrf.mxu2 }
 0x767   : > { %v1432_v47 = vadd.f32 %v1406_v12, %v882_v45 }
 0x769   : > { %1443 = vst.msk [vmem:[%s2085_s28 + $0x10] sm:$0xff] %vm1440_vm6, %v1432_v47 }
 0x76e   : > { %v1409_v24 = vpop.f32.mrf.mxu2 }
 0x76f   : > { %v1433_v52 = vadd.f32 %v1409_v24, %v883_v55 }
 0x771   : > { %1444 = vst.msk [vmem:[%s2085_s28 + $0x18] sm:$0xff] %vm1440_vm6, %v1433_v52 }
 0x776   : > { %v1412_v62 = vpop.f32.mrf.mxu2 }
 0x777   : > { %v1434_v63 = vadd.f32 %v1412_v62, %v884_v54 }
 0x779   : > { %1445 = vst.msk [vmem:[%s2085_s28 + $0x20] sm:$0xff] %vm1440_vm6, %v1434_v63 }
 0x77e   : > { %v1415_v0 = vpop.f32.mrf.mxu2 }
 0x77f   : > { %v1435_v5 = vadd.f32 %v1415_v0, %v885_v3 }
 0x781   : > { %1446 = vst.msk [vmem:[%s2085_s28 + $0x28] sm:$0xff] %vm1440_vm6, %v1435_v5 }
 0x786   : > { %v1418_v53 = vpop.f32.mrf.mxu2 }
 0x787   : > { %v1436_v11 = vadd.f32 %v1418_v53, %v886_v10 }
 0x789   : > { %1447 = vst.msk [vmem:[%s2085_s28 + $0x30] sm:$0xff] %vm1440_vm6, %v1436_v11 }
 0x79e   : > { %v1421_v58 = vpop.f32.mrf.mxu2 }
 0x79f   : > { %v1437_v21 = vadd.f32 %v1421_v58, %v887_v16 }
 0x7a1   : > { %1448 = vst.msk [vmem:[%s2085_s28 + $0x38] sm:$0xff] %vm1440_vm6, %v1437_v21 }
 0x7a6   : > { %v1424_v28 = vpop.f32.mrf.mxu2 }
 0x7a7   : > { %v1438_v17 = vadd.f32 %v1424_v28, %v888_v59 }
 0x7a9   : > { %1449 = vst.msk [vmem:[%s2085_s28 + $0x40] sm:$0xff] %vm1440_vm6, %v1438_v17 }
 0x7ae   : > { %v1427_v30 = vpop.f32.mrf.mxu2 }
 0x7af   : > { %v1439_v31 = vadd.f32 %v1427_v30, %v889_v56 }
 0x7b1   : > { %1450 = vst.msk [vmem:[%s2085_s28 + $0x48] sm:$0xff] %vm1440_vm6, %v1439_v31 }
 0x7b2 PF: > { %s16_s21 = sadd.s32 1, %s1730_s21  }
 0x7b3   : > { %p13_p4 = scmp.ge.s32.totalorder %s16_s21, 4  }
 0x7b5   :  { %15 = sbr.rel (!%p13_p4) target bundleno = 1 (0x1), region = 83 }

// kernel: block_forward.9
= control target key start
LH: loop header
LB: loop body
LE: loop exit
PB: predicated region body
PF: predicated region fallthrough
CT: control target
= control target key end

     0   :  { %s1027_s24 = smov 0   ;;  %s1459_s0 = inlined_call_operand.vmem [shape: f32[160,32], index: 0, kind: input, shape index: {}]   ;;  %s1460_s1 = inlined_call_operand.vmem [shape: f32[1,32], index: 1, kind: input, shape index: {}]   ;;  %s1461_s2 = inlined_call_operand.vmem [shape: f32[1,32], index: 2, kind: input, shape index: {}]   ;;  %s1462_s3 = inlined_call_operand.vmem [shape: f32[32,128], index: 3, kind: input, shape index: {}]   ;;  %s1463_s4 = inlined_call_operand.vmem [shape: f32[1,128], index: 4, kind: input, shape index: {}]   ;;  %s1464_s5 = inlined_call_operand.vmem [shape: f32[128,32], index: 5, kind: input, shape index: {}]   ;;  %s1465_s6 = inlined_call_operand.vmem [shape: f32[1,32], index: 6, kind: input, shape index: {}]   ;;  %s1466_s7 = inlined_call_operand.vmem [shape: f32[160,32], index: 7, kind: output, shape index: {}]  }
   0x1 LB: > { %s866_s25 = sadd.s32 4294967295, %s984_s24   ;;  %p870_p0 = scmp.ge.s32.totalorder %s984_s24, 1  ;;  %s984_s24 = sphi %s1027_s24, %s17_s24  }
   0x2   : > { %p238_p1 = scmp.lt.s32.totalorder %s984_s24, 3 }
   0x4   : > { %p239_p2 = pnand %p870_p0, %p238_p1 }
   0x5   : > { %s270_s26 = smul.u32 (!%p239_p2), 10, %s866_s25 }
   0x6   : > { %242 = sbr.rel (%p239_p2) target bundleno = 626 (0x272), region = 48 }
   0x7   : > { %p271_p3 = scmp.lt.s32.totalorder (!%p239_p2), %s270_s26, 19 }
   0xb   : > { %s1480_s26 = smov (!%p271_p3, %s270_s26), 19  ;;  %vm292_vm0 = vcmask 261120   ;;  %v986_v20 = vmov 32.0  }
   0xc   : > { %s871_s27 = sshll.u32 %s1480_s26, 3  ;;  %934 = vrcp.f32 %v986_v20 }
   0xd   : > { %s1043_s30 = scalar_lea.vmem %s1459_s0, %s871_s27  ;;  %s1424_s20 = scalar_lea.vmem %s1466_s7, %s871_s27 }
   0xe   : > { %v1046_v0 = vld [vmem:[%s1043_s30 + $0x20] sm:$0xff]  ;;  %v1049_v1 = vld [vmem:[%s1043_s30 + $0x10] sm:$0xff]  ;;  %v289_v6 = vld [vmem:[%s1043_s30 + $0x38] sm:$0xff] }
   0xf   : > { %v1052_v2 = vld [vmem:[%s1043_s30] sm:$0xff]  ;;  %v305_v3 = vsel %vm292_vm0, %v1046_v0, 0.0  ;;  %v299_v4 = vsel %vm292_vm0, %v1049_v1, 0.0  ;;  %v1062_v7 = vld [vmem:[%s1043_s30 + $0x18] sm:$0xff]  ;;  %v1065_v8 = vld [vmem:[%s1043_s30 + $0x8] sm:$0xff]  ;;  %v314_v9 = vsel %vm292_vm0, %v289_v6, 0.0 }
  0x10   : > { %v293_v5 = vsel %vm292_vm0, %v1052_v2, 0.0  ;;  %306 = vadd.xlane.f32.xlu2 %v305_v3  ;;  %300 = vadd.xlane.f32.xlu1 %v299_v4  ;;  %v302_v10 = vsel %vm292_vm0, %v1062_v7, 0.0  ;;  %v296_v11 = vsel %vm292_vm0, %v1065_v8, 0.0  ;;  %v1073_v12 = vld [vmem:[%s1043_s30 + $0x40] sm:$0xff]  ;;  %v1076_v13 = vld [vmem:[%s1043_s30 + $0x28] sm:$0xff]  ;;  %v1086_v17 = vld [vmem:[%s1043_s30 + $0x30] sm:$0xff] }
  0x11   : > { %294 = vadd.xlane.f32.xlu0 %v293_v5  ;;  %v317_v14 = vsel %vm292_vm0, %v1073_v12, 0.0  ;;  %v308_v15 = vsel %vm292_vm0, %v1076_v13, 0.0  ;;  %v1083_v16 = vld [vmem:[%s1043_s30 + $0x48] sm:$0xff]  ;;  %v311_v19 = vsel %vm292_vm0, %v1086_v17, 0.0 }
  0x12   : > { %v320_v18 = vsel %vm292_vm0, %v1083_v16, 0.0  ;;  %v935_v21 = vpop.eup %934 }
  0x13   : > { %v324_v22 = vmul.f32 32.0, %v935_v21  ;;  %vm328_vm1 = vweird.f32 %v935_v21 }
  0x15   : > { %v325_v23 = vsub.f32 1.0, %v324_v22  ;;  %v550_v22 = vld [vmem:[%s1462_s3 + $0x10] sm:$0xff] }
  0x17   : > { %v326_v24 = vmul.f32 %v935_v21, %v325_v23  ;;  %v549_v23 = vld [vmem:[%s1462_s3 + $0x8] sm:$0xff] }
  0x18   : > { %315 = vadd.xlane.f32.xlu2 %v314_v9  ;;  %303 = vadd.xlane.f32.xlu1 %v302_v10 }
  0x19   : > { %297 = vadd.xlane.f32.xlu0 %v296_v11  ;;  %v327_v25 = vadd.f32 %v935_v21, %v326_v24  ;;  %v548_v24 = vld [vmem:[%s1462_s3] sm:$0xff] }
  0x1b   : > { %v1092_v26 = vsel %vm328_vm1, %v935_v21, %v327_v25  ;;  %v551_v21 = vld [vmem:[%s1462_s3 + $0x18] sm:$0xff] }
  0x1c   : > { %598 = vmatpush.msra.mxu0 %v551_v21  ;;  %885 = vmatpush.msra.mxu3 %v551_v21 }
  0x1e   : > { %599 = vmatpush.msra.mxu0 %v550_v22  ;;  %886 = vmatpush.msra.mxu3 %v550_v22 }
  0x20   : > { %318 = vadd.xlane.f32.xlu1 %v317_v14  ;;  %600 = vmatpush.msra.mxu0 %v549_v23 }
  0x21   : > { %309 = vadd.xlane.f32.xlu0 %v308_v15  ;;  %887 = vmatpush.msra.mxu3 %v549_v23 }
  0x22   : > { %601 = vmatpush.msra.mxu0 %v548_v24 }
  0x23   : > { %888 = vmatpush.msra.mxu3 %v548_v24 }
  0x28   : > { %321 = vadd.xlane.f32.xlu1 %v320_v18 }
  0x29   : > { %312 = vadd.xlane.f32.xlu0 %v311_v19 }
  0x83   : > { %v307_v27 = vpop.xlane.xlu2 %306  ;;  %v301_v28 = vpop.xlane.xlu1 %300 }
  0x84   : > { %v332_v29 = vmul.f32 %v1092_v26, %v301_v28  ;;  %v295_v30 = vpop.xlane.xlu0 %294  ;;  %v334_v43 = vmul.f32 %v1092_v26, %v307_v27 }
  0x85   : > { %v330_v31 = vmul.f32 %v1092_v26, %v295_v30 }
  0x86   : > { %v1097_v32 = vsub.f32 %v1049_v1, %v332_v29  ;;  %v1125_v50 = vsub.f32 %v1046_v0, %v334_v43 }
  0x87   : > { %v1100_v33 = vsub.f32 %v1052_v2, %v330_v31 }
  0x88   : > { %v352_v34 = vmul.f32 %v1097_v32, %v1097_v32  ;;  %v354_v59 = vmul.f32 %v1125_v50, %v1125_v50 }
  0x89   : > { %v350_v35 = vmul.f32 %v1100_v33, %v1100_v33 }
  0x8a   : > { %v366_v36 = vsel %vm292_vm0, %v352_v34, 0.0  ;;  %v372_v62 = vsel %vm292_vm0, %v354_v59, 0.0 }
  0x8b   : > { %v316_v37 = vpop.xlane.xlu2 %315  ;;  %v304_v38 = vpop.xlane.xlu1 %303  ;;  %367 = vadd.xlane.f32.xlu0 %v366_v36  ;;  %v360_v39 = vsel %vm292_vm0, %v350_v35, 0.0 }
  0x8c   : > { %v337_v40 = vmul.f32 %v1092_v26, %v316_v37  ;;  %v333_v41 = vmul.f32 %v1092_v26, %v304_v38  ;;  %361 = vadd.xlane.f32.xlu2 %v360_v39  ;;  %v298_v42 = vpop.xlane.xlu0 %297 }
  0x8d   : > { %v331_v44 = vmul.f32 %v1092_v26, %v298_v42 }
  0x8e   : > { %v1112_v45 = vsub.f32 %v289_v6, %v337_v40  ;;  %v1115_v46 = vsub.f32 %v1062_v7, %v333_v41 }
  0x8f   : > { %v1118_v47 = vsub.f32 %v1065_v8, %v331_v44 }
  0x90   : > { %v353_v48 = vmul.f32 %v1115_v46, %v1115_v46  ;;  %v357_v49 = vmul.f32 %v1112_v45, %v1112_v45 }
  0x91   : > { %v351_v51 = vmul.f32 %v1118_v47, %v1118_v47 }
  0x92   : > { %v369_v52 = vsel %vm292_vm0, %v353_v48, 0.0  ;;  %v381_v53 = vsel %vm292_vm0, %v357_v49, 0.0 }
  0x93   : > { %370 = vadd.xlane.f32.xlu1 %v369_v52  ;;  %v319_v54 = vpop.xlane.xlu1 %318  ;;  %382 = vadd.xlane.f32.xlu0 %v381_v53  ;;  %v363_v55 = vsel %vm292_vm0, %v351_v51, 0.0 }
  0x94   : > { %364 = vadd.xlane.f32.xlu2 %v363_v55  ;;  %v310_v56 = vpop.xlane.xlu0 %309  ;;  %v338_v57 = vmul.f32 %v1092_v26, %v319_v54 }
  0x95   : > { %v335_v58 = vmul.f32 %v1092_v26, %v310_v56 }
  0x96   : > { %v1140_v61 = vsub.f32 %v1073_v12, %v338_v57 }
  0x97   : > { %v1137_v60 = vsub.f32 %v1076_v13, %v335_v58 }
  0x98   : > { %v358_v9 = vmul.f32 %v1140_v61, %v1140_v61 }
  0x99   : > { %v355_v63 = vmul.f32 %v1137_v60, %v1137_v60 }
  0x9a   : > { %v384_v15 = vsel %vm292_vm0, %v358_v9, 0.0 }
  0x9b   : > { %v322_v0 = vpop.xlane.xlu1 %321  ;;  %v375_v3 = vsel %vm292_vm0, %v355_v63, 0.0 }
  0x9c   : > { %v339_v4 = vmul.f32 %v1092_v26, %v322_v0  ;;  %373 = vadd.xlane.f32.xlu2 %v372_v62  ;;  %376 = vadd.xlane.f32.xlu1 %v375_v3  ;;  %v313_v5 = vpop.xlane.xlu0 %312 }
  0x9d   : > { %v336_v6 = vmul.f32 %v1092_v26, %v313_v5 }
  0x9e   : > { %v1151_v10 = vsub.f32 %v1083_v16, %v339_v4 }
  0x9f   : > { %v1154_v11 = vsub.f32 %v1086_v17, %v336_v6 }
  0xa0   : > { %v359_v14 = vmul.f32 %v1151_v10, %v1151_v10 }
  0xa1   : > { %v356_v18 = vmul.f32 %v1154_v11, %v1154_v11 }
  0xa2   : > { %v387_v19 = vsel %vm292_vm0, %v359_v14, 0.0 }
  0xa3   : > { %v378_v20 = vsel %vm292_vm0, %v356_v18, 0.0 }
  0xa4   : > { %385 = vadd.xlane.f32.xlu2 %v384_v15  ;;  %388 = vadd.xlane.f32.xlu1 %v387_v19  ;;  %v1210_v19 = vld [vmem:[%s1460_s1] ss:$0 sm:$0xff] }
  0xa5   : > { %379 = vadd.xlane.f32.xlu0 %v378_v20 }
  0xfe   : > { %v368_v25 = vpop.xlane.xlu0 %367 }
  0xff   : > { %v362_v27 = vpop.xlane.xlu2 %361  ;;  %v392_v28 = vmul.f32 %v368_v25, %v1092_v26 }
 0x100   : > { %v390_v29 = vmul.f32 %v362_v27, %v1092_v26 }
 0x101   : > { %v1177_v30 = vadd.f32 1e-05, %v392_v28 }
 0x102   : > { %v400_v31 = vadd.f32 1e-05, %v390_v29  ;;  %v1220_v29 = vld [vmem:[%s1461_s2] ss:$0 sm:$0xff] }
 0x103   : > { %936 = vrsqrt.f32 %v1177_v30  ;;  %vm436_vm5 = vweird.f32 %v1177_v30 }
 0x104   : > { %938 = vrsqrt.f32 %v400_v31  ;;  %vm416_vm3 = vweird.f32 %v400_v31 }
 0x106   : > { %v371_v34 = vpop.xlane.xlu1 %370  ;;  %v383_v35 = vpop.xlane.xlu0 %382 }
 0x107   : > { %v393_v36 = vmul.f32 %v371_v34, %v1092_v26  ;;  %v365_v37 = vpop.xlane.xlu2 %364  ;;  %v397_v38 = vmul.f32 %v383_v35, %v1092_v26 }
 0x108   : > { %v391_v39 = vmul.f32 %v365_v37, %v1092_v26 }
 0x109   : > { %v1183_v40 = vpop.eup %936  ;;  %v1185_v41 = vadd.f32 1e-05, %v393_v36  ;;  %v407_v42 = vadd.f32 1e-05, %v397_v38 }
 0x10a   : > { %v939_v43 = vpop.eup %938  ;;  %v431_v44 = vmul.f32 %v1183_v40, %v1177_v30  ;;  %v401_v48 = vadd.f32 1e-05, %v391_v39  ;;  %vm437_vm6 = vweird.f32 %v1183_v40 }
 0x10b   : > { %v411_v49 = vmul.f32 %v939_v43, %v400_v31  ;;  %940 = vrsqrt.f32 %v1185_v41  ;;  %vm417_vm2 = vweird.f32 %v939_v43  ;;  %vm486_vm7 = vweird.f32 %v407_v42  ;;  %vm1229_vm10 = vmor %vm436_vm5, %vm437_vm6 }
 0x10c   : > { %942 = vrsqrt.f32 %v401_v48  ;;  %v432_v52 = vmul.f32 %v1183_v40, %v431_v44  ;;  %vm1199_vm4 = vmor %vm416_vm3, %vm417_vm2  ;;  %vm426_vm11 = vweird.f32 %v401_v48  ;;  %vm446_vm14 = vweird.f32 %v1185_v41 }
 0x10d   : > { %v412_v51 = vmul.f32 %v939_v43, %v411_v49  ;;  %944 = vrsqrt.f32 %v407_v42 }
 0x10e   : > { %v433_v62 = vmul.f32 0.5, %v432_v52 }
 0x10f   : > { %v413_v53 = vmul.f32 0.5, %v412_v51  ;;  %v374_v54 = vpop.xlane.xlu2 %373  ;;  %v377_v55 = vpop.xlane.xlu1 %376 }
 0x110   : > { %v394_v56 = vmul.f32 %v374_v54, %v1092_v26  ;;  %v395_v6 = vmul.f32 %v377_v55, %v1092_v26  ;;  %v434_v20 = vsub.f32 1.5, %v433_v62 }
 0x111   : > { %v1192_v57 = vpop.eup %940  ;;  %v414_v58 = vsub.f32 1.5, %v413_v53 }
 0x112   : > { %v943_v59 = vpop.eup %942  ;;  %v1194_v63 = vadd.f32 1e-05, %v394_v56  ;;  %v441_v4 = vmul.f32 %v1192_v57, %v1185_v41  ;;  %v1214_v24 = vadd.f32 1e-05, %v395_v6  ;;  %v435_v51 = vmul.f32 %v1183_v40, %v434_v20 }
 0x113   : > { %v945_v0 = vpop.eup %944  ;;  %v415_v3 = vmul.f32 %v939_v43, %v414_v58  ;;  %v421_v5 = vmul.f32 %v943_v59, %v401_v48  ;;  %vm427_vm9 = vweird.f32 %v943_v59  ;;  %vm447_vm15 = vweird.f32 %v1192_v57 }
 0x114   : > { %v481_v14 = vmul.f32 %v945_v0, %v407_v42  ;;  %946 = vrsqrt.f32 %v1194_v63  ;;  %v442_v22 = vmul.f32 %v1192_v57, %v441_v4  ;;  %vm487_vm8 = vweird.f32 %v945_v0  ;;  %vm428_vm13 = vmor %vm426_vm11, %vm427_vm9 }
 0x115   : > { %v419_v15 = vsel %vm1199_vm4, %v939_v43, %v415_v3  ;;  %v422_v18 = vmul.f32 %v943_v59, %v421_v5  ;;  %vm1240_vm12 = vmor %vm486_vm7, %vm487_vm8  ;;  %948 = vrsqrt.f32 %v1214_v24  ;;  %v439_v48 = vsel %vm1229_vm10, %v1183_v40, %v435_v51 }
 0x116   : > { %v482_v21 = vmul.f32 %v945_v0, %v481_v14  ;;  %v510_v28 = vmul.f32 %v419_v15, %v1100_v33  ;;  %v443_v54 = vmul.f32 0.5, %v442_v22  ;;  %v512_v40 = vmul.f32 %v439_v48, %v1097_v32  ;;  %vm1275_vm1 = vmor %vm446_vm14, %vm447_vm15  ;;  %v736_v48 = vld [vmem:[%s1464_s5 + $0x68] sm:$0xff] }
 0x117   : > { %v423_v23 = vmul.f32 0.5, %v422_v18  ;;  %v386_v25 = vpop.xlane.xlu2 %385  ;;  %v389_v27 = vpop.xlane.xlu1 %388  ;;  %vm456_vm6 = vweird.f32 %v1194_v63  ;;  %vm466_vm11 = vweird.f32 %v1214_v24 }
 0x118   : > { %v483_v31 = vmul.f32 0.5, %v482_v21  ;;  %v398_v34 = vmul.f32 %v386_v25, %v1092_v26  ;;  %v399_v35 = vmul.f32 %v389_v27, %v1092_v26  ;;  %v380_v37 = vpop.xlane.xlu0 %379  ;;  %v524_v38 = vmul.f32 %v1210_v19, %v510_v28 }
 0x119   : > { %v424_v36 = vsub.f32 1.5, %v423_v23  ;;  %v396_v56 = vmul.f32 %v380_v37, %v1092_v26  ;;  %v444_v3 = vsub.f32 1.5, %v443_v54  ;;  %v526_v28 = vmul.f32 %v1210_v19, %v512_v40  ;;  %v734_v23 = vld [vmem:[%s1464_s5 + $0x58] sm:$0xff] }
 0x11a   : > { %v484_v39 = vsub.f32 1.5, %v483_v31  ;;  %v408_v43 = vadd.f32 1e-05, %v398_v34  ;;  %v1233_v44 = vadd.f32 1e-05, %v399_v35  ;;  %v1235_v49 = vpop.eup %946  ;;  %v538_v30 = vadd.f32 %v1220_v29, %v524_v38 }
 0x11b   : > { %v425_v52 = vmul.f32 %v943_v59, %v424_v36  ;;  %v451_v62 = vmul.f32 %v1235_v49, %v1194_v63  ;;  %v1256_v4 = vadd.f32 1e-05, %v396_v56  ;;  %v1261_v6 = vpop.eup %948  ;;  %vm457_vm8 = vweird.f32 %v1235_v49 }
 0x11c   : > { %v485_v55 = vmul.f32 %v945_v0, %v484_v39  ;;  %950 = vrsqrt.f32 %v408_v43  ;;  %873 = vmatmul.msk.f32.vlgmr.msra.gmra.mxu0 %vm292_vm0, %v538_v30  ;;  %v461_v21 = vmul.f32 %v1261_v6, %v1214_v24  ;;  %vm496_vm2 = vweird.f32 %v408_v43  ;;  %vm1312_vm10 = vmor %vm456_vm6, %vm457_vm8 }
 0x11d   : > { %v429_v58 = vsel %vm428_vm13, %v943_v59, %v425_v52  ;;  %952 = vrsqrt.f32 %v1233_v44  ;;  %v452_v5 = vmul.f32 %v1235_v49, %v451_v62  ;;  %vm506_vm4 = vweird.f32 %v1233_v44 }
 0x11e   : > { %v489_v42 = vsel %vm1240_vm12, %v945_v0, %v485_v55  ;;  %v511_v26 = vmul.f32 %v429_v58, %v1118_v47  ;;  %v445_v47 = vmul.f32 %v1192_v57, %v444_v3  ;;  %954 = vrsqrt.f32 %v1256_v4  ;;  %v738_v55 = vld [vmem:[%s1464_s5 + $0x78] sm:$0xff] }
 0x11f   : > { %v517_v59 = vmul.f32 %v489_v42, %v1112_v45  ;;  %v453_v20 = vmul.f32 0.5, %v452_v5  ;;  %v462_v35 = vmul.f32 %v1261_v6, %v461_v21  ;;  %743 = vmatpush.msra.mxu1 %v738_v55  ;;  %890 = vmatpush.msrb.mxu3 %v738_v55  ;;  %vm467_vm12 = vweird.f32 %v1261_v6 }
 0x120   : > { %v525_v9 = vmul.f32 %v1210_v19, %v511_v26  ;;  %v449_v31 = vsel %vm1275_vm1, %v1192_v57, %v445_v47  ;;  %889 = vmatpush.msra.mxu2 %v738_v55  ;;  %vm468_vm13 = vmor %vm466_vm11, %vm467_vm12  ;;  %vm476_vm14 = vweird.f32 %v1256_v4 }
 0x121   : > { %v531_v0 = vmul.f32 %v1210_v19, %v517_v59  ;;  %v454_v34 = vsub.f32 1.5, %v453_v20  ;;  %v513_v57 = vmul.f32 %v449_v31, %v1115_v46  ;;  %v463_v52 = vmul.f32 0.5, %v462_v35  ;;  %v737_v46 = vld [vmem:[%s1464_s5 + $0x70] sm:$0xff]  ;;  %v735_v59 = vld [vmem:[%s1464_s5 + $0x60] sm:$0xff]  ;;  %v726_v31 = vld [vmem:[%s1464_s5 + $0x18] sm:$0xff] }
 0x122   : > { %v951_v14 = vpop.eup %950  ;;  %v539_v45 = vadd.f32 %v1220_v29, %v525_v9  ;;  %744 = vmatpush.msra.mxu1 %v737_v46  ;;  %892 = vmatpush.msrb.mxu3 %v737_v46  ;;  %v724_v35 = vld [vmem:[%s1464_s5 + $0x8] sm:$0xff] }
 0x123   : > { %v953_v15 = vpop.eup %952  ;;  %v491_v18 = vmul.f32 %v951_v14, %v408_v43  ;;  %v545_v41 = vadd.f32 %v1220_v29, %v531_v0  ;;  %vm497_vm3 = vweird.f32 %v951_v14  ;;  %v540_v43 = vadd.f32 %v1220_v29, %v526_v28  ;;  %891 = vmatpush.msra.mxu2 %v737_v46  ;;  %v727_v28 = vld [vmem:[%s1464_s5 + $0x20] sm:$0xff] }
 0x124   : > { %v501_v22 = vmul.f32 %v953_v15, %v1233_v44  ;;  %874 = vmatmul.msk.f32.gmra.mxu0 %vm292_vm0, %v539_v45  ;;  %v1286_v37 = vpop.eup %954  ;;  %vm507_vm5 = vweird.f32 %v953_v15  ;;  %vm498_vm7 = vmor %vm496_vm2, %vm497_vm3  ;;  %v455_v51 = vmul.f32 %v1235_v49, %v454_v34  ;;  %v527_v42 = vmul.f32 %v1210_v19, %v513_v57  ;;  %745 = vmatpush.msra.mxu1 %v736_v48  ;;  %v725_v34 = vld [vmem:[%s1464_s5 + $0x10] sm:$0xff] }
 0x125   : > { %v492_v32 = vmul.f32 %v951_v14, %v491_v18  ;;  %880 = vmatmul.msk.f32.vlgmr.msra.gmra.mxu3 %vm292_vm0, %v545_v41  ;;  %vm1294_vm9 = vmor %vm506_vm4, %vm507_vm5  ;;  %v471_v44 = vmul.f32 %v1286_v37, %v1256_v4  ;;  %v464_v3 = vsub.f32 1.5, %v463_v52  ;;  %893 = vmatpush.msra.mxu2 %v736_v48  ;;  %vm477_vm15 = vweird.f32 %v1286_v37 }
 0x126   : > { %v502_v25 = vmul.f32 %v953_v15, %v501_v22  ;;  %894 = vmatpush.msrb.mxu3 %v736_v48  ;;  %v541_v9 = vadd.f32 %v1220_v29, %v527_v42  ;;  %746 = vmatpush.msra.mxu1 %v735_v59  ;;  %vm478_vm1 = vmor %vm476_vm14, %vm477_vm15 }
 0x127   : > { %v493_v27 = vmul.f32 0.5, %v492_v32  ;;  %v472_v63 = vmul.f32 %v1286_v37, %v471_v44  ;;  %895 = vmatpush.msra.mxu2 %v735_v59  ;;  %v733_v32 = vld [vmem:[%s1464_s5 + $0x50] sm:$0xff] }
 0x128   : > { %v503_v36 = vmul.f32 0.5, %v502_v25  ;;  %896 = vmatpush.msrb.mxu3 %v735_v59  ;;  %747 = vmatpush.msra.mxu1 %v734_v23  ;;  %v729_v25 = vld [vmem:[%s1464_s5 + $0x30] sm:$0xff] }
 0x129   : > { %v494_v38 = vsub.f32 1.5, %v493_v27  ;;  %v473_v40 = vmul.f32 0.5, %v472_v63  ;;  %897 = vmatpush.msra.mxu2 %v734_v23  ;;  %v728_v27 = vld [vmem:[%s1464_s5 + $0x28] sm:$0xff] }
 0x12a   : > { %v504_v33 = vsub.f32 1.5, %v503_v36  ;;  %898 = vmatpush.msrb.mxu3 %v734_v23  ;;  %748 = vmatpush.msra.mxu1 %v733_v32  ;;  %v723_v36 = vld [vmem:[%s1464_s5] sm:$0xff] }
 0x12b   : > { %v495_v39 = vmul.f32 %v951_v14, %v494_v38  ;;  %v474_v47 = vsub.f32 1.5, %v473_v40  ;;  %899 = vmatpush.msra.mxu2 %v733_v32 }
 0x12c   : > { %v505_v53 = vmul.f32 %v953_v15, %v504_v33  ;;  %875 = vmatmul.msk.f32.gmra.mxu0 %vm292_vm0, %v540_v43  ;;  %900 = vmatpush.msrb.mxu3 %v733_v32 }
 0x12d   : > { %v499_v54 = vsel %vm498_vm7, %v951_v14, %v495_v39  ;;  %v465_v14 = vmul.f32 %v1261_v6, %v464_v3  ;;  %v475_v20 = vmul.f32 %v1286_v37, %v474_v47 }
 0x12e   : > { %v518_v56 = vmul.f32 %v499_v54, %v1140_v61  ;;  %v509_v62 = vsel %vm1294_vm9, %v953_v15, %v505_v53  ;;  %v459_v61 = vsel %vm1312_vm10, %v1235_v49, %v455_v51 }
 0x12f   : > { %v519_v49 = vmul.f32 %v509_v62, %v1151_v10  ;;  %v514_v0 = vmul.f32 %v459_v61, %v1125_v50  ;;  %v469_v15 = vsel %vm468_vm13, %v1261_v6, %v465_v14  ;;  %v479_v21 = vsel %vm478_vm1, %v1286_v37, %v475_v20  ;;  %v1397_v37 = vld [vmem:[%s1463_s4] ss:$0 sm:$0xff] }
 0x130   : > { %v532_v26 = vmul.f32 %v1210_v19, %v518_v56  ;;  %v515_v45 = vmul.f32 %v469_v15, %v1137_v60  ;;  %v516_v22 = vmul.f32 %v479_v21, %v1154_v11  ;;  %v732_v11 = vld [vmem:[%s1464_s5 + $0x48] sm:$0xff] }
 0x131   : > { %v533_v24 = vmul.f32 %v1210_v19, %v519_v49  ;;  %v528_v10 = vmul.f32 %v1210_v19, %v514_v0  ;;  %749 = vmatpush.msra.mxu1 %v732_v11  ;;  %902 = vmatpush.msrb.mxu3 %v732_v11 }
 0x132   : > { %v546_v5 = vadd.f32 %v1220_v29, %v532_v26  ;;  %v529_v6 = vmul.f32 %v1210_v19, %v515_v45  ;;  %v530_v41 = vmul.f32 %v1210_v19, %v516_v22  ;;  %v731_v19 = vld [vmem:[%s1464_s5 + $0x40] sm:$0xff]  ;;  %901 = vmatpush.msra.mxu2 %v732_v11 }
 0x133   : > { %v547_v50 = vadd.f32 %v1220_v29, %v533_v24  ;;  %v542_v18 = vadd.f32 %v1220_v29, %v528_v10  ;;  %750 = vmatpush.msra.mxu1 %v731_v19  ;;  %904 = vmatpush.msrb.mxu3 %v731_v19 }
 0x134   : > { %881 = vmatmul.msk.f32.gmra.mxu3 %vm292_vm0, %v546_v5  ;;  %876 = vmatmul.msk.f32.gmra.mxu0 %vm292_vm0, %v541_v9  ;;  %v543_v4 = vadd.f32 %v1220_v29, %v529_v6  ;;  %v544_v60 = vadd.f32 %v1220_v29, %v530_v41  ;;  %v730_v29 = vld [vmem:[%s1464_s5 + $0x38] sm:$0xff] }
 0x135   : > { %903 = vmatpush.msra.mxu2 %v731_v19  ;;  %751 = vmatpush.msra.mxu1 %v730_v29 }
 0x136   : > { %906 = vmatpush.msrb.mxu3 %v730_v29 }
 0x137   : > { %905 = vmatpush.msra.mxu2 %v730_v29  ;;  %752 = vmatpush.msra.mxu1 %v729_v25 }
 0x138   : > { %908 = vmatpush.msrb.mxu3 %v729_v25 }
 0x139   : > { %907 = vmatpush.msra.mxu2 %v729_v25  ;;  %753 = vmatpush.msra.mxu1 %v728_v27 }
 0x13a   : > { %910 = vmatpush.msrb.mxu3 %v728_v27 }
 0x13b   : > { %909 = vmatpush.msra.mxu2 %v728_v27  ;;  %754 = vmatpush.msra.mxu1 %v727_v28 }
 0x13c   : > { %882 = vmatmul.msk.f32.gmra.mxu3 %vm292_vm0, %v547_v50  ;;  %877 = vmatmul.msk.f32.gmra.mxu0 %vm292_vm0, %v542_v18 }
 0x13d   : > { %912 = vmatpush.msrb.mxu3 %v727_v28  ;;  %911 = vmatpush.msra.mxu2 %v727_v28 }
 0x13e   : > { %755 = vmatpush.msra.mxu1 %v726_v31 }
 0x13f   : > { %914 = vmatpush.msrb.mxu3 %v726_v31  ;;  %913 = vmatpush.msra.mxu2 %v726_v31 }
 0x140   : > { %756 = vmatpush.msra.mxu1 %v725_v34 }
 0x141   : > { %916 = vmatpush.msrb.mxu3 %v725_v34  ;;  %915 = vmatpush.msra.mxu2 %v725_v34 }
 0x142   : > { %757 = vmatpush.msra.mxu1 %v724_v35 }
 0x143   : > { %918 = vmatpush.msrb.mxu3 %v724_v35  ;;  %917 = vmatpush.msra.mxu2 %v724_v35 }
 0x144   : > { %878 = vmatmul.msk.f32.gmra.mxu0 %vm292_vm0, %v543_v4  ;;  %758 = vmatpush.msra.mxu1 %v723_v36 }
 0x145   : > { %920 = vmatpush.msrb.mxu3 %v723_v36  ;;  %919 = vmatpush.msra.mxu2 %v723_v36 }
 0x14c   : > { %879 = vmatmul.msk.f32.gmra.mxu0 %vm292_vm0, %v544_v60 }
 0x199   : > { %v603_v38 = vpop.f32.mrf.mxu0 }
 0x19a   : > { %v604_v33 = vadd.f32 %v1397_v37, %v603_v38 }
 0x19c   : > { %v643_v39 = vmul.f32 0.044715, %v604_v33  ;;  %v633_v42 = vmul.f32 0.5, %v604_v33 }
 0x19e   : > { %v653_v43 = vmul.f32 %v643_v39, %v604_v33 }
 0x1a0   : > { %v663_v57 = vmul.f32 %v653_v43, %v604_v33 }
 0x1a1   : > { %v606_v51 = vpop.f32.mrf.mxu0 }
 0x1a2   : > { %v673_v52 = vadd.f32 %v663_v57, %v604_v33  ;;  %v607_v53 = vadd.f32 %v1397_v37, %v606_v51 }
 0x1a4   : > { %v683_v30 = vmul.f32 0.7978846, %v673_v52  ;;  %v644_v44 = vmul.f32 0.044715, %v607_v53  ;;  %v634_v10 = vmul.f32 0.5, %v607_v53 }
 0x1a6   : > { %956 = vtanh.f32 %v683_v30  ;;  %v654_v54 = vmul.f32 %v644_v44, %v607_v53 }
 0x1a8   : > { %v664_v55 = vmul.f32 %v654_v54, %v607_v53  ;;  %v624_v63 = vpop.f32.mrf.mxu3 }
 0x1a9   : > { %v609_v46 = vpop.f32.mrf.mxu0  ;;  %v1407_v36 = vadd.f32 %v1397_v37, %v624_v63 }
 0x1aa   : > { %v610_v56 = vadd.f32 %v1397_v37, %v609_v46  ;;  %v674_v58 = vadd.f32 %v664_v55, %v607_v53 }
 0x1ab   : > { %v650_v46 = vmul.f32 0.044715, %v1407_v36 }
 0x1ac   : > { %v957_v62 = vpop.eup %956  ;;  %v684_v61 = vmul.f32 0.7978846, %v674_v58  ;;  %v645_v3 = vmul.f32 0.044715, %v610_v56  ;;  %v635_v11 = vmul.f32 0.5, %v610_v56 }
 0x1ad   : > { %v703_v48 = vadd.f32 1.0, %v957_v62  ;;  %v660_v63 = vmul.f32 %v650_v46, %v1407_v36 }
 0x1ae   : > { %958 = vtanh.f32 %v684_v61  ;;  %v655_v59 = vmul.f32 %v645_v3, %v610_v56 }
 0x1af   : > { %v713_v26 = vmul.f32 %v703_v48, %v633_v42 }
 0x1b0   : > { %v665_v5 = vmul.f32 %v655_v59, %v610_v56 }
 0x1b1   : > { %759 = vmatmul.f32.vlgmr.msra.gmra.mxu1 %v713_v26  ;;  %v612_v49 = vpop.f32.mrf.mxu0 }
 0x1b2   : > { %v613_v9 = vadd.f32 %v1397_v37, %v612_v49  ;;  %v675_v0 = vadd.f32 %v665_v5, %v610_v56 }
 0x1b4   : > { %v959_v14 = vpop.eup %958  ;;  %v685_v40 = vmul.f32 0.7978846, %v675_v0  ;;  %v646_v24 = vmul.f32 0.044715, %v613_v9  ;;  %v636_v44 = vmul.f32 0.5, %v613_v9 }
 0x1b5   : > { %v704_v15 = vadd.f32 1.0, %v959_v14 }
 0x1b6   : > { %960 = vtanh.f32 %v685_v40  ;;  %v656_v50 = vmul.f32 %v646_v24, %v613_v9 }
 0x1b7   : > { %v627_v47 = vpop.f32.mrf.mxu3  ;;  %v714_v45 = vmul.f32 %v704_v15, %v634_v10 }
 0x1b8   : > { %v628_v18 = vadd.f32 %v1397_v37, %v627_v47  ;;  %v666_v20 = vmul.f32 %v656_v50, %v613_v9  ;;  %v670_v47 = vmul.f32 %v660_v63, %v1407_v36 }
 0x1b9   : > { %v615_v21 = vpop.f32.mrf.mxu0  ;;  %762 = vmatmul.f32.gmra.mxu1 %v714_v45 }
 0x1ba   : > { %v651_v6 = vmul.f32 0.044715, %v628_v18  ;;  %v616_v4 = vadd.f32 %v1397_v37, %v615_v21  ;;  %v676_v22 = vadd.f32 %v666_v20, %v613_v9  ;;  %v641_v59 = vmul.f32 0.5, %v628_v18 }
 0x1bb   : > { %v680_v21 = vadd.f32 %v670_v47, %v1407_v36 }
 0x1bc   : > { %v661_v41 = vmul.f32 %v651_v6, %v628_v18  ;;  %v961_v60 = vpop.eup %960  ;;  %v686_v23 = vmul.f32 0.7978846, %v676_v22  ;;  %v647_v32 = vmul.f32 0.044715, %v616_v4  ;;  %v637_v24 = vmul.f32 0.5, %v616_v4 }
 0x1bd   : > { %v705_v19 = vadd.f32 1.0, %v961_v60 }
 0x1be   : > { %v671_v29 = vmul.f32 %v661_v41, %v628_v18  ;;  %962 = vtanh.f32 %v686_v23  ;;  %v657_v27 = vmul.f32 %v647_v32, %v616_v4  ;;  %v690_v32 = vmul.f32 0.7978846, %v680_v21 }
 0x1bf   : > { %v630_v25 = vpop.f32.mrf.mxu3  ;;  %v715_v31 = vmul.f32 %v705_v19, %v635_v11 }
 0x1c0   : > { %v631_v28 = vadd.f32 %v1397_v37, %v630_v25  ;;  %v681_v34 = vadd.f32 %v671_v29, %v628_v18  ;;  %v667_v35 = vmul.f32 %v657_v27, %v616_v4 }
 0x1c1   : > { %v618_v38 = vpop.f32.mrf.mxu0  ;;  %765 = vmatmul.f32.gmra.mxu1 %v715_v31 }
 0x1c2   : > { %v691_v33 = vmul.f32 0.7978846, %v681_v34  ;;  %v652_v39 = vmul.f32 0.044715, %v631_v28  ;;  %v619_v43 = vadd.f32 %v1397_v37, %v618_v38  ;;  %v677_v57 = vadd.f32 %v667_v35, %v616_v4  ;;  %v933_v38 = vld [vmem:[%s1465_s6] ss:$0 sm:$0xff] }
 0x1c3   : > { %v640_v34 = vmul.f32 0.5, %v1407_v36 }
 0x1c4   : > { %964 = vtanh.f32 %v691_v33  ;;  %v662_v51 = vmul.f32 %v652_v39, %v631_v28  ;;  %v963_v52 = vpop.eup %962  ;;  %v687_v53 = vmul.f32 0.7978846, %v677_v57  ;;  %v648_v30 = vmul.f32 0.044715, %v619_v43 }
 0x1c5   : > { %v706_v54 = vadd.f32 1.0, %v963_v52  ;;  %v638_v23 = vmul.f32 0.5, %v619_v43 }
 0x1c6   : > { %v672_v55 = vmul.f32 %v662_v51, %v631_v28  ;;  %966 = vtanh.f32 %v687_v53  ;;  %v658_v56 = vmul.f32 %v648_v30, %v619_v43 }
 0x1c7   : > { %v716_v58 = vmul.f32 %v706_v54, %v636_v44 }
 0x1c8   : > { %v682_v62 = vadd.f32 %v672_v55, %v631_v28  ;;  %v668_v42 = vmul.f32 %v658_v56, %v619_v43 }
 0x1c9   : > { %v621_v61 = vpop.f32.mrf.mxu0  ;;  %768 = vmatmul.f32.gmra.mxu1 %v716_v58 }
 0x1ca   : > { %v965_v48 = vpop.eup %964  ;;  %v692_v3 = vmul.f32 0.7978846, %v682_v62  ;;  %v622_v26 = vadd.f32 %v1397_v37, %v621_v61  ;;  %v678_v49 = vadd.f32 %v668_v42, %v619_v43  ;;  %v642_v37 = vmul.f32 0.5, %v631_v28 }
 0x1cb   : > { %v711_v5 = vadd.f32 1.0, %v965_v48 }
 0x1cc   : > { %968 = vtanh.f32 %v692_v3  ;;  %v967_v9 = vpop.eup %966  ;;  %v688_v14 = vmul.f32 0.7978846, %v678_v49  ;;  %v649_v40 = vmul.f32 0.044715, %v622_v26  ;;  %v639_v29 = vmul.f32 0.5, %v622_v26 }
 0x1cd   : > { %v721_v0 = vmul.f32 %v711_v5, %v641_v59  ;;  %v707_v10 = vadd.f32 1.0, %v967_v9  ;;  %v977_v9 = vld [vmem:[%s1043_s30 + $0x38] sm:$0xff] }
 0x1ce   : > { %970 = vtanh.f32 %v688_v14  ;;  %v659_v15 = vmul.f32 %v649_v40, %v622_v26 }
 0x1cf   : > { %783 = vmatmul.f32.vlgmr.msrb.gmra.mxu3 %v721_v0  ;;  %v717_v50 = vmul.f32 %v707_v10, %v637_v24 }
 0x1d0   : > { %v669_v45 = vmul.f32 %v659_v15, %v622_v26 }
 0x1d1   : > { %771 = vmatmul.f32.vlgmr.msra.gmra.mxu2 %v717_v50 }
 0x1d2   : > { %v969_v20 = vpop.eup %968  ;;  %v679_v6 = vadd.f32 %v669_v45, %v622_v26 }
 0x1d3   : > { %v712_v18 = vadd.f32 1.0, %v969_v20 }
 0x1d4   : > { %v971_v22 = vpop.eup %970  ;;  %v689_v60 = vmul.f32 0.7978846, %v679_v6 }
 0x1d5   : > { %v722_v41 = vmul.f32 %v712_v18, %v642_v37  ;;  %v708_v4 = vadd.f32 1.0, %v971_v22 }
 0x1d6   : > { %972 = vtanh.f32 %v689_v60 }
 0x1d7   : > { %786 = vmatmul.f32.gmra.mxu3 %v722_v41  ;;  %v718_v11 = vmul.f32 %v708_v4, %v638_v23  ;;  %974 = vtanh.f32 %v690_v32 }
 0x1d9   : > { %774 = vmatmul.f32.gmra.mxu2 %v718_v11 }
 0x1dc   : > { %v973_v19 = vpop.eup %972 }
 0x1dd   : > { %v709_v25 = vadd.f32 1.0, %v973_v19  ;;  %v975_v28 = vpop.eup %974 }
 0x1de   : > { %v710_v31 = vadd.f32 1.0, %v975_v28 }
 0x1df   : > { %v719_v27 = vmul.f32 %v709_v25, %v639_v29 }
 0x1e0   : > { %v720_v35 = vmul.f32 %v710_v31, %v640_v34 }
 0x1e1   : > { %777 = vmatmul.f32.gmra.mxu2 %v719_v27 }
 0x1e9   : > { %780 = vmatmul.f32.gmra.mxu2 %v720_v35 }
 0x22e   : > { %v760_v33 = vpop.f32.mrf.mxu1 }
 0x22f   : > { %v761_v39 = vadd.f32 %v933_v38, %v760_v33 }
 0x231   : > { %v790_v36 = vadd.f32 %v761_v39, %v1052_v2 }
 0x233   : > { %800 = vst.msk [vmem:[%s1424_s20] sm:$0xff] %vm292_vm0, %v790_v36 }
 0x236   : > { %v763_v43 = vpop.f32.mrf.mxu1 }
 0x237   : > { %v764_v57 = vadd.f32 %v933_v38, %v763_v43 }
 0x239   : > { %v791_v51 = vadd.f32 %v764_v57, %v1065_v8 }
 0x23b   : > { %801 = vst.msk [vmem:[%s1424_s20 + $0x8] sm:$0xff] %vm292_vm0, %v791_v51 }
 0x23e   : > { %v766_v52 = vpop.f32.mrf.mxu1 }
 0x23f   : > { %v767_v53 = vadd.f32 %v933_v38, %v766_v52 }
 0x241   : > { %v792_v30 = vadd.f32 %v767_v53, %v1049_v1  ;;  %v976_v1 = vld [vmem:[%s1043_s30 + $0x20] sm:$0xff] }
 0x243   : > { %802 = vst.msk [vmem:[%s1424_s20 + $0x10] sm:$0xff] %vm292_vm0, %v792_v30 }
 0x246   : > { %v769_v44 = vpop.f32.mrf.mxu1 }
 0x247   : > { %v770_v54 = vadd.f32 %v933_v38, %v769_v44 }
 0x249   : > { %v793_v2 = vadd.f32 %v770_v54, %v1062_v7 }
 0x24b   : > { %803 = vst.msk [vmem:[%s1424_s20 + $0x18] sm:$0xff] %vm292_vm0, %v793_v2 }
 0x252   : > { %v784_v55 = vpop.f32.mrf.mxu3 }
 0x253   : > { %v785_v8 = vadd.f32 %v933_v38, %v784_v55 }
 0x254   : > { %v772_v56 = vpop.f32.mrf.mxu2 }
 0x255   : > { %v798_v46 = vadd.f32 %v785_v8, %v1073_v12  ;;  %v773_v58 = vadd.f32 %v933_v38, %v772_v56 }
 0x257   : > { %808 = vst.msk [vmem:[%s1424_s20 + $0x40] sm:$0xff] %vm292_vm0, %v798_v46  ;;  %v794_v62 = vadd.f32 %v976_v1, %v773_v58 }
 0x259   : > { %804 = vst.msk [vmem:[%s1424_s20 + $0x20] sm:$0xff] %vm292_vm0, %v794_v62 }
 0x25a   : > { %v787_v42 = vpop.f32.mrf.mxu3 }
 0x25b   : > { %v788_v7 = vadd.f32 %v933_v38, %v787_v42 }
 0x25c   : > { %v775_v61 = vpop.f32.mrf.mxu2 }
 0x25d   : > { %v799_v48 = vadd.f32 %v788_v7, %v1083_v16  ;;  %v776_v3 = vadd.f32 %v933_v38, %v775_v61 }
 0x25f   : > { %809 = vst.msk [vmem:[%s1424_s20 + $0x48] sm:$0xff] %vm292_vm0, %v799_v48  ;;  %v795_v12 = vadd.f32 %v776_v3, %v1076_v13 }
 0x261   : > { %805 = vst.msk [vmem:[%s1424_s20 + $0x28] sm:$0xff] %vm292_vm0, %v795_v12 }
 0x264   : > { %v778_v63 = vpop.f32.mrf.mxu2 }
 0x265   : > { %v779_v26 = vadd.f32 %v933_v38, %v778_v63 }
 0x267   : > { %v796_v59 = vadd.f32 %v779_v26, %v1086_v17 }
 0x269   : > { %806 = vst.msk [vmem:[%s1424_s20 + $0x30] sm:$0xff] %vm292_vm0, %v796_v59 }
 0x26c   : > { %v781_v5 = vpop.f32.mrf.mxu2 }
 0x26d   : > { %v782_v49 = vadd.f32 %v933_v38, %v781_v5 }
 0x26f   : > { %v797_v0 = vadd.f32 %v977_v9, %v782_v49 }
 0x271   : > { %807 = vst.msk [vmem:[%s1424_s20 + $0x38] sm:$0xff] %vm292_vm0, %v797_v0 }
 0x272 PF: > { %s17_s24 = sadd.s32 1, %s984_s24  }
 0x273   : > { %p14_p4 = scmp.ge.s32.totalorder %s17_s24, 4  }
 0x275   :  { %16 = sbr.rel (!%p14_p4) target bundleno = 1 (0x1), region = 78 }

</bundles_post_ra>
